<compile_context>
chip_gen: v5e
topology: v5e:2x2
jax: 0.10.0
libtpu: 0.0.40
codegen_flags: <defaults>
</compile_context>

<pallas_src>
import functools
import math

import jax
import jax.numpy as jnp
from jax.experimental import pallas as pl
from jax.experimental.pallas import tpu as pltpu


def _vmem_limit_bytes():
    try:
        cap = int(pltpu.get_tpu_info().vmem_capacity_bytes)
    except Exception:
        cap = 64 * 1024 * 1024
    # leave headroom for spills; 96 MiB on 128-MiB chips (v5e/v6e), ~48 MiB on v7x.
    return int(min(96 * 1024 * 1024, max(cap - 16 * 1024 * 1024, 32 * 1024 * 1024)))


_VMEM_LIMIT = _vmem_limit_bytes()


def _cp(sem):
    return pltpu.CompilerParams(dimension_semantics=sem, vmem_limit_bytes=_VMEM_LIMIT)


def _round_up(x, m):
    return ((x + m - 1) // m) * m


def _pick_rt(m, cap=1024):
    """Row tile: whole array if it fits, else the largest multiple-of-8 divisor <= cap."""
    if m <= cap:
        return m
    for rt in range(cap, 7, -8):
        if m % rt == 0:
            return rt
    return m  # fallback: single block


def _pick_hidden_chunk(hidden):
    """MLP hidden-dim (K-split) chunk: whole dim when small, else a 128-multiple divisor."""
    if hidden <= 1024:
        return hidden
    for c in (1024, 768, 512, 384, 256, 128):
        if hidden % c == 0:
            return c
    return hidden


# ----------------------------- Pallas kernels ------------------------------

def _ln_rows(x, g, b):
    mu = jnp.mean(x, axis=-1, keepdims=True)
    var = jnp.mean((x - mu) ** 2, axis=-1, keepdims=True)
    return (x - mu) * jax.lax.rsqrt(var + 1e-5) * g + b


def _matmul_nobias_kernel(x_ref, w_ref, o_ref):
    # patch embedding: conv-as-matmul, no bias (bf16 operands, f32 accumulate)
    x = x_ref[...].astype(jnp.bfloat16)
    o_ref[...] = jnp.dot(x, w_ref[...], preferred_element_type=jnp.float32).astype(o_ref.dtype)


def _layernorm_kernel(x_ref, g_ref, b_ref, o_ref):
    x = x_ref[...].astype(jnp.float32)
    o_ref[...] = _ln_rows(x, g_ref[...], b_ref[...]).astype(o_ref.dtype)


def _ln_qkv_kernel(x_ref, g_ref, b_ref, qw_ref, kw_ref, vw_ref, qb_ref, kb_ref, vb_ref,
                   q_ref, k_ref, v_ref):
    # LN1 -> q/k/v projections, fused; q scale already folded into qw/qb at init.
    x = x_ref[...].astype(jnp.float32)
    h = _ln_rows(x, g_ref[...], b_ref[...]).astype(jnp.bfloat16)
    q_ref[...] = (jnp.dot(h, qw_ref[...], preferred_element_type=jnp.float32)
                  + qb_ref[...]).astype(q_ref.dtype)
    k_ref[...] = (jnp.dot(h, kw_ref[...], preferred_element_type=jnp.float32)
                  + kb_ref[...]).astype(k_ref.dtype)
    v_ref[...] = (jnp.dot(h, vw_ref[...], preferred_element_type=jnp.float32)
                  + vb_ref[...]).astype(v_ref.dtype)


def _attn_group_kernel(q_ref, k_ref, v_ref, o_ref, *, dh, n_valid):
    # One (batch, head_group) block per grid step; refs are (Np, group_width) bf16 with the
    # group's heads packed along lanes. Output written back in the same packed layout, so
    # the out-projection consumes it directly (no XLA transposes).
    npad, gw = q_ref.shape
    hg = gw // dh
    outs = []
    for h in range(hg):                      # tiny static loop (<= 8 heads / group)
        sl = pl.ds(h * dh, dh)
        qh = q_ref[:, sl]
        kh = k_ref[:, sl]
        vh = v_ref[:, sl]
        # K consumed untransposed: contract on the Dh axis of both operands.
        s = jax.lax.dot_general(qh, kh, (((1,), (1,)), ((), ())),
                                preferred_element_type=jnp.float32)
        if npad > n_valid:                    # mask padded key tokens (static branch)
            kmask = jax.lax.broadcasted_iota(jnp.int32, s.shape, 1) < n_valid
            s = jnp.where(kmask, s, -1e30)
        s = s - jnp.max(s, axis=-1, keepdims=True)
        p = jnp.exp(s)
        inv = pl.reciprocal(jnp.sum(p, axis=-1, keepdims=True), approx=True)
        p = (p * inv).astype(jnp.bfloat16)
        outs.append(jnp.dot(p, vh, preferred_element_type=jnp.float32))
    o_ref[...] = jnp.concatenate(outs, axis=-1).astype(o_ref.dtype)  # lane-dense store


def _block_fused_kernel(a_ref, x_ref, ow_ref, ob_ref, g2_ref, b2_ref,
                        fw_ref, fb_ref, pw_ref, pb_ref, o_ref, h_sc, acc_sc):
    # out-proj + bias + residual + LN2 -> fc -> QuickGELU -> proj + bias + residual,
    # K-split over the MLP hidden dim on grid axis 1 ("arbitrary") with a VMEM accumulator.
    c = pl.program_id(1)

    @pl.when(c == 0)
    def _():
        a = a_ref[...].astype(jnp.bfloat16)
        x2 = (jnp.dot(a, ow_ref[...], preferred_element_type=jnp.float32)
              + ob_ref[...] + x_ref[...].astype(jnp.float32))
        h_sc[...] = _ln_rows(x2, g2_ref[...], b2_ref[...]).astype(jnp.bfloat16)
        acc_sc[...] = x2 + pb_ref[...]        # residual + proj bias seed the accumulator

    y = jnp.dot(h_sc[...], fw_ref[...], preferred_element_type=jnp.float32) + fb_ref[...]
    y = y * jax.nn.sigmoid(1.702 * y)         # QuickGELU in f32 (EUP)
    acc_sc[...] += jnp.dot(y.astype(jnp.bfloat16), pw_ref[...],
                           preferred_element_type=jnp.float32)

    @pl.when(c == pl.num_programs(1) - 1)
    def _():
        o_ref[...] = acc_sc[...].astype(o_ref.dtype)


def _head_logits_kernel(c_ref, g_ref, b_ref, pw_ref, wn_ref, o_ref):
    # ln_post -> visual projection -> L2-normalize -> cosine logits (weight pre-normalized)
    x = c_ref[...].astype(jnp.float32)
    h = _ln_rows(x, g_ref[...], b_ref[...]).astype(jnp.bfloat16)
    e = jnp.dot(h, pw_ref[...], preferred_element_type=jnp.float32)
    inv = jax.lax.rsqrt(jnp.maximum(jnp.sum(e * e, axis=-1, keepdims=True), 1e-24))
    en = e * inv
    o_ref[...] = jnp.dot(en, wn_ref[...], preferred_element_type=jnp.float32).astype(o_ref.dtype)


def _ln_proj_norm_kernel(c_ref, g_ref, b_ref, pw_ref, o_ref):
    # ln_post -> visual projection -> L2-normalize (return_logits=False path)
    x = c_ref[...].astype(jnp.float32)
    h = _ln_rows(x, g_ref[...], b_ref[...]).astype(jnp.bfloat16)
    e = jnp.dot(h, pw_ref[...], preferred_element_type=jnp.float32)
    inv = jax.lax.rsqrt(jnp.maximum(jnp.sum(e * e, axis=-1, keepdims=True), 1e-24))
    o_ref[...] = (e * inv).astype(o_ref.dtype)


# ------------------------------ Pallas wrappers -----------------------------
# TODO(synk): single-buffer the constant weight/bias blocks (pipeline_mode=pl.Buffered(1))
# once that path is load-bearing at CLIP scale; omitted here to keep lowering portable.

def patch_embed_p(patches, w_t):
    mr, kdim = patches.shape
    wd = w_t.shape[1]
    rt = _pick_rt(mr)
    return pl.pallas_call(
        _matmul_nobias_kernel,
        grid=(mr // rt,),
        out_shape=jax.ShapeDtypeStruct((mr, wd), jnp.float32),
        in_specs=[pl.BlockSpec((rt, kdim), lambda i: (i, 0)),
                  pl.BlockSpec((kdim, wd), lambda i: (0, 0))],
        out_specs=pl.BlockSpec((rt, wd), lambda i: (i, 0)),
        compiler_params=_cp(("parallel",)),
    )(patches, w_t)


def layernorm_p(x, g, b, rt):
    m, w = x.shape
    row = pl.BlockSpec((rt, w), lambda i: (i, 0))
    vec = pl.BlockSpec((1, w), lambda i: (0, 0))
    return pl.pallas_call(
        _layernorm_kernel,
        grid=(m // rt,),
        out_shape=jax.ShapeDtypeStruct((m, w), jnp.bfloat16),
        in_specs=[row, vec, vec],
        out_specs=row,
        compiler_params=_cp(("parallel",)),
    )(x, g, b)


def ln_qkv_p(xs, blk, rt):
    m, w = xs.shape
    row_in = pl.BlockSpec((rt, w), lambda i: (i, 0))
    row_out = pl.BlockSpec((rt, w), lambda i: (i, 0))
    vec = pl.BlockSpec((1, w), lambda i: (0, 0))
    mat = pl.BlockSpec((w, w), lambda i: (0, 0))
    out_sd = jax.ShapeDtypeStruct((m, w), jnp.bfloat16)
    return pl.pallas_call(
        _ln_qkv_kernel,
        grid=(m // rt,),
        out_shape=(out_sd, out_sd, out_sd),
        in_specs=[row_in, vec, vec, mat, mat, mat, vec, vec, vec],
        out_specs=(row_out, row_out, row_out),
        compiler_params=_cp(("parallel",)),
        cost_estimate=pl.CostEstimate(
            flops=6 * m * w * w,
            transcendentals=m,
            bytes_accessed=4 * m * w * 2 + 3 * w * w * 2),
    )(xs, blk["ln1_g"], blk["ln1_b"], blk["q_w"], blk["k_w"], blk["v_w"],
      blk["q_b"], blk["k_b"], blk["v_b"])


def attention_p(q, k, v, batch, npad, n_valid, dh, gw):
    m, w = q.shape
    n_groups = w // gw
    spec = pl.BlockSpec((npad, gw), lambda b, g: (b, g))
    return pl.pallas_call(
        functools.partial(_attn_group_kernel, dh=dh, n_valid=n_valid),
        grid=(batch, n_groups),
        out_shape=jax.ShapeDtypeStruct((m, w), jnp.bfloat16),
        in_specs=[spec, spec, spec],
        out_specs=spec,
        compiler_params=_cp(("parallel", "parallel")),
        cost_estimate=pl.CostEstimate(
            flops=4 * batch * npad * npad * w,
            transcendentals=batch * (w // dh) * npad * npad,
            bytes_accessed=4 * m * w * 2),
    )(q, k, v)


def block_fused_p(a, xs, blk, rt, hc):
    m, w = xs.shape
    hidden = blk["fc_w"].shape[1]
    n_hc = hidden // hc
    row = pl.BlockSpec((rt, w), lambda i, c: (i, 0))
    vec_w = pl.BlockSpec((1, w), lambda i, c: (0, 0))
    mat_ww = pl.BlockSpec((w, w), lambda i, c: (0, 0))
    fw_s = pl.BlockSpec((w, hc), lambda i, c: (0, c))
    fb_s = pl.BlockSpec((1, hc), lambda i, c: (0, c))
    pw_s = pl.BlockSpec((hc, w), lambda i, c: (c, 0))
    return pl.pallas_call(
        _block_fused_kernel,
        grid=(m // rt, n_hc),
        out_shape=jax.ShapeDtypeStruct((m, w), jnp.bfloat16),
        in_specs=[row, row, mat_ww, vec_w, vec_w, vec_w, fw_s, fb_s, pw_s, vec_w],
        out_specs=row,
        scratch_shapes=[pltpu.VMEM((rt, w), jnp.bfloat16),   # post-LN2 activation
                        pltpu.VMEM((rt, w), jnp.float32)],   # f32 accumulator
        compiler_params=_cp(("parallel", "arbitrary")),
        cost_estimate=pl.CostEstimate(
            flops=2 * m * w * w + 4 * m * w * hidden,
            transcendentals=m * hidden,
            bytes_accessed=3 * m * w * 2 + (w * w + 2 * w * hidden) * 2),
    )(a, xs, blk["out_w"], blk["out_b"], blk["ln2_g"], blk["ln2_b"],
      blk["fc_w"], blk["fc_b"], blk["proj_w"], blk["proj_b"])


def head_logits_p(cls_tok, g, b, proj_w, wn_t):
    bq, w = cls_tok.shape
    e = proj_w.shape[1]
    nc = wn_t.shape[1]
    return pl.pallas_call(
        _head_logits_kernel,
        grid=(1,),
        out_shape=jax.ShapeDtypeStruct((bq, nc), jnp.float32),
        in_specs=[pl.BlockSpec((bq, w), lambda i: (0, 0)),
                  pl.BlockSpec((1, w), lambda i: (0, 0)),
                  pl.BlockSpec((1, w), lambda i: (0, 0)),
                  pl.BlockSpec((w, e), lambda i: (0, 0)),
                  pl.BlockSpec((e, nc), lambda i: (0, 0))],
        out_specs=pl.BlockSpec((bq, nc), lambda i: (0, 0)),
        compiler_params=_cp(("arbitrary",)),
    )(cls_tok, g, b, proj_w, wn_t)


def ln_proj_norm_p(cls_tok, g, b, proj_w):
    bq, w = cls_tok.shape
    e = proj_w.shape[1]
    return pl.pallas_call(
        _ln_proj_norm_kernel,
        grid=(1,),
        out_shape=jax.ShapeDtypeStruct((bq, e), jnp.float32),
        in_specs=[pl.BlockSpec((bq, w), lambda i: (0, 0)),
                  pl.BlockSpec((1, w), lambda i: (0, 0)),
                  pl.BlockSpec((1, w), lambda i: (0, 0)),
                  pl.BlockSpec((w, e), lambda i: (0, 0))],
        out_specs=pl.BlockSpec((bq, e), lambda i: (0, 0)),
        compiler_params=_cp(("arbitrary",)),
    )(cls_tok, g, b, proj_w)


# ------------------------------ Model (glue) --------------------------------

def init_params(key, C, img, patch, width, heads, layers, embed_dim, num_classes):
    G = img // patch
    N = G * G + 1
    keys = list(jax.random.split(key, 8 + 8 * layers))
    ki = iter(keys)
    s = 0.02
    f32, bf16 = jnp.float32, jnp.bfloat16
    dh = width // heads
    qscale = 1.0 / math.sqrt(dh)

    conv_w = jax.random.normal(next(ki), (width, C, patch, patch), f32) * s
    p = {
        "patch": patch, "width": width, "heads": heads, "num_classes": num_classes,
        # weights pre-transposed to (K, N) once at init and stored bf16 (MXU operands)
        "conv_w_t": conv_w.reshape(width, C * patch * patch).T.astype(bf16),
        "class_emb": jax.random.normal(next(ki), (width,), f32) * s,
        "pos_emb": jax.random.normal(next(ki), (N, width), f32) * s,
        "ln_pre_g": jnp.ones((1, width), f32), "ln_pre_b": jnp.zeros((1, width), f32),
        "ln_post_g": jnp.ones((1, width), f32), "ln_post_b": jnp.zeros((1, width), f32),
        "visual_proj": (jax.random.normal(next(ki), (width, embed_dim), f32) * s).astype(bf16),
    }
    blocks = []
    for _ in range(layers):
        qkv_w = jax.random.normal(next(ki), (width, 3 * width), f32) * s
        blocks.append({
            "ln1_g": jnp.ones((1, width), f32), "ln1_b": jnp.zeros((1, width), f32),
            # attention scale 1/sqrt(Dh) folded into the q projection at init
            "q_w": (qkv_w[:, :width] * qscale).astype(bf16),
            "k_w": qkv_w[:, width:2 * width].astype(bf16),
            "v_w": qkv_w[:, 2 * width:].astype(bf16),
            "q_b": jnp.zeros((1, width), f32),
            "k_b": jnp.zeros((1, width), f32),
            "v_b": jnp.zeros((1, width), f32),
            "out_w": (jax.random.normal(next(ki), (width, width), f32) * s).astype(bf16),
            "out_b": jnp.zeros((1, width), f32),
            "ln2_g": jnp.ones((1, width), f32), "ln2_b": jnp.zeros((1, width), f32),
            "fc_w": (jax.random.normal(next(ki), (width, 4 * width), f32) * s).astype(bf16),
            "fc_b": jnp.zeros((1, 4 * width), f32),
            "proj_w": (jax.random.normal(next(ki), (4 * width, width), f32) * s).astype(bf16),
            "proj_b": jnp.zeros((1, width), f32),
        })
    p["blocks"] = blocks

    # margin_fc: nn.Linear(embed_dim, num_classes, bias=False) with xavier_uniform_.
    # Static at inference: pre-normalize rows once, transpose to (E, NC) and pad NC to a
    # lane-dense multiple of 128.
    bound = math.sqrt(6.0 / (embed_dim + num_classes))
    w = jax.random.uniform(next(ki), (num_classes, embed_dim), f32, -bound, bound)
    wn = w / jnp.maximum(jnp.linalg.norm(w, axis=1, keepdims=True), 1e-12)
    nc_pad = _round_up(num_classes, 128)
    p["margin_fc_wn_t"] = jnp.pad(wn.T, ((0, 0), (0, nc_pad - num_classes)))
    return p


def vit_classifier_forward(x, params, return_logits=True):
    """x: (B, C, H, W) NCHW float32. Returns logits (B, num_classes) or normalized emb."""
    B, C, H, _ = x.shape
    P = params["patch"]
    G = H // P
    width = params["width"]
    heads = params["heads"]
    Dh = width // heads

    # --- patch embedding: Conv2d(C, width, kernel=P, stride=P, bias=False) as matmul ---
    # TODO(synk): fuse patch extraction into the patch-embed kernel via an index_map over
    # (B, gy, gx) to avoid this one-time XLA 6-D transpose at 224x224 scale.
    patches = x.reshape(B, C, G, P, G, P).transpose(0, 2, 4, 1, 3, 5).reshape(B * G * G, C * P * P)
    tok = patch_embed_p(patches, params["conv_w_t"]).reshape(B, G * G, width)

    # --- class token + positional embedding; pad sequence ONCE to a multiple of 8 ---
    cls = jnp.broadcast_to(params["class_emb"][None, None, :], (B, 1, width))
    xseq = jnp.concatenate([cls, tok], axis=1) + params["pos_emb"][None]
    N = xseq.shape[1]
    Np = _round_up(N, 8)
    if Np != N:
        xseq = jnp.pad(xseq, ((0, 0), (0, Np - N), (0, 0)))
    M = B * Np
    rt = _pick_rt(M)

    # head packing: group width >= 128 lanes (or all heads when width < 128)
    if Dh >= 128:
        hpg = 1
    else:
        hpg = min(heads, max(1, 128 // Dh))
        while heads % hpg:
            hpg -= 1
    gw = hpg * Dh
    hc = _pick_hidden_chunk(4 * width)

    # --- ln_pre (residual stream carried bf16 between kernels) ---
    xs = layernorm_p(xseq.reshape(M, width), params["ln_pre_g"], params["ln_pre_b"], rt)

    # --- transformer residual blocks (pre-LN), 3 fused pallas_calls per block ---
    for blk in params["blocks"]:
        q, k, v = ln_qkv_p(xs, blk, rt)                       # (M, W) bf16 each, heads packed
        a = attention_p(q, k, v, B, Np, N, Dh, gw)            # (M, W) bf16, same layout
        xs = block_fused_p(a, xs, blk, rt, hc)                # out-proj+res+LN2+MLP+res (bf16)

    # --- ln_post on CLS token fused with projection (+ normalize [+ cosine head]) ---
    cls_tok = xs.reshape(B, Np, width)[:, 0, :]
    if not return_logits:
        return ln_proj_norm_p(cls_tok, params["ln_post_g"], params["ln_post_b"],
                              params["visual_proj"])
    logits = head_logits_p(cls_tok, params["ln_post_g"], params["ln_post_b"],
                           params["visual_proj"], params["margin_fc_wn_t"])
    return logits[:, :params["num_classes"]]


# ---------------------------------- main ------------------------------------

if __name__ == "__main__":
    key = jax.random.PRNGKey(0)
    k_x, k_p = jax.random.split(key)

    # small shapes consistent with the module's forward (scaled-down ViT-B/32)
    B, C, IMG, PATCH = 2, 3, 32, 8
    WIDTH, HEADS, LAYERS = 64, 4, 2
    EMBED_DIM, NUM_CLASSES = 32, 10

    x = jax.random.normal(k_x, (B, C, IMG, IMG), jnp.float32)
    params = init_params(k_p, C, IMG, PATCH, WIDTH, HEADS, LAYERS, EMBED_DIM, NUM_CLASSES)

    fwd = jax.jit(lambda inp: vit_classifier_forward(inp, params, return_logits=True))
    logits = jax.block_until_ready(fwd(x))

    assert logits.shape == (B, NUM_CLASSES)
    assert bool(jnp.all(jnp.isfinite(logits)))
    # cosine logits must lie in [-1, 1] (f32 normalization in the head kernel)
    assert bool(jnp.all(jnp.abs(logits) <= 1.0 + 1e-3))
    print("KERNEL_OK")
</pallas_src>

<mosaic_0001>
module attributes {stable_mosaic.version = 11 : i64} {
  func.func @_matmul_nobias_kernel(%arg0: i32, %arg1: memref<32x192xf32, #tpu.memory_space<vmem>>, %arg2: memref<192x64xbf16, #tpu.memory_space<vmem>>, %arg3: memref<32x64xf32, #tpu.memory_space<vmem>>) attributes {dimension_semantics = [#tpu.dimension_semantics<parallel>], iteration_bounds = array<i64: 1>, scalar_prefetch = 0 : i64, scratch_operands = 0 : i64, tpu.core_type = #tpu.core_type<tc>, window_params = [{transform_indices = @transform_0, window_bounds = array<i64: 32, 192>}, {pipeline_mode = #tpu.pipeline_mode<synchronous>, transform_indices = @transform_1, window_bounds = array<i64: 192, 64>}, {transform_indices = @transform_2, window_bounds = array<i64: 32, 64>}]} {
    %c0 = arith.constant 0 : index
    %c0_0 = arith.constant 0 : index
    %0 = vector.load %arg1[%c0, %c0_0] : memref<32x192xf32, #tpu.memory_space<vmem>>, vector<32x192xf32>
    %1 = arith.truncf %0 : vector<32x192xf32> to vector<32x192xbf16>
    %c0_1 = arith.constant 0 : index
    %c0_2 = arith.constant 0 : index
    %2 = vector.load %arg2[%c0_1, %c0_2] : memref<192x64xbf16, #tpu.memory_space<vmem>>, vector<192x64xbf16>
    %cst = arith.constant dense<0.000000e+00> : vector<32x64xf32>
    %3 = tpu.matmul %1, %2, %cst {dimension_numbers = #tpu.dot_dimension_numbers<[1], [0], [0], [1], [0, 0, 1, 1], [], []>} : vector<32x192xbf16>, vector<192x64xbf16>, vector<32x64xf32> -> vector<32x64xf32>
    %c0_3 = arith.constant 0 : index
    %c0_4 = arith.constant 0 : index
    %4 = vector.load %arg3[%c0_3, %c0_4] : memref<32x64xf32, #tpu.memory_space<vmem>>, vector<32x64xf32>
    tpu.vector_store %arg3[%c0_3, %c0_4], %3 {strides = array<i32>} : memref<32x64xf32, #tpu.memory_space<vmem>>, vector<32x64xf32>,
    return
  }
  func.func @transform_0(%arg0: i32) -> (i32, i32) {
    %c0_i32 = arith.constant 0 : i32
    %c0_i32_0 = arith.constant 0 : i32
    return %arg0, %c0_i32 : i32, i32
  }
  func.func @transform_1(%arg0: i32) -> (i32, i32) {
    %c0_i32 = arith.constant 0 : i32
    %c0_i32_0 = arith.constant 0 : i32
    %c0_i32_1 = arith.constant 0 : i32
    return %c0_i32, %c0_i32_0 : i32, i32
  }
  func.func @transform_2(%arg0: i32) -> (i32, i32) {
    %c0_i32 = arith.constant 0 : i32
    %c0_i32_0 = arith.constant 0 : i32
    return %arg0, %c0_i32 : i32, i32
  }
}

module attributes {stable_mosaic.version = 11 : i64} {
  func.func @_ln_qkv_kernel(%arg0: i32, %arg1: memref<48x64xbf16, #tpu.memory_space<vmem>>, %arg2: memref<1x64xf32, #tpu.memory_space<vmem>>, %arg3: memref<1x64xf32, #tpu.memory_space<vmem>>, %arg4: memref<64x64xbf16, #tpu.memory_space<vmem>>, %arg5: memref<64x64xbf16, #tpu.memory_space<vmem>>, %arg6: memref<64x64xbf16, #tpu.memory_space<vmem>>, %arg7: memref<1x64xf32, #tpu.memory_space<vmem>>, %arg8: memref<1x64xf32, #tpu.memory_space<vmem>>, %arg9: memref<1x64xf32, #tpu.memory_space<vmem>>, %arg10: memref<48x64xbf16, #tpu.memory_space<vmem>>, %arg11: memref<48x64xbf16, #tpu.memory_space<vmem>>, %arg12: memref<48x64xbf16, #tpu.memory_space<vmem>>) attributes {dimension_semantics = [#tpu.dimension_semantics<parallel>], iteration_bounds = array<i64: 1>, scalar_prefetch = 0 : i64, scratch_operands = 0 : i64, tpu.core_type = #tpu.core_type<tc>, window_params = [{transform_indices = @transform_0, window_bounds = array<i64: 48, 64>}, {pipeline_mode = #tpu.pipeline_mode<synchronous>, transform_indices = @transform_1, window_bounds = array<i64: 1, 64>}, {pipeline_mode = #tpu.pipeline_mode<synchronous>, transform_indices = @transform_2, window_bounds = array<i64: 1, 64>}, {pipeline_mode = #tpu.pipeline_mode<synchronous>, transform_indices = @transform_3, window_bounds = array<i64: 64, 64>}, {pipeline_mode = #tpu.pipeline_mode<synchronous>, transform_indices = @transform_4, window_bounds = array<i64: 64, 64>}, {pipeline_mode = #tpu.pipeline_mode<synchronous>, transform_indices = @transform_5, window_bounds = array<i64: 64, 64>}, {pipeline_mode = #tpu.pipeline_mode<synchronous>, transform_indices = @transform_6, window_bounds = array<i64: 1, 64>}, {pipeline_mode = #tpu.pipeline_mode<synchronous>, transform_indices = @transform_7, window_bounds = array<i64: 1, 64>}, {pipeline_mode = #tpu.pipeline_mode<synchronous>, transform_indices = @transform_8, window_bounds = array<i64: 1, 64>}, {transform_indices = @transform_9, window_bounds = array<i64: 48, 64>}, {transform_indices = @transform_10, window_bounds = array<i64: 48, 64>}, {transform_indices = @transform_11, window_bounds = array<i64: 48, 64>}]} {
    %c0 = arith.constant 0 : index
    %c0_0 = arith.constant 0 : index
    %0 = vector.load %arg1[%c0, %c0_0] : memref<48x64xbf16, #tpu.memory_space<vmem>>, vector<48x64xbf16>
    %1 = arith.extf %0 : vector<48x64xbf16> to vector<48x64xf32>
    %c0_1 = arith.constant 0 : index
    %c0_2 = arith.constant 0 : index
    %2 = vector.load %arg2[%c0_1, %c0_2] : memref<1x64xf32, #tpu.memory_space<vmem>>, vector<1x64xf32>
    %c0_3 = arith.constant 0 : index
    %c0_4 = arith.constant 0 : index
    %3 = vector.load %arg3[%c0_3, %c0_4] : memref<1x64xf32, #tpu.memory_space<vmem>>, vector<1x64xf32>
    %cst = arith.constant dense<0.000000e+00> : vector<48xf32>
    %4 = vector.multi_reduction <add>, %1, %cst [1] : vector<48x64xf32> to vector<48xf32>
    %5 = vector.shape_cast %4 : vector<48xf32> to vector<48x1xf32>
    %cst_5 = arith.constant 6.400000e+01 : f32
    %6 = vector.broadcast %cst_5 : f32 to vector<48x1xf32>
    %7 = arith.divf %5, %6 : vector<48x1xf32>
    %8 = vector.broadcast %7 : vector<48x1xf32> to vector<48x64xf32>
    %9 = arith.subf %1, %8 : vector<48x64xf32>
    %10 = arith.mulf %9, %9 : vector<48x64xf32>
    %cst_6 = arith.constant dense<0.000000e+00> : vector<48xf32>
    %11 = vector.multi_reduction <add>, %10, %cst_6 [1] : vector<48x64xf32> to vector<48xf32>
    %12 = vector.shape_cast %11 : vector<48xf32> to vector<48x1xf32>
    %cst_7 = arith.constant 6.400000e+01 : f32
    %13 = vector.broadcast %cst_7 : f32 to vector<48x1xf32>
    %14 = arith.divf %12, %13 : vector<48x1xf32>
    %15 = vector.broadcast %7 : vector<48x1xf32> to vector<48x64xf32>
    %16 = arith.subf %1, %15 : vector<48x64xf32>
    %cst_8 = arith.constant 9.99999974E-6 : f32
    %17 = vector.broadcast %cst_8 : f32 to vector<48x1xf32>
    %18 = arith.addf %14, %17 : vector<48x1xf32>
    %19 = math.rsqrt %18 : vector<48x1xf32>
    %20 = vector.broadcast %19 : vector<48x1xf32> to vector<48x64xf32>
    %21 = arith.mulf %16, %20 : vector<48x64xf32>
    %22 = vector.broadcast %2 : vector<1x64xf32> to vector<48x64xf32>
    %23 = arith.mulf %21, %22 : vector<48x64xf32>
    %24 = vector.broadcast %3 : vector<1x64xf32> to vector<48x64xf32>
    %25 = arith.addf %23, %24 : vector<48x64xf32>
    %26 = arith.truncf %25 : vector<48x64xf32> to vector<48x64xbf16>
    %c0_9 = arith.constant 0 : index
    %c0_10 = arith.constant 0 : index
    %27 = vector.load %arg4[%c0_9, %c0_10] : memref<64x64xbf16, #tpu.memory_space<vmem>>, vector<64x64xbf16>
    %cst_11 = arith.constant dense<0.000000e+00> : vector<48x64xf32>
    %28 = tpu.matmul %26, %27, %cst_11 {dimension_numbers = #tpu.dot_dimension_numbers<[1], [0], [0], [1], [0, 0, 1, 1], [], []>} : vector<48x64xbf16>, vector<64x64xbf16>, vector<48x64xf32> -> vector<48x64xf32>
    %c0_12 = arith.constant 0 : index
    %c0_13 = arith.constant 0 : index
    %29 = vector.load %arg7[%c0_12, %c0_13] : memref<1x64xf32, #tpu.memory_space<vmem>>, vector<1x64xf32>
    %30 = vector.broadcast %29 : vector<1x64xf32> to vector<48x64xf32>
    %31 = arith.addf %28, %30 : vector<48x64xf32>
    %32 = arith.truncf %31 : vector<48x64xf32> to vector<48x64xbf16>
    %c0_14 = arith.constant 0 : index
    %c0_15 = arith.constant 0 : index
    %33 = vector.load %arg10[%c0_14, %c0_15] : memref<48x64xbf16, #tpu.memory_space<vmem>>, vector<48x64xbf16>
    tpu.vector_store %arg10[%c0_14, %c0_15], %32 {strides = array<i32>} : memref<48x64xbf16, #tpu.memory_space<vmem>>, vector<48x64xbf16>,
    %c0_16 = arith.constant 0 : index
    %c0_17 = arith.constant 0 : index
    %34 = vector.load %arg5[%c0_16, %c0_17] : memref<64x64xbf16, #tpu.memory_space<vmem>>, vector<64x64xbf16>
    %cst_18 = arith.constant dense<0.000000e+00> : vector<48x64xf32>
    %35 = tpu.matmul %26, %34, %cst_18 {dimension_numbers = #tpu.dot_dimension_numbers<[1], [0], [0], [1], [0, 0, 1, 1], [], []>} : vector<48x64xbf16>, vector<64x64xbf16>, vector<48x64xf32> -> vector<48x64xf32>
    %c0_19 = arith.constant 0 : index
    %c0_20 = arith.constant 0 : index
    %36 = vector.load %arg8[%c0_19, %c0_20] : memref<1x64xf32, #tpu.memory_space<vmem>>, vector<1x64xf32>
    %37 = vector.broadcast %36 : vector<1x64xf32> to vector<48x64xf32>
    %38 = arith.addf %35, %37 : vector<48x64xf32>
    %39 = arith.truncf %38 : vector<48x64xf32> to vector<48x64xbf16>
    %c0_21 = arith.constant 0 : index
    %c0_22 = arith.constant 0 : index
    %40 = vector.load %arg11[%c0_21, %c0_22] : memref<48x64xbf16, #tpu.memory_space<vmem>>, vector<48x64xbf16>
    tpu.vector_store %arg11[%c0_21, %c0_22], %39 {strides = array<i32>} : memref<48x64xbf16, #tpu.memory_space<vmem>>, vector<48x64xbf16>,
    %c0_23 = arith.constant 0 : index
    %c0_24 = arith.constant 0 : index
    %41 = vector.load %arg6[%c0_23, %c0_24] : memref<64x64xbf16, #tpu.memory_space<vmem>>, vector<64x64xbf16>
    %cst_25 = arith.constant dense<0.000000e+00> : vector<48x64xf32>
    %42 = tpu.matmul %26, %41, %cst_25 {dimension_numbers = #tpu.dot_dimension_numbers<[1], [0], [0], [1], [0, 0, 1, 1], [], []>} : vector<48x64xbf16>, vector<64x64xbf16>, vector<48x64xf32> -> vector<48x64xf32>
    %c0_26 = arith.constant 0 : index
    %c0_27 = arith.constant 0 : index
    %43 = vector.load %arg9[%c0_26, %c0_27] : memref<1x64xf32, #tpu.memory_space<vmem>>, vector<1x64xf32>
    %44 = vector.broadcast %43 : vector<1x64xf32> to vector<48x64xf32>
    %45 = arith.addf %42, %44 : vector<48x64xf32>
    %46 = arith.truncf %45 : vector<48x64xf32> to vector<48x64xbf16>
    %c0_28 = arith.constant 0 : index
    %c0_29 = arith.constant 0 : index
    %47 = vector.load %arg12[%c0_28, %c0_29] : memref<48x64xbf16, #tpu.memory_space<vmem>>, vector<48x64xbf16>
    tpu.vector_store %arg12[%c0_28, %c0_29], %46 {strides = array<i32>} : memref<48x64xbf16, #tpu.memory_space<vmem>>, vector<48x64xbf16>,
    return
  }
  func.func @transform_0(%arg0: i32) -> (i32, i32) {
    %c0_i32 = arith.constant 0 : i32
    %c0_i32_0 = arith.constant 0 : i32
    return %arg0, %c0_i32 : i32, i32
  }
  func.func @transform_1(%arg0: i32) -> (i32, i32) {
    %c0_i32 = arith.constant 0 : i32
    %c0_i32_0 = arith.constant 0 : i32
    %c0_i32_1 = arith.constant 0 : i32
    return %c0_i32, %c0_i32_0 : i32, i32
  }
  func.func @transform_2(%arg0: i32) -> (i32, i32) {
    %c0_i32 = arith.constant 0 : i32
    %c0_i32_0 = arith.constant 0 : i32
    %c0_i32_1 = arith.constant 0 : i32
    return %c0_i32, %c0_i32_0 : i32, i32
  }
  func.func @transform_3(%arg0: i32) -> (i32, i32) {
    %c0_i32 = arith.constant 0 : i32
    %c0_i32_0 = arith.constant 0 : i32
    %c0_i32_1 = arith.constant 0 : i32
    return %c0_i32, %c0_i32_0 : i32, i32
  }
  func.func @transform_4(%arg0: i32) -> (i32, i32) {
    %c0_i32 = arith.constant 0 : i32
    %c0_i32_0 = arith.constant 0 : i32
    %c0_i32_1 = arith.constant 0 : i32
    return %c0_i32, %c0_i32_0 : i32, i32
  }
  func.func @transform_5(%arg0: i32) -> (i32, i32) {
    %c0_i32 = arith.constant 0 : i32
    %c0_i32_0 = arith.constant 0 : i32
    %c0_i32_1 = arith.constant 0 : i32
    return %c0_i32, %c0_i32_0 : i32, i32
  }
  func.func @transform_6(%arg0: i32) -> (i32, i32) {
    %c0_i32 = arith.constant 0 : i32
    %c0_i32_0 = arith.constant 0 : i32
    %c0_i32_1 = arith.constant 0 : i32
    return %c0_i32, %c0_i32_0 : i32, i32
  }
  func.func @transform_7(%arg0: i32) -> (i32, i32) {
    %c0_i32 = arith.constant 0 : i32
    %c0_i32_0 = arith.constant 0 : i32
    %c0_i32_1 = arith.constant 0 : i32
    return %c0_i32, %c0_i32_0 : i32, i32
  }
  func.func @transform_8(%arg0: i32) -> (i32, i32) {
    %c0_i32 = arith.constant 0 : i32
    %c0_i32_0 = arith.constant 0 : i32
    %c0_i32_1 = arith.constant 0 : i32
    return %c0_i32, %c0_i32_0 : i32, i32
  }
  func.func @transform_9(%arg0: i32) -> (i32, i32) {
    %c0_i32 = arith.constant 0 : i32
    %c0_i32_0 = arith.constant 0 : i32
    return %arg0, %c0_i32 : i32, i32
  }
  func.func @transform_10(%arg0: i32) -> (i32, i32) {
    %c0_i32 = arith.constant 0 : i32
    %c0_i32_0 = arith.constant 0 : i32
    return %arg0, %c0_i32 : i32, i32
  }
  func.func @transform_11(%arg0: i32) -> (i32, i32) {
    %c0_i32 = arith.constant 0 : i32
    %c0_i32_0 = arith.constant 0 : i32
    return %arg0, %c0_i32 : i32, i32
  }
}

module attributes {stable_mosaic.version = 11 : i64} {
  func.func @_layernorm_kernel(%arg0: i32, %arg1: memref<48x64xf32, #tpu.memory_space<vmem>>, %arg2: memref<1x64xf32, #tpu.memory_space<vmem>>, %arg3: memref<1x64xf32, #tpu.memory_space<vmem>>, %arg4: memref<48x64xbf16, #tpu.memory_space<vmem>>) attributes {dimension_semantics = [#tpu.dimension_semantics<parallel>], iteration_bounds = array<i64: 1>, scalar_prefetch = 0 : i64, scratch_operands = 0 : i64, tpu.core_type = #tpu.core_type<tc>, window_params = [{transform_indices = @transform_0, window_bounds = array<i64: 48, 64>}, {pipeline_mode = #tpu.pipeline_mode<synchronous>, transform_indices = @transform_1, window_bounds = array<i64: 1, 64>}, {pipeline_mode = #tpu.pipeline_mode<synchronous>, transform_indices = @transform_2, window_bounds = array<i64: 1, 64>}, {transform_indices = @transform_3, window_bounds = array<i64: 48, 64>}]} {
    %c0 = arith.constant 0 : index
    %c0_0 = arith.constant 0 : index
    %0 = vector.load %arg1[%c0, %c0_0] : memref<48x64xf32, #tpu.memory_space<vmem>>, vector<48x64xf32>
    %c0_1 = arith.constant 0 : index
    %c0_2 = arith.constant 0 : index
    %1 = vector.load %arg2[%c0_1, %c0_2] : memref<1x64xf32, #tpu.memory_space<vmem>>, vector<1x64xf32>
    %c0_3 = arith.constant 0 : index
    %c0_4 = arith.constant 0 : index
    %2 = vector.load %arg3[%c0_3, %c0_4] : memref<1x64xf32, #tpu.memory_space<vmem>>, vector<1x64xf32>
    %cst = arith.constant dense<0.000000e+00> : vector<48xf32>
    %3 = vector.multi_reduction <add>, %0, %cst [1] : vector<48x64xf32> to vector<48xf32>
    %4 = vector.shape_cast %3 : vector<48xf32> to vector<48x1xf32>
    %cst_5 = arith.constant 6.400000e+01 : f32
    %5 = vector.broadcast %cst_5 : f32 to vector<48x1xf32>
    %6 = arith.divf %4, %5 : vector<48x1xf32>
    %7 = vector.broadcast %6 : vector<48x1xf32> to vector<48x64xf32>
    %8 = arith.subf %0, %7 : vector<48x64xf32>
    %9 = arith.mulf %8, %8 : vector<48x64xf32>
    %cst_6 = arith.constant dense<0.000000e+00> : vector<48xf32>
    %10 = vector.multi_reduction <add>, %9, %cst_6 [1] : vector<48x64xf32> to vector<48xf32>
    %11 = vector.shape_cast %10 : vector<48xf32> to vector<48x1xf32>
    %cst_7 = arith.constant 6.400000e+01 : f32
    %12 = vector.broadcast %cst_7 : f32 to vector<48x1xf32>
    %13 = arith.divf %11, %12 : vector<48x1xf32>
    %14 = vector.broadcast %6 : vector<48x1xf32> to vector<48x64xf32>
    %15 = arith.subf %0, %14 : vector<48x64xf32>
    %cst_8 = arith.constant 9.99999974E-6 : f32
    %16 = vector.broadcast %cst_8 : f32 to vector<48x1xf32>
    %17 = arith.addf %13, %16 : vector<48x1xf32>
    %18 = math.rsqrt %17 : vector<48x1xf32>
    %19 = vector.broadcast %18 : vector<48x1xf32> to vector<48x64xf32>
    %20 = arith.mulf %15, %19 : vector<48x64xf32>
    %21 = vector.broadcast %1 : vector<1x64xf32> to vector<48x64xf32>
    %22 = arith.mulf %20, %21 : vector<48x64xf32>
    %23 = vector.broadcast %2 : vector<1x64xf32> to vector<48x64xf32>
    %24 = arith.addf %22, %23 : vector<48x64xf32>
    %25 = arith.truncf %24 : vector<48x64xf32> to vector<48x64xbf16>
    %c0_9 = arith.constant 0 : index
    %c0_10 = arith.constant 0 : index
    %26 = vector.load %arg4[%c0_9, %c0_10] : memref<48x64xbf16, #tpu.memory_space<vmem>>, vector<48x64xbf16>
    tpu.vector_store %arg4[%c0_9, %c0_10], %25 {strides = array<i32>} : memref<48x64xbf16, #tpu.memory_space<vmem>>, vector<48x64xbf16>,
    return
  }
  func.func @transform_0(%arg0: i32) -> (i32, i32) {
    %c0_i32 = arith.constant 0 : i32
    %c0_i32_0 = arith.constant 0 : i32
    return %arg0, %c0_i32 : i32, i32
  }
  func.func @transform_1(%arg0: i32) -> (i32, i32) {
    %c0_i32 = arith.constant 0 : i32
    %c0_i32_0 = arith.constant 0 : i32
    %c0_i32_1 = arith.constant 0 : i32
    return %c0_i32, %c0_i32_0 : i32, i32
  }
  func.func @transform_2(%arg0: i32) -> (i32, i32) {
    %c0_i32 = arith.constant 0 : i32
    %c0_i32_0 = arith.constant 0 : i32
    %c0_i32_1 = arith.constant 0 : i32
    return %c0_i32, %c0_i32_0 : i32, i32
  }
  func.func @transform_3(%arg0: i32) -> (i32, i32) {
    %c0_i32 = arith.constant 0 : i32
    %c0_i32_0 = arith.constant 0 : i32
    return %arg0, %c0_i32 : i32, i32
  }
}

module attributes {stable_mosaic.version = 11 : i64} {
  func.func @_attn_group_kernel(%arg0: i32, %arg1: i32, %arg2: memref<24x64xbf16, #tpu.memory_space<vmem>>, %arg3: memref<24x64xbf16, #tpu.memory_space<vmem>>, %arg4: memref<24x64xbf16, #tpu.memory_space<vmem>>, %arg5: memref<24x64xbf16, #tpu.memory_space<vmem>>) attributes {dimension_semantics = [#tpu.dimension_semantics<parallel>, #tpu.dimension_semantics<parallel>], iteration_bounds = array<i64: 2, 1>, scalar_prefetch = 0 : i64, scratch_operands = 0 : i64, tpu.core_type = #tpu.core_type<tc>, window_params = [{transform_indices = @transform_0, window_bounds = array<i64: 24, 64>}, {transform_indices = @transform_1, window_bounds = array<i64: 24, 64>}, {transform_indices = @transform_2, window_bounds = array<i64: 24, 64>}, {transform_indices = @transform_3, window_bounds = array<i64: 24, 64>}]} {
    %c0 = arith.constant 0 : index
    %c0_0 = arith.constant 0 : index
    %0 = vector.load %arg2[%c0, %c0_0] : memref<24x64xbf16, #tpu.memory_space<vmem>>, vector<24x16xbf16>
    %c0_1 = arith.constant 0 : index
    %c0_2 = arith.constant 0 : index
    %1 = vector.load %arg3[%c0_1, %c0_2] : memref<24x64xbf16, #tpu.memory_space<vmem>>, vector<24x16xbf16>
    %c0_3 = arith.constant 0 : index
    %c0_4 = arith.constant 0 : index
    %2 = vector.load %arg4[%c0_3, %c0_4] : memref<24x64xbf16, #tpu.memory_space<vmem>>, vector<24x16xbf16>
    %cst = arith.constant dense<0.000000e+00> : vector<24x24xf32>
    %3 = tpu.matmul %0, %1, %cst {dimension_numbers = #tpu.dot_dimension_numbers<[1], [1], [0], [0], [0, 0, 1, 0], [], []>} : vector<24x16xbf16>, vector<24x16xbf16>, vector<24x24xf32> -> vector<24x24xf32>
    %4 = tpu.iota {dimensions = array<i32: 1>} : vector<24x24xi32>
    %c17_i32 = arith.constant 17 : i32
    %5 = vector.broadcast %c17_i32 : i32 to vector<24x24xi32>
    %6 = arith.cmpi slt, %4, %5 : vector<24x24xi32>
    %cst_5 = arith.constant -1.000000e+30 : f32
    %7 = vector.broadcast %cst_5 : f32 to vector<24x24xf32>
    %8 = arith.select %6, %3, %7 : vector<24x24xi1>, vector<24x24xf32>
    %cst_6 = arith.constant dense<0xFF800000> : vector<24xf32>
    %9 = vector.multi_reduction <maximumf>, %8, %cst_6 [1] : vector<24x24xf32> to vector<24xf32>
    %10 = vector.shape_cast %9 : vector<24xf32> to vector<24x1xf32>
    %11 = vector.broadcast %10 : vector<24x1xf32> to vector<24x24xf32>
    %12 = arith.subf %8, %11 : vector<24x24xf32>
    %13 = math.exp %12 : vector<24x24xf32>
    %cst_7 = arith.constant dense<0.000000e+00> : vector<24xf32>
    %14 = vector.multi_reduction <add>, %13, %cst_7 [1] : vector<24x24xf32> to vector<24xf32>
    %15 = vector.shape_cast %14 : vector<24xf32> to vector<24x1xf32>
    %16 = tpu.reciprocal %15 {approx = true} : vector<24x1xf32> -> vector<24x1xf32>
    %17 = vector.broadcast %16 : vector<24x1xf32> to vector<24x24xf32>
    %18 = arith.mulf %13, %17 : vector<24x24xf32>
    %19 = arith.truncf %18 : vector<24x24xf32> to vector<24x24xbf16>
    %cst_8 = arith.constant dense<0.000000e+00> : vector<24x16xf32>
    %20 = tpu.matmul %19, %2, %cst_8 {dimension_numbers = #tpu.dot_dimension_numbers<[1], [0], [0], [1], [0, 0, 1, 1], [], []>} : vector<24x24xbf16>, vector<24x16xbf16>, vector<24x16xf32> -> vector<24x16xf32>
    %c0_9 = arith.constant 0 : index
    %c16 = arith.constant 16 : index
    %21 = vector.load %arg2[%c0_9, %c16] : memref<24x64xbf16, #tpu.memory_space<vmem>>, vector<24x16xbf16>
    %c0_10 = arith.constant 0 : index
    %c16_11 = arith.constant 16 : index
    %22 = vector.load %arg3[%c0_10, %c16_11] : memref<24x64xbf16, #tpu.memory_space<vmem>>, vector<24x16xbf16>
    %c0_12 = arith.constant 0 : index
    %c16_13 = arith.constant 16 : index
    %23 = vector.load %arg4[%c0_12, %c16_13] : memref<24x64xbf16, #tpu.memory_space<vmem>>, vector<24x16xbf16>
    %cst_14 = arith.constant dense<0.000000e+00> : vector<24x24xf32>
    %24 = tpu.matmul %21, %22, %cst_14 {dimension_numbers = #tpu.dot_dimension_numbers<[1], [1], [0], [0], [0, 0, 1, 0], [], []>} : vector<24x16xbf16>, vector<24x16xbf16>, vector<24x24xf32> -> vector<24x24xf32>
    %25 = tpu.iota {dimensions = array<i32: 1>} : vector<24x24xi32>
    %c17_i32_15 = arith.constant 17 : i32
    %26 = vector.broadcast %c17_i32_15 : i32 to vector<24x24xi32>
    %27 = arith.cmpi slt, %25, %26 : vector<24x24xi32>
    %cst_16 = arith.constant -1.000000e+30 : f32
    %28 = vector.broadcast %cst_16 : f32 to vector<24x24xf32>
    %29 = arith.select %27, %24, %28 : vector<24x24xi1>, vector<24x24xf32>
    %cst_17 = arith.constant dense<0xFF800000> : vector<24xf32>
    %30 = vector.multi_reduction <maximumf>, %29, %cst_17 [1] : vector<24x24xf32> to vector<24xf32>
    %31 = vector.shape_cast %30 : vector<24xf32> to vector<24x1xf32>
    %32 = vector.broadcast %31 : vector<24x1xf32> to vector<24x24xf32>
    %33 = arith.subf %29, %32 : vector<24x24xf32>
    %34 = math.exp %33 : vector<24x24xf32>
    %cst_18 = arith.constant dense<0.000000e+00> : vector<24xf32>
    %35 = vector.multi_reduction <add>, %34, %cst_18 [1] : vector<24x24xf32> to vector<24xf32>
    %36 = vector.shape_cast %35 : vector<24xf32> to vector<24x1xf32>
    %37 = tpu.reciprocal %36 {approx = true} : vector<24x1xf32> -> vector<24x1xf32>
    %38 = vector.broadcast %37 : vector<24x1xf32> to vector<24x24xf32>
    %39 = arith.mulf %34, %38 : vector<24x24xf32>
    %40 = arith.truncf %39 : vector<24x24xf32> to vector<24x24xbf16>
    %cst_19 = arith.constant dense<0.000000e+00> : vector<24x16xf32>
    %41 = tpu.matmul %40, %23, %cst_19 {dimension_numbers = #tpu.dot_dimension_numbers<[1], [0], [0], [1], [0, 0, 1, 1], [], []>} : vector<24x24xbf16>, vector<24x16xbf16>, vector<24x16xf32> -> vector<24x16xf32>
    %c0_20 = arith.constant 0 : index
    %c32 = arith.constant 32 : index
    %42 = vector.load %arg2[%c0_20, %c32] : memref<24x64xbf16, #tpu.memory_space<vmem>>, vector<24x16xbf16>
    %c0_21 = arith.constant 0 : index
    %c32_22 = arith.constant 32 : index
    %43 = vector.load %arg3[%c0_21, %c32_22] : memref<24x64xbf16, #tpu.memory_space<vmem>>, vector<24x16xbf16>
    %c0_23 = arith.constant 0 : index
    %c32_24 = arith.constant 32 : index
    %44 = vector.load %arg4[%c0_23, %c32_24] : memref<24x64xbf16, #tpu.memory_space<vmem>>, vector<24x16xbf16>
    %cst_25 = arith.constant dense<0.000000e+00> : vector<24x24xf32>
    %45 = tpu.matmul %42, %43, %cst_25 {dimension_numbers = #tpu.dot_dimension_numbers<[1], [1], [0], [0], [0, 0, 1, 0], [], []>} : vector<24x16xbf16>, vector<24x16xbf16>, vector<24x24xf32> -> vector<24x24xf32>
    %46 = tpu.iota {dimensions = array<i32: 1>} : vector<24x24xi32>
    %c17_i32_26 = arith.constant 17 : i32
    %47 = vector.broadcast %c17_i32_26 : i32 to vector<24x24xi32>
    %48 = arith.cmpi slt, %46, %47 : vector<24x24xi32>
    %cst_27 = arith.constant -1.000000e+30 : f32
    %49 = vector.broadcast %cst_27 : f32 to vector<24x24xf32>
    %50 = arith.select %48, %45, %49 : vector<24x24xi1>, vector<24x24xf32>
    %cst_28 = arith.constant dense<0xFF800000> : vector<24xf32>
    %51 = vector.multi_reduction <maximumf>, %50, %cst_28 [1] : vector<24x24xf32> to vector<24xf32>
    %52 = vector.shape_cast %51 : vector<24xf32> to vector<24x1xf32>
    %53 = vector.broadcast %52 : vector<24x1xf32> to vector<24x24xf32>
    %54 = arith.subf %50, %53 : vector<24x24xf32>
    %55 = math.exp %54 : vector<24x24xf32>
    %cst_29 = arith.constant dense<0.000000e+00> : vector<24xf32>
    %56 = vector.multi_reduction <add>, %55, %cst_29 [1] : vector<24x24xf32> to vector<24xf32>
    %57 = vector.shape_cast %56 : vector<24xf32> to vector<24x1xf32>
    %58 = tpu.reciprocal %57 {approx = true} : vector<24x1xf32> -> vector<24x1xf32>
    %59 = vector.broadcast %58 : vector<24x1xf32> to vector<24x24xf32>
    %60 = arith.mulf %55, %59 : vector<24x24xf32>
    %61 = arith.truncf %60 : vector<24x24xf32> to vector<24x24xbf16>
    %cst_30 = arith.constant dense<0.000000e+00> : vector<24x16xf32>
    %62 = tpu.matmul %61, %44, %cst_30 {dimension_numbers = #tpu.dot_dimension_numbers<[1], [0], [0], [1], [0, 0, 1, 1], [], []>} : vector<24x24xbf16>, vector<24x16xbf16>, vector<24x16xf32> -> vector<24x16xf32>
    %c0_31 = arith.constant 0 : index
    %c48 = arith.constant 48 : index
    %63 = vector.load %arg2[%c0_31, %c48] : memref<24x64xbf16, #tpu.memory_space<vmem>>, vector<24x16xbf16>
    %c0_32 = arith.constant 0 : index
    %c48_33 = arith.constant 48 : index
    %64 = vector.load %arg3[%c0_32, %c48_33] : memref<24x64xbf16, #tpu.memory_space<vmem>>, vector<24x16xbf16>
    %c0_34 = arith.constant 0 : index
    %c48_35 = arith.constant 48 : index
    %65 = vector.load %arg4[%c0_34, %c48_35] : memref<24x64xbf16, #tpu.memory_space<vmem>>, vector<24x16xbf16>
    %cst_36 = arith.constant dense<0.000000e+00> : vector<24x24xf32>
    %66 = tpu.matmul %63, %64, %cst_36 {dimension_numbers = #tpu.dot_dimension_numbers<[1], [1], [0], [0], [0, 0, 1, 0], [], []>} : vector<24x16xbf16>, vector<24x16xbf16>, vector<24x24xf32> -> vector<24x24xf32>
    %67 = tpu.iota {dimensions = array<i32: 1>} : vector<24x24xi32>
    %c17_i32_37 = arith.constant 17 : i32
    %68 = vector.broadcast %c17_i32_37 : i32 to vector<24x24xi32>
    %69 = arith.cmpi slt, %67, %68 : vector<24x24xi32>
    %cst_38 = arith.constant -1.000000e+30 : f32
    %70 = vector.broadcast %cst_38 : f32 to vector<24x24xf32>
    %71 = arith.select %69, %66, %70 : vector<24x24xi1>, vector<24x24xf32>
    %cst_39 = arith.constant dense<0xFF800000> : vector<24xf32>
    %72 = vector.multi_reduction <maximumf>, %71, %cst_39 [1] : vector<24x24xf32> to vector<24xf32>
    %73 = vector.shape_cast %72 : vector<24xf32> to vector<24x1xf32>
    %74 = vector.broadcast %73 : vector<24x1xf32> to vector<24x24xf32>
    %75 = arith.subf %71, %74 : vector<24x24xf32>
    %76 = math.exp %75 : vector<24x24xf32>
    %cst_40 = arith.constant dense<0.000000e+00> : vector<24xf32>
    %77 = vector.multi_reduction <add>, %76, %cst_40 [1] : vector<24x24xf32> to vector<24xf32>
    %78 = vector.shape_cast %77 : vector<24xf32> to vector<24x1xf32>
    %79 = tpu.reciprocal %78 {approx = true} : vector<24x1xf32> -> vector<24x1xf32>
    %80 = vector.broadcast %79 : vector<24x1xf32> to vector<24x24xf32>
    %81 = arith.mulf %76, %80 : vector<24x24xf32>
    %82 = arith.truncf %81 : vector<24x24xf32> to vector<24x24xbf16>
    %cst_41 = arith.constant dense<0.000000e+00> : vector<24x16xf32>
    %83 = tpu.matmul %82, %65, %cst_41 {dimension_numbers = #tpu.dot_dimension_numbers<[1], [0], [0], [1], [0, 0, 1, 1], [], []>} : vector<24x24xbf16>, vector<24x16xbf16>, vector<24x16xf32> -> vector<24x16xf32>
    %84 = tpu.concatenate %20, %41, %62, %83 in 1 : vector<24x16xf32>, vector<24x16xf32>, vector<24x16xf32>, vector<24x16xf32> -> vector<24x64xf32>
    %85 = arith.truncf %84 : vector<24x64xf32> to vector<24x64xbf16>
    %c0_42 = arith.constant 0 : index
    %c0_43 = arith.constant 0 : index
    %86 = vector.load %arg5[%c0_42, %c0_43] : memref<24x64xbf16, #tpu.memory_space<vmem>>, vector<24x64xbf16>
    tpu.vector_store %arg5[%c0_42, %c0_43], %85 {strides = array<i32>} : memref<24x64xbf16, #tpu.memory_space<vmem>>, vector<24x64xbf16>,
    return
  }
  func.func @transform_0(%arg0: i32, %arg1: i32) -> (i32, i32) {
    %c0_i32 = arith.constant 0 : i32
    return %arg0, %arg1 : i32, i32
  }
  func.func @transform_1(%arg0: i32, %arg1: i32) -> (i32, i32) {
    %c0_i32 = arith.constant 0 : i32
    return %arg0, %arg1 : i32, i32
  }
  func.func @transform_2(%arg0: i32, %arg1: i32) -> (i32, i32) {
    %c0_i32 = arith.constant 0 : i32
    return %arg0, %arg1 : i32, i32
  }
  func.func @transform_3(%arg0: i32, %arg1: i32) -> (i32, i32) {
    %c0_i32 = arith.constant 0 : i32
    return %arg0, %arg1 : i32, i32
  }
}

module attributes {stable_mosaic.version = 11 : i64} {
  func.func @_block_fused_kernel(%arg0: i32, %arg1: i32, %arg2: memref<48x64xbf16, #tpu.memory_space<vmem>>, %arg3: memref<48x64xbf16, #tpu.memory_space<vmem>>, %arg4: memref<64x64xbf16, #tpu.memory_space<vmem>>, %arg5: memref<1x64xf32, #tpu.memory_space<vmem>>, %arg6: memref<1x64xf32, #tpu.memory_space<vmem>>, %arg7: memref<1x64xf32, #tpu.memory_space<vmem>>, %arg8: memref<64x256xbf16, #tpu.memory_space<vmem>>, %arg9: memref<1x256xf32, #tpu.memory_space<vmem>>, %arg10: memref<256x64xbf16, #tpu.memory_space<vmem>>, %arg11: memref<1x64xf32, #tpu.memory_space<vmem>>, %arg12: memref<48x64xbf16, #tpu.memory_space<vmem>>, %arg13: memref<48x64xbf16, #tpu.memory_space<vmem>>, %arg14: memref<48x64xf32, #tpu.memory_space<vmem>>) attributes {dimension_semantics = [#tpu.dimension_semantics<parallel>, #tpu.dimension_semantics<arbitrary>], iteration_bounds = array<i64: 1, 1>, scalar_prefetch = 0 : i64, scratch_operands = 2 : i64, tpu.core_type = #tpu.core_type<tc>, window_params = [{transform_indices = @transform_0, window_bounds = array<i64: 48, 64>}, {transform_indices = @transform_1, window_bounds = array<i64: 48, 64>}, {pipeline_mode = #tpu.pipeline_mode<synchronous>, transform_indices = @transform_2, window_bounds = array<i64: 64, 64>}, {pipeline_mode = #tpu.pipeline_mode<synchronous>, transform_indices = @transform_3, window_bounds = array<i64: 1, 64>}, {pipeline_mode = #tpu.pipeline_mode<synchronous>, transform_indices = @transform_4, window_bounds = array<i64: 1, 64>}, {pipeline_mode = #tpu.pipeline_mode<synchronous>, transform_indices = @transform_5, window_bounds = array<i64: 1, 64>}, {transform_indices = @transform_6, window_bounds = array<i64: 64, 256>}, {transform_indices = @transform_7, window_bounds = array<i64: 1, 256>}, {transform_indices = @transform_8, window_bounds = array<i64: 256, 64>}, {pipeline_mode = #tpu.pipeline_mode<synchronous>, transform_indices = @transform_9, window_bounds = array<i64: 1, 64>}, {transform_indices = @transform_10, window_bounds = array<i64: 48, 64>}]} {
    %c0_i32 = arith.constant 0 : i32
    %0 = arith.cmpi eq, %arg1, %c0_i32 : i32
    %1 = arith.extui %0 : i1 to i32
    %c0_i32_0 = arith.constant 0 : i32
    %2 = arith.cmpi ne, %1, %c0_i32_0 : i32
    scf.if %2 {
      %c0_17 = arith.constant 0 : index
      %c0_18 = arith.constant 0 : index
      %26 = vector.load %arg2[%c0_17, %c0_18] : memref<48x64xbf16, #tpu.memory_space<vmem>>, vector<48x64xbf16>
      %c0_19 = arith.constant 0 : index
      %c0_20 = arith.constant 0 : index
      %27 = vector.load %arg4[%c0_19, %c0_20] : memref<64x64xbf16, #tpu.memory_space<vmem>>, vector<64x64xbf16>
      %cst_21 = arith.constant dense<0.000000e+00> : vector<48x64xf32>
      %28 = tpu.matmul %26, %27, %cst_21 {dimension_numbers = #tpu.dot_dimension_numbers<[1], [0], [0], [1], [0, 0, 1, 1], [], []>} : vector<48x64xbf16>, vector<64x64xbf16>, vector<48x64xf32> -> vector<48x64xf32>
      %c0_22 = arith.constant 0 : index
      %c0_23 = arith.constant 0 : index
      %29 = vector.load %arg5[%c0_22, %c0_23] : memref<1x64xf32, #tpu.memory_space<vmem>>, vector<1x64xf32>
      %30 = vector.broadcast %29 : vector<1x64xf32> to vector<48x64xf32>
      %31 = arith.addf %28, %30 : vector<48x64xf32>
      %c0_24 = arith.constant 0 : index
      %c0_25 = arith.constant 0 : index
      %32 = vector.load %arg3[%c0_24, %c0_25] : memref<48x64xbf16, #tpu.memory_space<vmem>>, vector<48x64xbf16>
      %33 = arith.extf %32 : vector<48x64xbf16> to vector<48x64xf32>
      %34 = arith.addf %31, %33 : vector<48x64xf32>
      %c0_26 = arith.constant 0 : index
      %c0_27 = arith.constant 0 : index
      %35 = vector.load %arg6[%c0_26, %c0_27] : memref<1x64xf32, #tpu.memory_space<vmem>>, vector<1x64xf32>
      %c0_28 = arith.constant 0 : index
      %c0_29 = arith.constant 0 : index
      %36 = vector.load %arg7[%c0_28, %c0_29] : memref<1x64xf32, #tpu.memory_space<vmem>>, vector<1x64xf32>
      %cst_30 = arith.constant dense<0.000000e+00> : vector<48xf32>
      %37 = vector.multi_reduction <add>, %34, %cst_30 [1] : vector<48x64xf32> to vector<48xf32>
      %38 = vector.shape_cast %37 : vector<48xf32> to vector<48x1xf32>
      %cst_31 = arith.constant 6.400000e+01 : f32
      %39 = vector.broadcast %cst_31 : f32 to vector<48x1xf32>
      %40 = arith.divf %38, %39 : vector<48x1xf32>
      %41 = vector.broadcast %40 : vector<48x1xf32> to vector<48x64xf32>
      %42 = arith.subf %34, %41 : vector<48x64xf32>
      %43 = arith.mulf %42, %42 : vector<48x64xf32>
      %cst_32 = arith.constant dense<0.000000e+00> : vector<48xf32>
      %44 = vector.multi_reduction <add>, %43, %cst_32 [1] : vector<48x64xf32> to vector<48xf32>
      %45 = vector.shape_cast %44 : vector<48xf32> to vector<48x1xf32>
      %cst_33 = arith.constant 6.400000e+01 : f32
      %46 = vector.broadcast %cst_33 : f32 to vector<48x1xf32>
      %47 = arith.divf %45, %46 : vector<48x1xf32>
      %48 = vector.broadcast %40 : vector<48x1xf32> to vector<48x64xf32>
      %49 = arith.subf %34, %48 : vector<48x64xf32>
      %cst_34 = arith.constant 9.99999974E-6 : f32
      %50 = vector.broadcast %cst_34 : f32 to vector<48x1xf32>
      %51 = arith.addf %47, %50 : vector<48x1xf32>
      %52 = math.rsqrt %51 : vector<48x1xf32>
      %53 = vector.broadcast %52 : vector<48x1xf32> to vector<48x64xf32>
      %54 = arith.mulf %49, %53 : vector<48x64xf32>
      %55 = vector.broadcast %35 : vector<1x64xf32> to vector<48x64xf32>
      %56 = arith.mulf %54, %55 : vector<48x64xf32>
      %57 = vector.broadcast %36 : vector<1x64xf32> to vector<48x64xf32>
      %58 = arith.addf %56, %57 : vector<48x64xf32>
      %59 = arith.truncf %58 : vector<48x64xf32> to vector<48x64xbf16>
      %c0_35 = arith.constant 0 : index
      %c0_36 = arith.constant 0 : index
      %60 = vector.load %arg13[%c0_35, %c0_36] : memref<48x64xbf16, #tpu.memory_space<vmem>>, vector<48x64xbf16>
      tpu.vector_store %arg13[%c0_35, %c0_36], %59 {strides = array<i32>} : memref<48x64xbf16, #tpu.memory_space<vmem>>, vector<48x64xbf16>,
      %c0_37 = arith.constant 0 : index
      %c0_38 = arith.constant 0 : index
      %61 = vector.load %arg11[%c0_37, %c0_38] : memref<1x64xf32, #tpu.memory_space<vmem>>, vector<1x64xf32>
      %62 = vector.broadcast %61 : vector<1x64xf32> to vector<48x64xf32>
      %63 = arith.addf %34, %62 : vector<48x64xf32>
      %c0_39 = arith.constant 0 : index
      %c0_40 = arith.constant 0 : index
      %64 = vector.load %arg14[%c0_39, %c0_40] : memref<48x64xf32, #tpu.memory_space<vmem>>, vector<48x64xf32>
      tpu.vector_store %arg14[%c0_39, %c0_40], %63 {strides = array<i32>} : memref<48x64xf32, #tpu.memory_space<vmem>>, vector<48x64xf32>,
    } else {
    }
    %c0 = arith.constant 0 : index
    %c0_1 = arith.constant 0 : index
    %3 = vector.load %arg13[%c0, %c0_1] : memref<48x64xbf16, #tpu.memory_space<vmem>>, vector<48x64xbf16>
    %c0_2 = arith.constant 0 : index
    %c0_3 = arith.constant 0 : index
    %4 = vector.load %arg8[%c0_2, %c0_3] : memref<64x256xbf16, #tpu.memory_space<vmem>>, vector<64x256xbf16>
    %cst = arith.constant dense<0.000000e+00> : vector<48x256xf32>
    %5 = tpu.matmul %3, %4, %cst {dimension_numbers = #tpu.dot_dimension_numbers<[1], [0], [0], [1], [0, 0, 1, 1], [], []>} : vector<48x64xbf16>, vector<64x256xbf16>, vector<48x256xf32> -> vector<48x256xf32>
    %c0_4 = arith.constant 0 : index
    %c0_5 = arith.constant 0 : index
    %6 = vector.load %arg9[%c0_4, %c0_5] : memref<1x256xf32, #tpu.memory_space<vmem>>, vector<1x256xf32>
    %7 = vector.broadcast %6 : vector<1x256xf32> to vector<48x256xf32>
    %8 = arith.addf %5, %7 : vector<48x256xf32>
    %cst_6 = arith.constant 1.702000e+00 : f32
    %9 = vector.broadcast %cst_6 : f32 to vector<48x256xf32>
    %10 = arith.mulf %9, %8 : vector<48x256xf32>
    %11 = arith.negf %10 : vector<48x256xf32>
    %12 = math.exp %11 : vector<48x256xf32>
    %cst_7 = arith.constant 1.000000e+00 : f32
    %13 = vector.broadcast %cst_7 : f32 to vector<48x256xf32>
    %14 = arith.addf %13, %12 : vector<48x256xf32>
    %15 = arith.divf %13, %14 : vector<48x256xf32>
    %16 = arith.mulf %8, %15 : vector<48x256xf32>
    %c0_8 = arith.constant 0 : index
    %c0_9 = arith.constant 0 : index
    %17 = vector.load %arg14[%c0_8, %c0_9] : memref<48x64xf32, #tpu.memory_space<vmem>>, vector<48x64xf32>
    %18 = arith.truncf %16 : vector<48x256xf32> to vector<48x256xbf16>
    %c0_10 = arith.constant 0 : index
    %c0_11 = arith.constant 0 : index
    %19 = vector.load %arg10[%c0_10, %c0_11] : memref<256x64xbf16, #tpu.memory_space<vmem>>, vector<256x64xbf16>
    %cst_12 = arith.constant dense<0.000000e+00> : vector<48x64xf32>
    %20 = tpu.matmul %18, %19, %cst_12 {dimension_numbers = #tpu.dot_dimension_numbers<[1], [0], [0], [1], [0, 0, 1, 1], [], []>} : vector<48x256xbf16>, vector<256x64xbf16>, vector<48x64xf32> -> vector<48x64xf32>
    %21 = arith.addf %17, %20 : vector<48x64xf32>
    %c0_13 = arith.constant 0 : index
    %c0_14 = arith.constant 0 : index
    %22 = vector.load %arg14[%c0_13, %c0_14] : memref<48x64xf32, #tpu.memory_space<vmem>>, vector<48x64xf32>
    tpu.vector_store %arg14[%c0_13, %c0_14], %21 {strides = array<i32>} : memref<48x64xf32, #tpu.memory_space<vmem>>, vector<48x64xf32>,
    %c0_i32_15 = arith.constant 0 : i32
    %23 = arith.cmpi eq, %arg1, %c0_i32_15 : i32
    %24 = arith.extui %23 : i1 to i32
    %c0_i32_16 = arith.constant 0 : i32
    %25 = arith.cmpi ne, %24, %c0_i32_16 : i32
    scf.if %25 {
      %c0_17 = arith.constant 0 : index
      %c0_18 = arith.constant 0 : index
      %26 = vector.load %arg14[%c0_17, %c0_18] : memref<48x64xf32, #tpu.memory_space<vmem>>, vector<48x64xf32>
      %27 = arith.truncf %26 : vector<48x64xf32> to vector<48x64xbf16>
      %c0_19 = arith.constant 0 : index
      %c0_20 = arith.constant 0 : index
      %28 = vector.load %arg12[%c0_19, %c0_20] : memref<48x64xbf16, #tpu.memory_space<vmem>>, vector<48x64xbf16>
      tpu.vector_store %arg12[%c0_19, %c0_20], %27 {strides = array<i32>} : memref<48x64xbf16, #tpu.memory_space<vmem>>, vector<48x64xbf16>,
    } else {
    }
    return
  }
  func.func @transform_0(%arg0: i32, %arg1: i32) -> (i32, i32) {
    %c0_i32 = arith.constant 0 : i32
    %c0_i32_0 = arith.constant 0 : i32
    return %arg0, %c0_i32 : i32, i32
  }
  func.func @transform_1(%arg0: i32, %arg1: i32) -> (i32, i32) {
    %c0_i32 = arith.constant 0 : i32
    %c0_i32_0 = arith.constant 0 : i32
    return %arg0, %c0_i32 : i32, i32
  }
  func.func @transform_2(%arg0: i32, %arg1: i32) -> (i32, i32) {
    %c0_i32 = arith.constant 0 : i32
    %c0_i32_0 = arith.constant 0 : i32
    %c0_i32_1 = arith.constant 0 : i32
    return %c0_i32, %c0_i32_0 : i32, i32
  }
  func.func @transform_3(%arg0: i32, %arg1: i32) -> (i32, i32) {
    %c0_i32 = arith.constant 0 : i32
    %c0_i32_0 = arith.constant 0 : i32
    %c0_i32_1 = arith.constant 0 : i32
    return %c0_i32, %c0_i32_0 : i32, i32
  }
  func.func @transform_4(%arg0: i32, %arg1: i32) -> (i32, i32) {
    %c0_i32 = arith.constant 0 : i32
    %c0_i32_0 = arith.constant 0 : i32
    %c0_i32_1 = arith.constant 0 : i32
    return %c0_i32, %c0_i32_0 : i32, i32
  }
  func.func @transform_5(%arg0: i32, %arg1: i32) -> (i32, i32) {
    %c0_i32 = arith.constant 0 : i32
    %c0_i32_0 = arith.constant 0 : i32
    %c0_i32_1 = arith.constant 0 : i32
    return %c0_i32, %c0_i32_0 : i32, i32
  }
  func.func @transform_6(%arg0: i32, %arg1: i32) -> (i32, i32) {
    %c0_i32 = arith.constant 0 : i32
    %c0_i32_0 = arith.constant 0 : i32
    return %c0_i32, %arg1 : i32, i32
  }
  func.func @transform_7(%arg0: i32, %arg1: i32) -> (i32, i32) {
    %c0_i32 = arith.constant 0 : i32
    %c0_i32_0 = arith.constant 0 : i32
    return %c0_i32, %arg1 : i32, i32
  }
  func.func @transform_8(%arg0: i32, %arg1: i32) -> (i32, i32) {
    %c0_i32 = arith.constant 0 : i32
    %c0_i32_0 = arith.constant 0 : i32
    return %arg1, %c0_i32 : i32, i32
  }
  func.func @transform_9(%arg0: i32, %arg1: i32) -> (i32, i32) {
    %c0_i32 = arith.constant 0 : i32
    %c0_i32_0 = arith.constant 0 : i32
    %c0_i32_1 = arith.constant 0 : i32
    return %c0_i32, %c0_i32_0 : i32, i32
  }
  func.func @transform_10(%arg0: i32, %arg1: i32) -> (i32, i32) {
    %c0_i32 = arith.constant 0 : i32
    %c0_i32_0 = arith.constant 0 : i32
    return %arg0, %c0_i32 : i32, i32
  }
}

module attributes {stable_mosaic.version = 11 : i64} {
  func.func @_head_logits_kernel(%arg0: i32, %arg1: memref<2x64xbf16, #tpu.memory_space<vmem>>, %arg2: memref<1x64xf32, #tpu.memory_space<vmem>>, %arg3: memref<1x64xf32, #tpu.memory_space<vmem>>, %arg4: memref<64x32xbf16, #tpu.memory_space<vmem>>, %arg5: memref<32x128xf32, #tpu.memory_space<vmem>>, %arg6: memref<2x128xf32, #tpu.memory_space<vmem>>) attributes {dimension_semantics = [#tpu.dimension_semantics<arbitrary>], iteration_bounds = array<i64: 1>, scalar_prefetch = 0 : i64, scratch_operands = 0 : i64, tpu.core_type = #tpu.core_type<tc>, window_params = [{pipeline_mode = #tpu.pipeline_mode<synchronous>, transform_indices = @transform_0, window_bounds = array<i64: 2, 64>}, {pipeline_mode = #tpu.pipeline_mode<synchronous>, transform_indices = @transform_1, window_bounds = array<i64: 1, 64>}, {pipeline_mode = #tpu.pipeline_mode<synchronous>, transform_indices = @transform_2, window_bounds = array<i64: 1, 64>}, {pipeline_mode = #tpu.pipeline_mode<synchronous>, transform_indices = @transform_3, window_bounds = array<i64: 64, 32>}, {pipeline_mode = #tpu.pipeline_mode<synchronous>, transform_indices = @transform_4, window_bounds = array<i64: 32, 128>}, {pipeline_mode = #tpu.pipeline_mode<synchronous>, transform_indices = @transform_5, window_bounds = array<i64: 2, 128>}]} {
    %c0 = arith.constant 0 : index
    %c0_0 = arith.constant 0 : index
    %0 = vector.load %arg1[%c0, %c0_0] : memref<2x64xbf16, #tpu.memory_space<vmem>>, vector<2x64xbf16>
    %1 = arith.extf %0 : vector<2x64xbf16> to vector<2x64xf32>
    %c0_1 = arith.constant 0 : index
    %c0_2 = arith.constant 0 : index
    %2 = vector.load %arg2[%c0_1, %c0_2] : memref<1x64xf32, #tpu.memory_space<vmem>>, vector<1x64xf32>
    %c0_3 = arith.constant 0 : index
    %c0_4 = arith.constant 0 : index
    %3 = vector.load %arg3[%c0_3, %c0_4] : memref<1x64xf32, #tpu.memory_space<vmem>>, vector<1x64xf32>
    %cst = arith.constant dense<0.000000e+00> : vector<2xf32>
    %4 = vector.multi_reduction <add>, %1, %cst [1] : vector<2x64xf32> to vector<2xf32>
    %5 = vector.shape_cast %4 : vector<2xf32> to vector<2x1xf32>
    %cst_5 = arith.constant 6.400000e+01 : f32
    %6 = vector.broadcast %cst_5 : f32 to vector<2x1xf32>
    %7 = arith.divf %5, %6 : vector<2x1xf32>
    %8 = vector.broadcast %7 : vector<2x1xf32> to vector<2x64xf32>
    %9 = arith.subf %1, %8 : vector<2x64xf32>
    %10 = arith.mulf %9, %9 : vector<2x64xf32>
    %cst_6 = arith.constant dense<0.000000e+00> : vector<2xf32>
    %11 = vector.multi_reduction <add>, %10, %cst_6 [1] : vector<2x64xf32> to vector<2xf32>
    %12 = vector.shape_cast %11 : vector<2xf32> to vector<2x1xf32>
    %cst_7 = arith.constant 6.400000e+01 : f32
    %13 = vector.broadcast %cst_7 : f32 to vector<2x1xf32>
    %14 = arith.divf %12, %13 : vector<2x1xf32>
    %15 = vector.broadcast %7 : vector<2x1xf32> to vector<2x64xf32>
    %16 = arith.subf %1, %15 : vector<2x64xf32>
    %cst_8 = arith.constant 9.99999974E-6 : f32
    %17 = vector.broadcast %cst_8 : f32 to vector<2x1xf32>
    %18 = arith.addf %14, %17 : vector<2x1xf32>
    %19 = math.rsqrt %18 : vector<2x1xf32>
    %20 = vector.broadcast %19 : vector<2x1xf32> to vector<2x64xf32>
    %21 = arith.mulf %16, %20 : vector<2x64xf32>
    %22 = vector.broadcast %2 : vector<1x64xf32> to vector<2x64xf32>
    %23 = arith.mulf %21, %22 : vector<2x64xf32>
    %24 = vector.broadcast %3 : vector<1x64xf32> to vector<2x64xf32>
    %25 = arith.addf %23, %24 : vector<2x64xf32>
    %26 = arith.truncf %25 : vector<2x64xf32> to vector<2x64xbf16>
    %c0_9 = arith.constant 0 : index
    %c0_10 = arith.constant 0 : index
    %27 = vector.load %arg4[%c0_9, %c0_10] : memref<64x32xbf16, #tpu.memory_space<vmem>>, vector<64x32xbf16>
    %cst_11 = arith.constant dense<0.000000e+00> : vector<2x32xf32>
    %28 = tpu.matmul %26, %27, %cst_11 {dimension_numbers = #tpu.dot_dimension_numbers<[1], [0], [0], [1], [0, 0, 1, 1], [], []>} : vector<2x64xbf16>, vector<64x32xbf16>, vector<2x32xf32> -> vector<2x32xf32>
    %29 = arith.mulf %28, %28 : vector<2x32xf32>
    %cst_12 = arith.constant dense<0.000000e+00> : vector<2xf32>
    %30 = vector.multi_reduction <add>, %29, %cst_12 [1] : vector<2x32xf32> to vector<2xf32>
    %31 = vector.shape_cast %30 : vector<2xf32> to vector<2x1xf32>
    %cst_13 = arith.constant 1.000000e-24 : f32
    %32 = vector.broadcast %cst_13 : f32 to vector<2x1xf32>
    %33 = arith.maximumf %31, %32 : vector<2x1xf32>
    %34 = math.rsqrt %33 : vector<2x1xf32>
    %35 = vector.broadcast %34 : vector<2x1xf32> to vector<2x32xf32>
    %36 = arith.mulf %28, %35 : vector<2x32xf32>
    %c0_14 = arith.constant 0 : index
    %c0_15 = arith.constant 0 : index
    %37 = vector.load %arg5[%c0_14, %c0_15] : memref<32x128xf32, #tpu.memory_space<vmem>>, vector<32x128xf32>
    %cst_16 = arith.constant dense<0.000000e+00> : vector<2x128xf32>
    %38 = tpu.matmul %36, %37, %cst_16 {dimension_numbers = #tpu.dot_dimension_numbers<[1], [0], [0], [1], [0, 0, 1, 1], [], []>} : vector<2x32xf32>, vector<32x128xf32>, vector<2x128xf32> -> vector<2x128xf32>
    %c0_17 = arith.constant 0 : index
    %c0_18 = arith.constant 0 : index
    %39 = vector.load %arg6[%c0_17, %c0_18] : memref<2x128xf32, #tpu.memory_space<vmem>>, vector<2x128xf32>
    tpu.vector_store %arg6[%c0_17, %c0_18], %38 {strides = array<i32>} : memref<2x128xf32, #tpu.memory_space<vmem>>, vector<2x128xf32>,
    return
  }
  func.func @transform_0(%arg0: i32) -> (i32, i32) {
    %c0_i32 = arith.constant 0 : i32
    %c0_i32_0 = arith.constant 0 : i32
    %c0_i32_1 = arith.constant 0 : i32
    return %c0_i32, %c0_i32_0 : i32, i32
  }
  func.func @transform_1(%arg0: i32) -> (i32, i32) {
    %c0_i32 = arith.constant 0 : i32
    %c0_i32_0 = arith.constant 0 : i32
    %c0_i32_1 = arith.constant 0 : i32
    return %c0_i32, %c0_i32_0 : i32, i32
  }
  func.func @transform_2(%arg0: i32) -> (i32, i32) {
    %c0_i32 = arith.constant 0 : i32
    %c0_i32_0 = arith.constant 0 : i32
    %c0_i32_1 = arith.constant 0 : i32
    return %c0_i32, %c0_i32_0 : i32, i32
  }
  func.func @transform_3(%arg0: i32) -> (i32, i32) {
    %c0_i32 = arith.constant 0 : i32
    %c0_i32_0 = arith.constant 0 : i32
    %c0_i32_1 = arith.constant 0 : i32
    return %c0_i32, %c0_i32_0 : i32, i32
  }
  func.func @transform_4(%arg0: i32) -> (i32, i32) {
    %c0_i32 = arith.constant 0 : i32
    %c0_i32_0 = arith.constant 0 : i32
    %c0_i32_1 = arith.constant 0 : i32
    return %c0_i32, %c0_i32_0 : i32, i32
  }
  func.func @transform_5(%arg0: i32) -> (i32, i32) {
    %c0_i32 = arith.constant 0 : i32
    %c0_i32_0 = arith.constant 0 : i32
    %c0_i32_1 = arith.constant 0 : i32
    return %c0_i32, %c0_i32_0 : i32, i32
  }
}

</mosaic_0001>

<bundles_post_ra>
// kernel: _lambda_.9
= control target key start
LH: loop header
LB: loop body
LE: loop exit
PB: predicated region body
PF: predicated region fallthrough
CT: control target
= control target key end

     0   :  { %vm120_vm0 = vcmask 523264   ;;  %s336_s1 = inlined_call_operand.vmem [shape: bf16[192,64], index: 1, kind: input, shape index: {}]   ;;  %s337_s0 = inlined_call_operand.vmem [shape: f32[32,192], index: 0, kind: input, shape index: {}]   ;;  %s338_s2 = inlined_call_operand.vmem [shape: f32[32,64], index: 2, kind: output, shape index: {}]  }
   0x1   :  { %v230_v0 = vld [vmem:[%s336_s1 + $0x38] sm:$0xff]  ;;  %v229_v2 = vld [vmem:[%s336_s1 + $0x30] sm:$0xff]  ;;  %v228_v4 = vld [vmem:[%s336_s1 + $0x28] sm:$0xff] }
   0x2   :  { %v234_v1 = vld [vmem:[%s336_s1 + $0x58] sm:$0xff]  ;;  %127 = vmatpush.bf16.msra.mxu0 %v230_v0  ;;  %235 = vmatpush.bf16.msra.mxu2 %v230_v0  ;;  %v233_v3 = vld [vmem:[%s336_s1 + $0x50] sm:$0xff]  ;;  %v232_v5 = vld [vmem:[%s336_s1 + $0x48] sm:$0xff] }
   0x3   :  { %150 = vmatpush.bf16.msra.mxu1 %v234_v1  ;;  %v227_v6 = vld [vmem:[%s336_s1 + $0x20] sm:$0xff]  ;;  %v13_v8 = vld [vmem:[%s337_s0 + $0x8] sm:$0xff]  ;;  %v15_v9 = vld [vmem:[%s337_s0 + $0x18] sm:$0xff] }
   0x4   :  { %v231_v7 = vld [vmem:[%s336_s1 + $0x40] sm:$0xff]  ;;  %v21_v10 = vpack.c.bf16 %v15_v9, %v13_v8  ;;  %v226_v11 = vld [vmem:[%s336_s1 + $0x18] sm:$0xff]  ;;  %v225_v12 = vld [vmem:[%s336_s1 + $0x10] sm:$0xff] }
   0x5   :  { %v224_v13 = vld [vmem:[%s336_s1 + $0x8] sm:$0xff]  ;;  %v223_v14 = vld [vmem:[%s336_s1] sm:$0xff]  ;;  %v14_v16 = vld [vmem:[%s337_s0 + $0x10] sm:$0xff] }
   0x6   :  { %128 = vmatpush.bf16.msra.mxu0 %v229_v2  ;;  %236 = vmatpush.bf16.msra.mxu2 %v229_v2  ;;  %v12_v15 = vld [vmem:[%s337_s0] sm:$0xff]  ;;  %v18_v18 = vld [vmem:[%s337_s0 + $0x30] sm:$0xff]  ;;  %v17_v19 = vld [vmem:[%s337_s0 + $0x28] sm:$0xff] }
   0x7   :  { %151 = vmatpush.bf16.msra.mxu1 %v233_v3  ;;  %v16_v17 = vld [vmem:[%s337_s0 + $0x20] sm:$0xff]  ;;  %v19_v20 = vld [vmem:[%s337_s0 + $0x38] sm:$0xff]  ;;  %v20_v21 = vpack.c.bf16 %v14_v16, %v12_v15 }
   0x8   :  { %v22_v22 = vpack.c.bf16 %v18_v18, %v16_v17  ;;  %v23_v23 = vpack.c.bf16 %v19_v20, %v17_v19 }
   0xa   :  { %129 = vmatpush.bf16.msra.mxu0 %v228_v4  ;;  %237 = vmatpush.bf16.msra.mxu2 %v228_v4 }
   0xb   :  { %152 = vmatpush.bf16.msra.mxu1 %v232_v5 }
   0xe   :  { %130 = vmatpush.bf16.msra.mxu0 %v227_v6  ;;  %238 = vmatpush.bf16.msra.mxu2 %v227_v6 }
   0xf   :  { %153 = vmatpush.bf16.msra.mxu1 %v231_v7 }
  0x12   :  { %221 = vmatmul.msk.bf16.vlgmr.msra.gmra.mxu1 %vm120_vm0, %v21_v10  ;;  %131 = vmatpush.bf16.msra.mxu0 %v226_v11 }
  0x13   :  { %239 = vmatpush.bf16.msra.mxu2 %v226_v11 }
  0x16   :  { %132 = vmatpush.bf16.msra.mxu0 %v225_v12 }
  0x17   :  { %240 = vmatpush.bf16.msra.mxu2 %v225_v12 }
  0x1a   :  { %133 = vmatpush.bf16.msra.mxu0 %v224_v13 }
  0x1b   :  { %241 = vmatpush.bf16.msra.mxu2 %v224_v13 }
  0x1e   :  { %134 = vmatpush.bf16.msra.mxu0 %v223_v14 }
  0x1f   :  { %242 = vmatpush.bf16.msra.mxu2 %v223_v14 }
  0x21   :  { %135 = vmatmul.bf16.vlgmr.msra.gmra.mxu0 %v20_v21 }
  0x22   :  { %140 = vmatmul.bf16.vlgmr.msra.gmra.mxu2 %v22_v22  ;;  %222 = vmatmul.msk.bf16.gmra.mxu1 %vm120_vm0, %v23_v23 }
  0x8f   :  { %v155_v24 = vpop.f32.mrf.mxu1 }
  0x97   :  { %v157_v25 = vpop.f32.mrf.mxu1 }
  0x9e   :  { %v136_v26 = vpop.f32.mrf.mxu0 }
  0x9f   :  { %v156_v27 = vadd.f32 %v155_v24, %v136_v26  ;;  %v160_v28 = vpop.f32.mrf.mxu1 }
  0xa1   :  { %165 = vst.msk [vmem:[%s338_s2] sm:$0xff] %vm120_vm0, %v156_v27 }
  0xa5   :  { %v141_v29 = vpop.f32.mrf.mxu2 }
  0xa6   :  { %v161_v30 = vadd.f32 %v160_v28, %v141_v29  ;;  %v138_v31 = vpop.f32.mrf.mxu0 }
  0xa7   :  { %v158_v32 = vadd.f32 %v157_v25, %v138_v31  ;;  %v162_v33 = vpop.f32.mrf.mxu1 }
  0xa8   :  { %167 = vst.msk [vmem:[%s338_s2 + $0x10] sm:$0xff] %vm120_vm0, %v161_v30 }
  0xa9   :  { %166 = vst.msk [vmem:[%s338_s2 + $0x8] sm:$0xff] %vm120_vm0, %v158_v32 }
  0xad   :  { %v143_v34 = vpop.f32.mrf.mxu2 }
  0xae   :  { %v163_v35 = vadd.f32 %v162_v33, %v143_v34 }
  0xb0   :  { %168 = vst.msk [vmem:[%s338_s2 + $0x18] sm:$0xff] %vm120_vm0, %v163_v35 }

// kernel: _lambda_.10
= control target key start
LH: loop header
LB: loop body
LE: loop exit
PB: predicated region body
PF: predicated region fallthrough
CT: control target
= control target key end

     0   :  { %vm22_vm0 = vcmask 523264   ;;  %v214_v12 = vmov 64.0   ;;  %vm186_vm8 = vcmask 519168   ;;  %s373_s0 = inlined_call_operand.vmem [shape: f32[48,64], index: 0, kind: input, shape index: {}]   ;;  %s374_s1 = inlined_call_operand.vmem [shape: f32[1,64], index: 1, kind: input, shape index: {}]   ;;  %s375_s2 = inlined_call_operand.vmem [shape: f32[1,64], index: 2, kind: input, shape index: {}]   ;;  %s376_s3 = inlined_call_operand.vmem [shape: bf16[48,64], index: 3, kind: output, shape index: {}]  }
   0x1   :  { %v18_v0 = vld [vmem:[%s373_s0 + $0x20] sm:$0xff]  ;;  %v16_v1 = vld [vmem:[%s373_s0 + $0x10] sm:$0xff]  ;;  %v19_v6 = vld [vmem:[%s373_s0 + $0x28] sm:$0xff]  ;;  %200 = vrcp.f32 %v214_v12 }
   0x2   :  { %v14_v2 = vld [vmem:[%s373_s0] sm:$0xff]  ;;  %v35_v3 = vsel %vm22_vm0, %v18_v0, 0.0  ;;  %v29_v4 = vsel %vm22_vm0, %v16_v1, 0.0  ;;  %v17_v7 = vld [vmem:[%s373_s0 + $0x18] sm:$0xff]  ;;  %v15_v8 = vld [vmem:[%s373_s0 + $0x8] sm:$0xff]  ;;  %v38_v9 = vsel %vm22_vm0, %v19_v6, 0.0 }
   0x3   :  { %v23_v5 = vsel %vm22_vm0, %v14_v2, 0.0  ;;  %36 = vadd.xlane.f32.xlu2 %v35_v3  ;;  %30 = vadd.xlane.f32.xlu1 %v29_v4  ;;  %v32_v10 = vsel %vm22_vm0, %v17_v7, 0.0  ;;  %v26_v11 = vsel %vm22_vm0, %v15_v8, 0.0 }
   0x4   :  { %24 = vadd.xlane.f32.xlu0 %v23_v5 }
   0x7   :  { %v201_v13 = vpop.eup %200 }
   0x8   :  { %v42_v14 = vmul.f32 64.0, %v201_v13  ;;  %vm46_vm1 = vweird.f32 %v201_v13 }
   0xa   :  { %v43_v15 = vsub.f32 1.0, %v42_v14 }
   0xb   :  { %39 = vadd.xlane.f32.xlu2 %v38_v9  ;;  %33 = vadd.xlane.f32.xlu1 %v32_v10 }
   0xc   :  { %27 = vadd.xlane.f32.xlu0 %v26_v11  ;;  %v44_v16 = vmul.f32 %v201_v13, %v43_v15 }
   0xe   :  { %v45_v17 = vadd.f32 %v201_v13, %v44_v16 }
  0x10   :  { %v259_v18 = vsel %vm46_vm1, %v201_v13, %v45_v17 }
  0x76   :  { %v37_v19 = vpop.xlane.xlu2 %36  ;;  %v31_v20 = vpop.xlane.xlu1 %30 }
  0x77   :  { %v50_v21 = vmul.f32 %v259_v18, %v31_v20  ;;  %v25_v22 = vpop.xlane.xlu0 %24  ;;  %v52_v38 = vmul.f32 %v259_v18, %v37_v19  ;;  %v314_v19 = vld [vmem:[%s374_s1] ss:$0 sm:$0xff] }
  0x78   :  { %v48_v23 = vmul.f32 %v259_v18, %v25_v22 }
  0x79   :  { %v263_v24 = vsub.f32 %v16_v1, %v50_v21  ;;  %v291_v45 = vsub.f32 %v18_v0, %v52_v38 }
  0x7a   :  { %v265_v25 = vsub.f32 %v14_v2, %v48_v23 }
  0x7b   :  { %v62_v26 = vmul.f32 %v263_v24, %v263_v24  ;;  %v64_v47 = vmul.f32 %v291_v45, %v291_v45 }
  0x7c   :  { %v60_v27 = vmul.f32 %v265_v25, %v265_v25 }
  0x7d   :  { %v72_v28 = vsel %vm22_vm0, %v62_v26, 0.0  ;;  %v78_v48 = vsel %vm22_vm0, %v64_v47, 0.0  ;;  %v321_v26 = vld [vmem:[%s375_s2] ss:$0 sm:$0xff] }
  0x7e   :  { %v40_v29 = vpop.xlane.xlu2 %39  ;;  %73 = vadd.xlane.f32.xlu2 %v72_v28  ;;  %v34_v30 = vpop.xlane.xlu1 %33  ;;  %v66_v31 = vsel %vm22_vm0, %v60_v27, 0.0 }
  0x7f   :  { %v53_v32 = vmul.f32 %v259_v18, %v40_v29  ;;  %v51_v33 = vmul.f32 %v259_v18, %v34_v30  ;;  %67 = vadd.xlane.f32.xlu0 %v66_v31  ;;  %v28_v34 = vpop.xlane.xlu0 %27 }
  0x80   :  { %v49_v35 = vmul.f32 %v259_v18, %v28_v34 }
  0x81   :  { %v276_v36 = vsub.f32 %v19_v6, %v53_v32  ;;  %v278_v37 = vsub.f32 %v17_v7, %v51_v33 }
  0x82   :  { %v281_v39 = vsub.f32 %v15_v8, %v49_v35 }
  0x83   :  { %v65_v40 = vmul.f32 %v276_v36, %v276_v36  ;;  %v63_v41 = vmul.f32 %v278_v37, %v278_v37 }
  0x84   :  { %v61_v42 = vmul.f32 %v281_v39, %v281_v39 }
  0x85   :  { %v81_v43 = vsel %vm22_vm0, %v65_v40, 0.0  ;;  %v75_v44 = vsel %vm22_vm0, %v63_v41, 0.0 }
  0x86   :  { %82 = vadd.xlane.f32.xlu2 %v81_v43  ;;  %v69_v46 = vsel %vm22_vm0, %v61_v42, 0.0 }
  0x87   :  { %76 = vadd.xlane.f32.xlu0 %v75_v44  ;;  %70 = vadd.xlane.f32.xlu1 %v69_v46 }
  0x8f   :  { %79 = vadd.xlane.f32.xlu1 %v78_v48 }
  0xf1   :  { %v74_v49 = vpop.xlane.xlu2 %73 }
  0xf2   :  { %v86_v50 = vmul.f32 %v74_v49, %v259_v18  ;;  %v68_v51 = vpop.xlane.xlu0 %67 }
  0xf3   :  { %v84_v52 = vmul.f32 %v68_v51, %v259_v18 }
  0xf4   :  { %v92_v53 = vadd.f32 1e-05, %v86_v50 }
  0xf5   :  { %v90_v54 = vadd.f32 1e-05, %v84_v52 }
  0xf6   :  { %202 = vrsqrt.f32 %v92_v53  ;;  %vm122_vm2 = vweird.f32 %v92_v53 }
  0xf7   :  { %204 = vrsqrt.f32 %v90_v54  ;;  %vm102_vm6 = vweird.f32 %v90_v54 }
  0xf9   :  { %v83_v55 = vpop.xlane.xlu2 %82 }
  0xfa   :  { %v89_v56 = vmul.f32 %v83_v55, %v259_v18  ;;  %v71_v57 = vpop.xlane.xlu1 %70  ;;  %v77_v58 = vpop.xlane.xlu0 %76 }
  0xfb   :  { %v85_v59 = vmul.f32 %v71_v57, %v259_v18  ;;  %v87_v60 = vmul.f32 %v77_v58, %v259_v18 }
  0xfc   :  { %v203_v61 = vpop.eup %202  ;;  %v95_v62 = vadd.f32 1e-05, %v89_v56 }
  0xfd   :  { %v205_v63 = vpop.eup %204  ;;  %v117_v0 = vmul.f32 %v203_v61, %v92_v53  ;;  %v302_v1 = vadd.f32 1e-05, %v85_v59  ;;  %v304_v2 = vadd.f32 1e-05, %v87_v60  ;;  %vm123_vm3 = vweird.f32 %v203_v61 }
  0xfe   :  { %v97_v3 = vmul.f32 %v205_v63, %v90_v54  ;;  %206 = vrsqrt.f32 %v95_v62  ;;  %vm103_vm4 = vweird.f32 %v205_v63  ;;  %vm124_vm5 = vmor %vm122_vm2, %vm123_vm3  ;;  %vm152_vm9 = vweird.f32 %v95_v62 }
  0xff   :  { %v118_v4 = vmul.f32 %v203_v61, %v117_v0  ;;  %208 = vrsqrt.f32 %v302_v1  ;;  %vm104_vm7 = vmor %vm102_vm6, %vm103_vm4  ;;  %vm132_vm12 = vweird.f32 %v304_v2  ;;  %vm112_vm15 = vweird.f32 %v302_v1 }
 0x100   :  { %v98_v5 = vmul.f32 %v205_v63, %v97_v3  ;;  %210 = vrsqrt.f32 %v304_v2 }
 0x101   :  { %v119_v6 = vmul.f32 0.5, %v118_v4 }
 0x102   :  { %v99_v7 = vmul.f32 0.5, %v98_v5  ;;  %v80_v8 = vpop.xlane.xlu1 %79 }
 0x103   :  { %v120_v9 = vsub.f32 1.5, %v119_v6  ;;  %v88_v10 = vmul.f32 %v80_v8, %v259_v18 }
 0x104   :  { %v207_v11 = vpop.eup %206  ;;  %v100_v12 = vsub.f32 1.5, %v99_v7 }
 0x105   :  { %v209_v13 = vpop.eup %208  ;;  %v121_v14 = vmul.f32 %v203_v61, %v120_v9  ;;  %v147_v15 = vmul.f32 %v207_v11, %v95_v62  ;;  %v309_v16 = vadd.f32 1e-05, %v88_v10  ;;  %vm153_vm10 = vweird.f32 %v207_v11 }
 0x106   :  { %v211_v17 = vpop.eup %210  ;;  %v101_v20 = vmul.f32 %v205_v63, %v100_v12  ;;  %v107_v21 = vmul.f32 %v209_v13, %v302_v1  ;;  %vm113_vm11 = vweird.f32 %v209_v13  ;;  %vm154_vm14 = vmor %vm152_vm9, %vm153_vm10 }
 0x107   :  { %v125_v18 = vsel %vm124_vm5, %v203_v61, %v121_v14  ;;  %v148_v22 = vmul.f32 %v207_v11, %v147_v15  ;;  %v127_v23 = vmul.f32 %v211_v17, %v304_v2  ;;  %212 = vrsqrt.f32 %v309_v16  ;;  %vm114_vm0 = vmor %vm112_vm15, %vm113_vm11 }
 0x108   :  { %v158_v27 = vmul.f32 %v125_v18, %v263_v24  ;;  %v105_v28 = vsel %vm104_vm7, %v205_v63, %v101_v20  ;;  %v108_v29 = vmul.f32 %v209_v13, %v107_v21  ;;  %vm133_vm13 = vweird.f32 %v211_v17 }
 0x109   :  { %v156_v30 = vmul.f32 %v105_v28, %v265_v25  ;;  %v149_v31 = vmul.f32 0.5, %v148_v22  ;;  %v128_v32 = vmul.f32 %v211_v17, %v127_v23  ;;  %vm134_vm1 = vmor %vm132_vm12, %vm133_vm13  ;;  %vm142_vm3 = vweird.f32 %v309_v16 }
 0x10a   :  { %v167_v33 = vmul.f32 %v314_v19, %v158_v27  ;;  %v109_v34 = vmul.f32 0.5, %v108_v29 }
 0x10b   :  { %v165_v35 = vmul.f32 %v314_v19, %v156_v30  ;;  %v150_v38 = vsub.f32 1.5, %v149_v31  ;;  %v129_v40 = vmul.f32 0.5, %v128_v32 }
 0x10c   :  { %v176_v24 = vadd.f32 %v321_v26, %v167_v33  ;;  %v110_v41 = vsub.f32 1.5, %v109_v34 }
 0x10d   :  { %v174_v25 = vadd.f32 %v321_v26, %v165_v35  ;;  %v151_v42 = vmul.f32 %v207_v11, %v150_v38  ;;  %v130_v43 = vsub.f32 1.5, %v129_v40  ;;  %v213_v44 = vpop.eup %212 }
 0x10e   :  { %v182_v46 = vpack.c.bf16 %v176_v24, %v176_v24  ;;  %v111_v47 = vmul.f32 %v209_v13, %v110_v41  ;;  %v137_v51 = vmul.f32 %v213_v44, %v309_v16  ;;  %vm143_vm2 = vweird.f32 %v213_v44 }
 0x10f   :  { %v180_v48 = vpack.c.bf16 %v174_v25, %v174_v25  ;;  %v155_v49 = vsel %vm154_vm14, %v207_v11, %v151_v42  ;;  %v131_v50 = vmul.f32 %v211_v17, %v130_v43  ;;  %vm144_vm4 = vmor %vm142_vm3, %vm143_vm2 }
 0x110   :  { %189 = vst.msk [vmem:[%s376_s3 + $0x8] sm:$0xf] %vm186_vm8, %v182_v46  ;;  %v161_v52 = vmul.f32 %v155_v49, %v276_v36  ;;  %v115_v53 = vsel %vm114_vm0, %v209_v13, %v111_v47  ;;  %v138_v56 = vmul.f32 %v213_v44, %v137_v51 }
 0x111   :  { %187 = vst.msk [vmem:[%s376_s3] sm:$0xf] %vm186_vm8, %v180_v48  ;;  %v157_v54 = vmul.f32 %v115_v53, %v281_v39  ;;  %v135_v55 = vsel %vm134_vm1, %v211_v17, %v131_v50 }
 0x112   :  { %v170_v57 = vmul.f32 %v314_v19, %v161_v52  ;;  %v159_v58 = vmul.f32 %v135_v55, %v278_v37  ;;  %v139_v36 = vmul.f32 0.5, %v138_v56 }
 0x113   :  { %v166_v59 = vmul.f32 %v314_v19, %v157_v54 }
 0x114   :  { %v179_v60 = vadd.f32 %v321_v26, %v170_v57  ;;  %v168_v61 = vmul.f32 %v314_v19, %v159_v58  ;;  %v140_v63 = vsub.f32 1.5, %v139_v36 }
 0x115   :  { %v175_v62 = vadd.f32 %v321_v26, %v166_v59 }
 0x116   :  { %v185_v0 = vpack.c.bf16 %v179_v60, %v179_v60  ;;  %v177_v39 = vadd.f32 %v321_v26, %v168_v61  ;;  %v141_v2 = vmul.f32 %v213_v44, %v140_v63 }
 0x117   :  { %v181_v1 = vpack.c.bf16 %v175_v62, %v175_v62 }
 0x118   :  { %192 = vst.msk [vmem:[%s376_s3 + $0x14] sm:$0xf] %vm186_vm8, %v185_v0  ;;  %v183_v37 = vpack.c.bf16 %v177_v39, %v177_v39  ;;  %v145_v3 = vsel %vm144_vm4, %v213_v44, %v141_v2 }
 0x119   :  { %188 = vst.msk [vmem:[%s376_s3 + $0x4] sm:$0xf] %vm186_vm8, %v181_v1  ;;  %v160_v4 = vmul.f32 %v145_v3, %v291_v45 }
 0x11a   :  { %190 = vst.msk [vmem:[%s376_s3 + $0xc] sm:$0xf] %vm186_vm8, %v183_v37 }
 0x11b   :  { %v169_v5 = vmul.f32 %v314_v19, %v160_v4 }
 0x11d   :  { %v178_v6 = vadd.f32 %v321_v26, %v169_v5 }
 0x11f   :  { %v184_v7 = vpack.c.bf16 %v178_v6, %v178_v6 }
 0x121   :  { %191 = vst.msk [vmem:[%s376_s3 + $0x10] sm:$0xf] %vm186_vm8, %v184_v7 }

// kernel: _lambda_.11
= control target key start
LH: loop header
LB: loop body
LE: loop exit
PB: predicated region body
PF: predicated region fallthrough
CT: control target
= control target key end

     0   :  { %vm50_vm0 = vcmask 523264   ;;  %v556_v15 = vmov 64.0   ;;  %s848_s0 = inlined_call_operand.vmem [shape: bf16[48,64], index: 0, kind: input, shape index: {}]   ;;  %s849_s1 = inlined_call_operand.vmem [shape: f32[1,64], index: 1, kind: input, shape index: {}]   ;;  %s850_s2 = inlined_call_operand.vmem [shape: f32[1,64], index: 2, kind: input, shape index: {}, may-alias: {2,6,7,8}]   ;;  %s851_s6 = inlined_call_operand.vmem [shape: f32[1,64], index: 6, kind: input, shape index: {}, may-alias: {2,6,7,8}]   ;;  %s852_s3 = inlined_call_operand.vmem [shape: bf16[64,64], index: 3, kind: input, shape index: {}]   ;;  %s853_s4 = inlined_call_operand.vmem [shape: bf16[64,64], index: 4, kind: input, shape index: {}]   ;;  %s854_s5 = inlined_call_operand.vmem [shape: bf16[64,64], index: 5, kind: input, shape index: {}]   ;;  %s855_s7 = inlined_call_operand.vmem [shape: f32[1,64], index: 7, kind: input, shape index: {}, may-alias: {2,6,7,8}]   ;;  %s856_s8 = inlined_call_operand.vmem [shape: f32[1,64], index: 8, kind: input, shape index: {}, may-alias: {2,6,7,8}]   ;;  %s857_s9 = inlined_call_operand.vmem [shape: bf16[48,64], index: 9, kind: output, shape index: {0}]   ;;  %s858_s10 = inlined_call_operand.vmem [shape: bf16[48,64], index: 10, kind: output, shape index: {1}]   ;;  %s859_s11 = inlined_call_operand.vmem [shape: bf16[48,64], index: 11, kind: output, shape index: {2}]  }
   0x1   :  { %v531_v0 = vld [vmem:[%s848_s0 + $0x10] sm:$0xff]   ;;  %v530_v1 = vld [vmem:[%s848_s0 + $0x8] sm:$0xff]   ;;  %v519_v2 = vld [vmem:[%s848_s0] sm:$0xff]   ;;  %542 = vrcp.f32 %v556_v15 }
   0x2   :  { %v528_v3 = vunpack.c.l.bf16 %v531_v0  ;;  %v524_v4 = vunpack.c.l.bf16 %v530_v1  ;;  %v520_v5 = vunpack.c.l.bf16 %v519_v2  ;;  %v529_v9 = vunpack.c.h.bf16 %v531_v0  ;;  %v509_v52 = vld [vmem:[%s852_s3 + $0x18] sm:$0xff]  ;;  %v508_v55 = vld [vmem:[%s852_s3 + $0x10] sm:$0xff]  ;;  %v507_v59 = vld [vmem:[%s852_s3 + $0x8] sm:$0xff] }
   0x3   :  { %v525_v10 = vunpack.c.h.bf16 %v530_v1  ;;  %v521_v11 = vunpack.c.h.bf16 %v519_v2  ;;  %v513_v53 = vld [vmem:[%s853_s4 + $0x18] sm:$0xff]  ;;  %260 = vmatpush.bf16.msra.mxu0 %v509_v52  ;;  %532 = vmatpush.bf16.msra.mxu3 %v509_v52  ;;  %v512_v56 = vld [vmem:[%s853_s4 + $0x10] sm:$0xff]  ;;  %v511_v60 = vld [vmem:[%s853_s4 + $0x8] sm:$0xff] }
   0x4   :  { %v63_v6 = vsel %vm50_vm0, %v528_v3, 0.0  ;;  %v57_v7 = vsel %vm50_vm0, %v524_v4, 0.0  ;;  %v51_v8 = vsel %vm50_vm0, %v520_v5, 0.0  ;;  %v66_v12 = vsel %vm50_vm0, %v529_v9, 0.0  ;;  %v517_v54 = vld [vmem:[%s854_s5 + $0x18] sm:$0xff]  ;;  %333 = vmatpush.bf16.msra.mxu1 %v513_v53  ;;  %v516_v57 = vld [vmem:[%s854_s5 + $0x10] sm:$0xff] }
   0x5   :  { %64 = vadd.xlane.f32.xlu2 %v63_v6  ;;  %58 = vadd.xlane.f32.xlu1 %v57_v7  ;;  %v60_v13 = vsel %vm50_vm0, %v525_v10, 0.0  ;;  %v54_v14 = vsel %vm50_vm0, %v521_v11, 0.0  ;;  %v515_v61 = vld [vmem:[%s854_s5 + $0x8] sm:$0xff]  ;;  %v537_v53 = vld [vmem:[%s849_s1] ss:$0 sm:$0xff] }
   0x6   :  { %52 = vadd.xlane.f32.xlu0 %v51_v8  ;;  %405 = vmatpush.bf16.msra.mxu2 %v517_v54 }
   0x7   :  { %v543_v16 = vpop.eup %542  ;;  %261 = vmatpush.bf16.msra.mxu0 %v508_v55  ;;  %533 = vmatpush.bf16.msra.mxu3 %v508_v55 }
   0x8   :  { %v70_v17 = vmul.f32 64.0, %v543_v16  ;;  %vm74_vm1 = vweird.f32 %v543_v16  ;;  %334 = vmatpush.bf16.msra.mxu1 %v512_v56 }
   0xa   :  { %v71_v18 = vsub.f32 1.0, %v70_v17  ;;  %406 = vmatpush.bf16.msra.mxu2 %v516_v57 }
   0xb   :  { %262 = vmatpush.bf16.msra.mxu0 %v507_v59  ;;  %534 = vmatpush.bf16.msra.mxu3 %v507_v59 }
   0xc   :  { %v72_v19 = vmul.f32 %v543_v16, %v71_v18  ;;  %335 = vmatpush.bf16.msra.mxu1 %v511_v60 }
   0xd   :  { %67 = vadd.xlane.f32.xlu2 %v66_v12  ;;  %61 = vadd.xlane.f32.xlu1 %v60_v13 }
   0xe   :  { %55 = vadd.xlane.f32.xlu0 %v54_v14  ;;  %v73_v20 = vadd.f32 %v543_v16, %v72_v19  ;;  %407 = vmatpush.bf16.msra.mxu2 %v515_v61 }
  0x10   :  { %v632_v21 = vsel %vm74_vm1, %v543_v16, %v73_v20 }
  0x78   :  { %v65_v22 = vpop.xlane.xlu2 %64  ;;  %v59_v23 = vpop.xlane.xlu1 %58 }
  0x79   :  { %v78_v24 = vmul.f32 %v632_v21, %v59_v23  ;;  %v53_v25 = vpop.xlane.xlu0 %52  ;;  %v80_v38 = vmul.f32 %v632_v21, %v65_v22 }
  0x7a   :  { %v76_v26 = vmul.f32 %v632_v21, %v53_v25 }
  0x7b   :  { %v636_v27 = vsub.f32 %v524_v4, %v78_v24  ;;  %v660_v45 = vsub.f32 %v528_v3, %v80_v38  ;;  %v506_v3 = vld [vmem:[%s852_s3] sm:$0xff] }
  0x7c   :  { %v638_v28 = vsub.f32 %v520_v5, %v76_v26  ;;  %v510_v4 = vld [vmem:[%s853_s4] sm:$0xff]  ;;  %263 = vmatpush.bf16.msra.mxu0 %v506_v3  ;;  %535 = vmatpush.bf16.msra.mxu3 %v506_v3 }
  0x7d   :  { %v90_v29 = vmul.f32 %v636_v27, %v636_v27  ;;  %v92_v50 = vmul.f32 %v660_v45, %v660_v45  ;;  %v514_v5 = vld [vmem:[%s854_s5] sm:$0xff]  ;;  %336 = vmatpush.bf16.msra.mxu1 %v510_v4 }
  0x7e   :  { %v88_v30 = vmul.f32 %v638_v28, %v638_v28  ;;  %408 = vmatpush.bf16.msra.mxu2 %v514_v5 }
  0x7f   :  { %v100_v31 = vsel %vm50_vm0, %v90_v29, 0.0  ;;  %v106_v51 = vsel %vm50_vm0, %v92_v50, 0.0 }
  0x80   :  { %v68_v32 = vpop.xlane.xlu2 %67  ;;  %101 = vadd.xlane.f32.xlu2 %v100_v31  ;;  %v62_v33 = vpop.xlane.xlu1 %61  ;;  %v94_v34 = vsel %vm50_vm0, %v88_v30, 0.0 }
  0x81   :  { %v81_v35 = vmul.f32 %v632_v21, %v68_v32  ;;  %v79_v36 = vmul.f32 %v632_v21, %v62_v33  ;;  %95 = vadd.xlane.f32.xlu0 %v94_v34  ;;  %v56_v37 = vpop.xlane.xlu0 %55 }
  0x82   :  { %v77_v39 = vmul.f32 %v632_v21, %v56_v37 }
  0x83   :  { %v650_v40 = vsub.f32 %v529_v9, %v81_v35  ;;  %v652_v41 = vsub.f32 %v525_v10, %v79_v36 }
  0x84   :  { %v654_v42 = vsub.f32 %v521_v11, %v77_v39 }
  0x85   :  { %v93_v43 = vmul.f32 %v650_v40, %v650_v40  ;;  %v91_v44 = vmul.f32 %v652_v41, %v652_v41 }
  0x86   :  { %v89_v46 = vmul.f32 %v654_v42, %v654_v42 }
  0x87   :  { %v109_v47 = vsel %vm50_vm0, %v93_v43, 0.0  ;;  %v103_v48 = vsel %vm50_vm0, %v91_v44, 0.0 }
  0x88   :  { %110 = vadd.xlane.f32.xlu2 %v109_v47  ;;  %v97_v49 = vsel %vm50_vm0, %v89_v46, 0.0 }
  0x89   :  { %104 = vadd.xlane.f32.xlu0 %v103_v48  ;;  %98 = vadd.xlane.f32.xlu1 %v97_v49 }
  0x91   :  { %107 = vadd.xlane.f32.xlu1 %v106_v51 }
  0xf3   :  { %v102_v58 = vpop.xlane.xlu2 %101 }
  0xf4   :  { %v114_v62 = vmul.f32 %v102_v58, %v632_v21  ;;  %v96_v63 = vpop.xlane.xlu0 %95 }
  0xf5   :  { %v112_v0 = vmul.f32 %v96_v63, %v632_v21 }
  0xf6   :  { %v120_v1 = vadd.f32 1e-05, %v114_v62 }
  0xf7   :  { %v118_v2 = vadd.f32 1e-05, %v112_v0  ;;  %v538_v0 = vld [vmem:[%s850_s2] ss:$0 sm:$0xff] }
  0xf8   :  { %544 = vrsqrt.f32 %v120_v1  ;;  %vm150_vm2 = vweird.f32 %v120_v1 }
  0xf9   :  { %546 = vrsqrt.f32 %v118_v2  ;;  %vm130_vm6 = vweird.f32 %v118_v2 }
  0xfb   :  { %v111_v6 = vpop.xlane.xlu2 %110 }
  0xfc   :  { %v117_v7 = vmul.f32 %v111_v6, %v632_v21  ;;  %v99_v8 = vpop.xlane.xlu1 %98  ;;  %v105_v9 = vpop.xlane.xlu0 %104 }
  0xfd   :  { %v113_v10 = vmul.f32 %v99_v8, %v632_v21  ;;  %v115_v11 = vmul.f32 %v105_v9, %v632_v21 }
  0xfe   :  { %v545_v12 = vpop.eup %544  ;;  %v711_v13 = vadd.f32 1e-05, %v117_v7 }
  0xff   :  { %v547_v14 = vpop.eup %546  ;;  %v145_v15 = vmul.f32 %v545_v12, %v120_v1  ;;  %v119_v16 = vadd.f32 1e-05, %v113_v10  ;;  %v121_v17 = vadd.f32 1e-05, %v115_v11  ;;  %vm151_vm3 = vweird.f32 %v545_v12 }
 0x100   :  { %v125_v18 = vmul.f32 %v547_v14, %v118_v2  ;;  %548 = vrsqrt.f32 %v711_v13  ;;  %vm131_vm4 = vweird.f32 %v547_v14  ;;  %vm719_vm5 = vmor %vm150_vm2, %vm151_vm3  ;;  %vm180_vm1 = vweird.f32 %v711_v13 }
 0x101   :  { %v146_v19 = vmul.f32 %v545_v12, %v145_v15  ;;  %550 = vrsqrt.f32 %v119_v16  ;;  %vm132_vm7 = vmor %vm130_vm6, %vm131_vm4  ;;  %vm160_vm8 = vweird.f32 %v121_v17  ;;  %vm140_vm11 = vweird.f32 %v119_v16 }
 0x102   :  { %v126_v20 = vmul.f32 %v547_v14, %v125_v18  ;;  %552 = vrsqrt.f32 %v121_v17 }
 0x103   :  { %v147_v22 = vmul.f32 0.5, %v146_v19 }
 0x104   :  { %v127_v23 = vmul.f32 0.5, %v126_v20  ;;  %v108_v24 = vpop.xlane.xlu1 %107 }
 0x105   :  { %v148_v25 = vsub.f32 1.5, %v147_v22  ;;  %v116_v26 = vmul.f32 %v108_v24, %v632_v21 }
 0x106   :  { %v715_v29 = vpop.eup %548  ;;  %v128_v30 = vsub.f32 1.5, %v127_v23 }
 0x107   :  { %v551_v31 = vpop.eup %550  ;;  %v122_v32 = vadd.f32 1e-05, %v116_v26  ;;  %v149_v36 = vmul.f32 %v545_v12, %v148_v25  ;;  %v175_v37 = vmul.f32 %v715_v29, %v711_v13  ;;  %vm181_vm2 = vweird.f32 %v715_v29 }
 0x108   :  { %v553_v33 = vpop.eup %552  ;;  %v129_v34 = vmul.f32 %v547_v14, %v128_v30  ;;  %v135_v35 = vmul.f32 %v551_v31, %v119_v16  ;;  %vm141_vm10 = vweird.f32 %v551_v31  ;;  %vm182_vm4 = vmor %vm180_vm1, %vm181_vm2 }
 0x109   :  { %v155_v38 = vmul.f32 %v553_v33, %v121_v17  ;;  %554 = vrsqrt.f32 %v122_v32  ;;  %v153_v47 = vsel %vm719_vm5, %v545_v12, %v149_v36  ;;  %v176_v48 = vmul.f32 %v715_v29, %v175_v37  ;;  %vm142_vm13 = vmor %vm140_vm11, %vm141_vm10 }
 0x10a   :  { %v136_v21 = vmul.f32 %v551_v31, %v135_v35  ;;  %v133_v44 = vsel %vm132_vm7, %v547_v14, %v129_v34  ;;  %vm161_vm9 = vweird.f32 %v553_v33  ;;  %v186_v55 = vmul.f32 %v153_v47, %v636_v27 }
 0x10b   :  { %v156_v43 = vmul.f32 %v553_v33, %v155_v38  ;;  %v184_v51 = vmul.f32 %v133_v44, %v638_v28  ;;  %vm162_vm12 = vmor %vm160_vm8, %vm161_vm9  ;;  %v177_v57 = vmul.f32 0.5, %v176_v48  ;;  %vm170_vm14 = vweird.f32 %v122_v32 }
 0x10c   :  { %v137_v46 = vmul.f32 0.5, %v136_v21  ;;  %v195_v27 = vmul.f32 %v537_v53, %v186_v55  ;;  %vm286_vm5 = vcmask 519168  }
 0x10d   :  { %v157_v49 = vmul.f32 0.5, %v156_v43  ;;  %v193_v63 = vmul.f32 %v537_v53, %v184_v51  ;;  %v178_v2 = vsub.f32 1.5, %v177_v57 }
 0x10e   :  { %v138_v50 = vsub.f32 1.5, %v137_v46  ;;  %v204_v8 = vadd.f32 %v538_v0, %v195_v27 }
 0x10f   :  { %v158_v52 = vsub.f32 1.5, %v157_v49  ;;  %v555_v54 = vpop.eup %554  ;;  %v202_v6 = vadd.f32 %v538_v0, %v193_v63  ;;  %v179_v10 = vmul.f32 %v715_v29, %v178_v2 }
 0x110   :  { %v139_v56 = vmul.f32 %v551_v31, %v138_v50  ;;  %v165_v59 = vmul.f32 %v555_v54, %v122_v32  ;;  %vm171_vm15 = vweird.f32 %v555_v54 }
 0x111   :  { %v159_v58 = vmul.f32 %v553_v33, %v158_v52  ;;  %vm172_vm3 = vmor %vm170_vm14, %vm171_vm15  ;;  %v183_v13 = vsel %vm182_vm4, %v715_v29, %v179_v10 }
 0x112   :  { %v143_v60 = vsel %vm142_vm13, %v551_v31, %v139_v56  ;;  %v166_v28 = vmul.f32 %v555_v54, %v165_v59  ;;  %v189_v16 = vmul.f32 %v183_v13, %v650_v40  ;;  %v757_v40 = vld [vmem:[%s855_s7] ss:$0 sm:$0xff] }
 0x113   :  { %v185_v61 = vmul.f32 %v143_v60, %v654_v42  ;;  %v163_v62 = vsel %vm162_vm12, %v553_v33, %v159_v58  ;;  %v763_v31 = vld [vmem:[%s856_s8] ss:$0 sm:$0xff] }
 0x114   :  { %v187_v1 = vmul.f32 %v163_v62, %v652_v41  ;;  %v167_v3 = vmul.f32 0.5, %v166_v28  ;;  %v198_v18 = vmul.f32 %v537_v53, %v189_v16 }
 0x115   :  { %v194_v4 = vmul.f32 %v537_v53, %v185_v61 }
 0x116   :  { %v196_v5 = vmul.f32 %v537_v53, %v187_v1  ;;  %v168_v42 = vsub.f32 1.5, %v167_v3  ;;  %v207_v20 = vadd.f32 %v538_v0, %v198_v18 }
 0x117   :  { %v203_v7 = vadd.f32 %v538_v0, %v194_v4 }
 0x118   :  { %v205_v9 = vadd.f32 %v538_v0, %v196_v5  ;;  %v169_v41 = vmul.f32 %v555_v54, %v168_v42 }
 0x119   :  { %v208_v11 = vpack.c.bf16 %v203_v7, %v202_v6 }
 0x11a   :  { %v209_v12 = vpack.c.bf16 %v205_v9, %v204_v8  ;;  %v173_v14 = vsel %vm172_vm3, %v555_v54, %v169_v41 }
 0x11b   :  { %465 = vmatmul.msk.bf16.vlgmr.msra.gmra.mxu0 %vm50_vm0, %v208_v11  ;;  %484 = vmatmul.msk.bf16.vlgmr.msra.gmra.mxu1 %vm50_vm0, %v208_v11  ;;  %v188_v15 = vmul.f32 %v173_v14, %v660_v45  ;;  %v539_v45 = vld [vmem:[%s851_s6] ss:$0 sm:$0xff] }
 0x11c   :  { %466 = vmatmul.msk.bf16.vlgmr.msra.gmra.mxu3 %vm50_vm0, %v209_v12  ;;  %503 = vmatmul.msk.bf16.vlgmr.msra.gmra.mxu2 %vm50_vm0, %v208_v11 }
 0x11d   :  { %v197_v17 = vmul.f32 %v537_v53, %v188_v15 }
 0x11f   :  { %v206_v19 = vadd.f32 %v538_v0, %v197_v17 }
 0x121   :  { %v210_v22 = vpack.c.bf16 %v207_v20, %v206_v19 }
 0x12b   :  { %485 = vmatmul.msk.bf16.gmra.mxu1 %vm50_vm0, %v209_v12 }
 0x12c   :  { %467 = vmatmul.msk.bf16.gmra.mxu3 %vm50_vm0, %v210_v22  ;;  %504 = vmatmul.msk.bf16.gmra.mxu2 %vm50_vm0, %v209_v12 }
 0x13b   :  { %486 = vmatmul.msk.bf16.gmra.mxu1 %vm50_vm0, %v210_v22 }
 0x13c   :  { %505 = vmatmul.msk.bf16.gmra.mxu2 %vm50_vm0, %v210_v22 }
 0x198   :  { %v265_v23 = vpop.f32.mrf.mxu0  ;;  %v338_v24 = vpop.f32.mrf.mxu1 }
 0x199   :  { %v266_v25 = vadd.f32 %v539_v45, %v265_v23  ;;  %v339_v26 = vadd.f32 %v757_v40, %v338_v24 }
 0x19b   :  { %v280_v29 = vpack.c.bf16 %v266_v25, %v266_v25  ;;  %v353_v30 = vpack.c.bf16 %v339_v26, %v339_v26 }
 0x19d   :  { %287 = vst.msk [vmem:[%s857_s9] sm:$0xf] %vm286_vm5, %v280_v29 }
 0x19e   :  { %359 = vst.msk [vmem:[%s858_s10] sm:$0xf] %vm286_vm5, %v353_v30 }
 0x19f   :  { %v270_v32 = vpop.f32.mrf.mxu3  ;;  %v410_v33 = vpop.f32.mrf.mxu2 }
 0x1a0   :  { %v271_v34 = vadd.f32 %v539_v45, %v270_v32  ;;  %v411_v35 = vadd.f32 %v763_v31, %v410_v33  ;;  %v267_v36 = vpop.f32.mrf.mxu0  ;;  %v340_v37 = vpop.f32.mrf.mxu1 }
 0x1a1   :  { %v268_v38 = vadd.f32 %v539_v45, %v267_v36  ;;  %v341_v39 = vadd.f32 %v757_v40, %v340_v37 }
 0x1a2   :  { %v282_v21 = vpack.c.bf16 %v271_v34, %v271_v34  ;;  %v425_v43 = vpack.c.bf16 %v411_v35, %v411_v35 }
 0x1a3   :  { %v281_v44 = vpack.c.bf16 %v268_v38, %v268_v38  ;;  %v354_v46 = vpack.c.bf16 %v341_v39, %v341_v39 }
 0x1a4   :  { %289 = vst.msk [vmem:[%s857_s9 + $0x8] sm:$0xf] %vm286_vm5, %v282_v21 }
 0x1a5   :  { %431 = vst.msk [vmem:[%s859_s11] sm:$0xf] %vm286_vm5, %v425_v43 }
 0x1a6   :  { %288 = vst.msk [vmem:[%s857_s9 + $0x4] sm:$0xf] %vm286_vm5, %v281_v44 }
 0x1a7   :  { %360 = vst.msk [vmem:[%s858_s10 + $0x4] sm:$0xf] %vm286_vm5, %v354_v46  ;;  %v272_v47 = vpop.f32.mrf.mxu3  ;;  %v412_v48 = vpop.f32.mrf.mxu2 }
 0x1a8   :  { %v273_v49 = vadd.f32 %v539_v45, %v272_v47  ;;  %v413_v50 = vadd.f32 %v763_v31, %v412_v48  ;;  %v343_v51 = vpop.f32.mrf.mxu1 }
 0x1a9   :  { %v344_v52 = vadd.f32 %v757_v40, %v343_v51 }
 0x1aa   :  { %v283_v53 = vpack.c.bf16 %v273_v49, %v273_v49  ;;  %v426_v54 = vpack.c.bf16 %v413_v50, %v413_v50 }
 0x1ab   :  { %v355_v55 = vpack.c.bf16 %v344_v52, %v344_v52 }
 0x1ac   :  { %290 = vst.msk [vmem:[%s857_s9 + $0xc] sm:$0xf] %vm286_vm5, %v283_v53 }
 0x1ad   :  { %432 = vst.msk [vmem:[%s859_s11 + $0x4] sm:$0xf] %vm286_vm5, %v426_v54 }
 0x1ae   :  { %361 = vst.msk [vmem:[%s858_s10 + $0x8] sm:$0xf] %vm286_vm5, %v355_v55 }
 0x1af   :  { %v275_v56 = vpop.f32.mrf.mxu3  ;;  %v415_v57 = vpop.f32.mrf.mxu2 }
 0x1b0   :  { %v276_v58 = vadd.f32 %v539_v45, %v275_v56  ;;  %v416_v59 = vadd.f32 %v763_v31, %v415_v57  ;;  %v345_v60 = vpop.f32.mrf.mxu1 }
 0x1b1   :  { %v346_v61 = vadd.f32 %v757_v40, %v345_v60 }
 0x1b2   :  { %v284_v62 = vpack.c.bf16 %v276_v58, %v276_v58  ;;  %v427_v28 = vpack.c.bf16 %v416_v59, %v416_v59 }
 0x1b3   :  { %v356_v63 = vpack.c.bf16 %v346_v61, %v346_v61 }
 0x1b4   :  { %291 = vst.msk [vmem:[%s857_s9 + $0x10] sm:$0xf] %vm286_vm5, %v284_v62 }
 0x1b5   :  { %433 = vst.msk [vmem:[%s859_s11 + $0x8] sm:$0xf] %vm286_vm5, %v427_v28 }
 0x1b6   :  { %362 = vst.msk [vmem:[%s858_s10 + $0xc] sm:$0xf] %vm286_vm5, %v356_v63 }
 0x1b7   :  { %v277_v0 = vpop.f32.mrf.mxu3  ;;  %v417_v1 = vpop.f32.mrf.mxu2 }
 0x1b8   :  { %v278_v27 = vadd.f32 %v539_v45, %v277_v0  ;;  %v418_v2 = vadd.f32 %v763_v31, %v417_v1  ;;  %v348_v3 = vpop.f32.mrf.mxu1 }
 0x1b9   :  { %v349_v4 = vadd.f32 %v757_v40, %v348_v3 }
 0x1ba   :  { %v285_v5 = vpack.c.bf16 %v278_v27, %v278_v27  ;;  %v428_v42 = vpack.c.bf16 %v418_v2, %v418_v2 }
 0x1bb   :  { %v357_v6 = vpack.c.bf16 %v349_v4, %v349_v4 }
 0x1bc   :  { %292 = vst.msk [vmem:[%s857_s9 + $0x14] sm:$0xf] %vm286_vm5, %v285_v5 }
 0x1bd   :  { %434 = vst.msk [vmem:[%s859_s11 + $0xc] sm:$0xf] %vm286_vm5, %v428_v42 }
 0x1be   :  { %363 = vst.msk [vmem:[%s858_s10 + $0x10] sm:$0xf] %vm286_vm5, %v357_v6 }
 0x1bf   :  { %v420_v7 = vpop.f32.mrf.mxu2 }
 0x1c0   :  { %v421_v8 = vadd.f32 %v763_v31, %v420_v7  ;;  %v350_v9 = vpop.f32.mrf.mxu1 }
 0x1c1   :  { %v351_v10 = vadd.f32 %v757_v40, %v350_v9 }
 0x1c2   :  { %v429_v41 = vpack.c.bf16 %v421_v8, %v421_v8 }
 0x1c3   :  { %v358_v11 = vpack.c.bf16 %v351_v10, %v351_v10 }
 0x1c4   :  { %435 = vst.msk [vmem:[%s859_s11 + $0x10] sm:$0xf] %vm286_vm5, %v429_v41 }
 0x1c5   :  { %364 = vst.msk [vmem:[%s858_s10 + $0x14] sm:$0xf] %vm286_vm5, %v358_v11 }
 0x1c7   :  { %v422_v12 = vpop.f32.mrf.mxu2 }
 0x1c8   :  { %v423_v14 = vadd.f32 %v763_v31, %v422_v12 }
 0x1ca   :  { %v430_v13 = vpack.c.bf16 %v423_v14, %v423_v14 }
 0x1cc   :  { %436 = vst.msk [vmem:[%s859_s11 + $0x14] sm:$0xf] %vm286_vm5, %v430_v13 }

// kernel: _lambda_.12
= control target key start
LH: loop header
LB: loop body
LE: loop exit
PB: predicated region body
PF: predicated region fallthrough
CT: control target
= control target key end

     0   :  { %s1078_s12 = smov 0   ;;  %s1080_s13 = smov 0   ;;  %s1302_s0 = inlined_call_operand.vmem [shape: bf16[48,64], index: 0, kind: input, shape index: {}]   ;;  %s1303_s1 = inlined_call_operand.vmem [shape: bf16[48,64], index: 1, kind: input, shape index: {}]   ;;  %s1304_s2 = inlined_call_operand.vmem [shape: bf16[48,64], index: 2, kind: input, shape index: {}]   ;;  %s1305_s3 = inlined_call_operand.vmem [shape: bf16[48,64], index: 3, kind: output, shape index: {}]  }
   0x1   :  { %s1082_s14 = smov 0  }
   0x2 LB: > { %s25_s15 = sadd.s32 1, %s1046_s13  ;;  %p897_p0 = scmp.ge.s32.totalorder %s1050_s14, 1  ;;  %s1050_s14 = sphi %s1082_s14, %s13_s14   ;;  %s1046_s13 = sphi %s1080_s13, %s1307_s13   ;;  %s1042_s12 = sphi %s1078_s12, %s1306_s12  }
   0x3   : > { %p27_p1 = scmp.ge.s32.totalorder %s25_s15, 2  ;;  %p189_p2 = scmp.lt.s32.totalorder %s1050_s14, 3 }
   0x5   : > { %s1309_s15 = smov (%p27_p1, %s25_s15), 0  ;;  %p190_p3 = pnand %p897_p0, %p189_p2 }
   0x6   : > { %s235_s16 = smul.u32 (!%p190_p3), 3, %s1042_s12  ;;  %s1052_s24 = smov (!%p190_p3), 112  }
   0x7   : > { %193 = sbr.rel (%p190_p3) target bundleno = 1199 (0x4af), region = 32  ;;  %s1053_s25 = smov (!%p190_p3), 96  }
   0x8   : > { %p236_p4 = scmp.lt.s32.totalorder (!%p190_p3), %s235_s16, 5  ;;  %s1054_s29 = smov (!%p190_p3), 80  }
   0x9   : > { %s1055_s30 = smov (!%p190_p3), 16   ;;  %s1056_s4 = smov (!%p190_p3), 48  }
   0xa   : > { %s1057_s5 = smov (!%p190_p3), 32  }
   0xc   : > { %s1311_s16 = smov (!%p236_p4, %s235_s16), 5  ;;  %vm297_vm0 = vcmask 130048   ;;  %v328_v10 = vlaneseq  ;;  %vm334_vm2 = vcmask 195584   ;;  %vm385_vm3 = vcmask 1043456  }
   0xd   : > { %s1096_s17 = sshll.u32 %s1311_s16, 2  ;;  %vm770_vm4 = vcmask 261120   ;;  %vm774_vm5 = vcmask 392192   ;;  %vm781_vm6 = vcmask 519168  }
   0xe   : > { %s251_s20 = scalar_lea.vmem %s1303_s1, %s1096_s17  ;;  %s242_s23 = scalar_lea.vmem %s1302_s0, %s1096_s17  ;;  %v1124_v11 = vand.u32 127, %v328_v10 }
   0xf   : > { %v277_v0 = vld [vmem:[%s251_s20 + $0x8] sm:$0xf]  ;;  %v1106_v4 = vld [vmem:[%s251_s20] sm:$0xff]  ;;  %s260_s28 = scalar_lea.vmem %s1304_s2, %s1096_s17  ;;  %s269_s8 = scalar_lea.vmem %s1305_s3, %s1096_s17 }
  0x10   : > { %v294_v1 = vunpack.c.l.b16 %v277_v0  ;;  %v305_v5 = vsel %vm297_vm0, %v1106_v4, 0  ;;  %v1114_v6 = vld [vmem:[%s242_s23] sm:$0xff]  ;;  %v274_v7 = vld [vmem:[%s242_s23 + $0x8] sm:$0xf]  ;;  %411 = vrot.lane.b32.xlu2 %v1106_v4, %s1052_s24  ;;  %vm330_vm1 = vcmp.lt.s32.totalorder %v1124_v11, 17 }
  0x11   : > { %v286_v8 = vunpack.c.l.b16 %v274_v7  ;;  %v280_v35 = vld [vmem:[%s260_s28 + $0x8] sm:$0xf]  ;;  %v1157_v42 = vld [vmem:[%s260_s28] sm:$0xff] }
  0x12   : > { %v1102_v2 = vpack.c.b16 %v294_v1, %v294_v1  ;;  %v375_v36 = vunpack.c.l.b16 %v280_v35 }
  0x13   : > { %v1118_v9 = vpack.c.b16 %v286_v8, %v286_v8 }
  0x14   : > { %v308_v3 = vsel %vm297_vm0, %v1102_v2, 0  ;;  %v1153_v40 = vpack.c.b16 %v375_v36, %v375_v36 }
  0x15   : > { %316 = vmatpush.bf16.xpose.msra.mxu0 %v308_v3 }
  0x16   : > { %v387_v41 = vsel %vm385_vm3, %v1153_v40, 0 }
  0x17   : > { %395 = vmatpush.bf16.msra.mxu1 %v387_v41 }
  0x1b   : > { %396 = vmatpush.bf16.msra.mxu1 %v1157_v42 }
  0x1d   : > { %317 = vmatpush.bf16.xpose.msra.mxu0 %v305_v5 }
  0x24   : > { %910 = vmatmul.msk.bf16.vlgmr.msra.gmra.mxu0 %vm297_vm0, %v1114_v6 }
  0x34   : > { %911 = vmatmul.msk.bf16.gmra.mxu0 %vm297_vm0, %v1118_v9 }
  0x6a   : > { %v412_v48 = vpop.permute.xlu2 %411 }
  0x6b   : > { %v422_v49 = vsel %vm297_vm0, %v412_v48, 0 }
  0xa1   : > { %v319_v12 = vpop.f32.mrf.mxu0 }
  0xa2   : > { %v331_v13 = vsel %vm330_vm1, %v319_v12, -1e+30 }
  0xa3   : > { %v335_v14 = vsel %vm334_vm2, %v331_v13, -inf }
  0xa4   : > { %336 = vmax.xlane.f32.xlu0 %v335_v14 }
  0xa9   : > { %v321_v15 = vpop.f32.mrf.mxu0 }
  0xaa   : > { %v332_v16 = vsel %vm330_vm1, %v321_v15, -1e+30 }
  0xab   : > { %v338_v17 = vsel %vm334_vm2, %v332_v16, -inf }
  0xac   : > { %339 = vmax.xlane.f32.xlu0 %v338_v17 }
  0xb1   : > { %v324_v18 = vpop.f32.mrf.mxu0 }
  0xb2   : > { %v333_v19 = vsel %vm330_vm1, %v324_v18, -1e+30 }
  0xb3   : > { %v341_v20 = vsel %vm334_vm2, %v333_v19, -inf }
  0xb4   : > { %342 = vmax.xlane.f32.xlu1 %v341_v20 }
  0xb9   : > { %v326_v21 = vpop.f32.mrf.mxu0 }
  0xc0   : > { %407 = vrot.lane.b32.xlu0 %v1114_v6, %s1052_s24 }
  0xc8   : > { %521 = vrot.lane.b32.xlu0 %v1102_v2, %s1053_s25 }
  0xcd   : > { %413 = vrot.lane.b32.xlu1 %v1102_v2, %s1052_s24 }
  0xd0   : > { %409 = vrot.lane.b32.xlu0 %v1118_v9, %s1052_s24 }
  0xd8   : > { %519 = vrot.lane.b32.xlu0 %v1106_v4, %s1053_s25 }
 0x117   : > { %v337_v22 = vpop.xlane.xlu0 %336 }
 0x118   : > { %v344_v23 = vsub.f32 %v331_v13, %v337_v22 }
 0x11a   : > { %v347_v24 = vmul.f32 1.442695, %v344_v23 }
 0x11c   : > { %980 = vpow2.f32 %v347_v24 }
 0x11f   : > { %v340_v25 = vpop.xlane.xlu0 %339 }
 0x120   : > { %v345_v26 = vsub.f32 %v332_v16, %v340_v25 }
 0x122   : > { %v981_v27 = vpop.eup %980  ;;  %v349_v28 = vmul.f32 1.442695, %v345_v26 }
 0x123   : > { %v353_v29 = vsel %vm334_vm2, %v981_v27, 0.0 }
 0x124   : > { %982 = vpow2.f32 %v349_v28  ;;  %354 = vadd.xlane.f32.xlu2 %v353_v29 }
 0x127   : > { %v343_v30 = vpop.xlane.xlu1 %342 }
 0x128   : > { %v346_v31 = vsub.f32 %v333_v19, %v343_v30 }
 0x12a   : > { %v983_v32 = vpop.eup %982  ;;  %v351_v33 = vmul.f32 1.442695, %v346_v31 }
 0x12b   : > { %v356_v34 = vsel %vm334_vm2, %v983_v32, 0.0 }
 0x12c   : > { %984 = vpow2.f32 %v351_v33  ;;  %357 = vadd.xlane.f32.xlu0 %v356_v34 }
 0x132   : > { %v985_v37 = vpop.eup %984  ;;  %v408_v38 = vpop.permute.xlu0 %407 }
 0x133   : > { %v359_v39 = vsel %vm334_vm2, %v985_v37, 0.0 }
 0x134   : > { %360 = vadd.xlane.f32.xlu1 %v359_v39 }
 0x13a   : > { %v522_v43 = vpop.permute.xlu0 %521 }
 0x13b   : > { %v533_v46 = vsel %vm297_vm0, %v522_v43, 0 }
 0x13c   : > { %629 = vrot.lane.b32.xlu2 %v1102_v2, %s1054_s29  ;;  %541 = vmatpush.bf16.xpose.msrb.mxu1 %v533_v46 }
 0x13f   : > { %v414_v44 = vpop.permute.xlu1 %413 }
 0x140   : > { %v425_v45 = vsel %vm297_vm0, %v414_v44, 0  ;;  %627 = vrot.lane.b32.xlu0 %v1106_v4, %s1054_s29 }
 0x141   : > { %433 = vmatpush.bf16.xpose.msra.mxu2 %v425_v45 }
 0x142   : > { %v410_v47 = vpop.permute.xlu0 %409 }
 0x144   : > { %515 = vrot.lane.b32.xlu2 %v1114_v6, %s1053_s25 }
 0x148   : > { %517 = vrot.lane.b32.xlu0 %v1118_v9, %s1053_s25 }
 0x149   : > { %434 = vmatpush.bf16.xpose.msra.mxu2 %v422_v49 }
 0x14a   : > { %v520_v50 = vpop.permute.xlu0 %519 }
 0x14b   : > { %v530_v51 = vsel %vm297_vm0, %v520_v50, 0 }
 0x14c   : > { %625 = vrot.lane.b32.xlu2 %v1118_v9, %s1054_s29  ;;  %542 = vmatpush.bf16.xpose.msrb.mxu1 %v530_v51 }
 0x14d   : > { %623 = vrot.lane.b32.xlu1 %v1114_v6, %s1054_s29 }
 0x150   : > { %918 = vmatmul.msk.bf16.vlgmr.msra.gmra.mxu2 %vm297_vm0, %v408_v38 }
 0x160   : > { %919 = vmatmul.msk.bf16.gmra.mxu2 %vm297_vm0, %v410_v47 }
 0x197   : > { %v355_v52 = vpop.xlane.xlu2 %354 }
 0x198   : > { %986 = vrcp.f32 %v355_v52 }
 0x19e   : > { %v987_v56 = vpop.eup %986 }
 0x19f   : > { %v358_v53 = vpop.xlane.xlu0 %357  ;;  %v630_v54 = vpop.permute.xlu2 %629  ;;  %v365_v58 = vmul.f32 %v987_v56, %v981_v27 }
 0x1a0   : > { %988 = vrcp.f32 %v358_v53  ;;  %v641_v55 = vsel %vm297_vm0, %v630_v54, 0 }
 0x1a1   : > { %649 = vmatpush.bf16.xpose.msrb.mxu0 %v641_v55 }
 0x1a6   : > { %v989_v57 = vpop.eup %988 }
 0x1a7   : > { %v366_v59 = vmul.f32 %v989_v57, %v983_v32  ;;  %v361_v60 = vpop.xlane.xlu1 %360  ;;  %v516_v4 = vpop.permute.xlu2 %515 }
 0x1a8   : > { %990 = vrcp.f32 %v361_v60 }
 0x1a9   : > { %v368_v61 = vpack.c.bf16 %v366_v59, %v365_v58 }
 0x1ab   : > { %916 = vmatmul.msk.bf16.vlgmr.msra.gmra.mxu1 %vm334_vm2, %v368_v61 }
 0x1ae   : > { %v991_v62 = vpop.eup %990 }
 0x1af   : > { %v367_v1 = vmul.f32 %v991_v62, %v985_v37  ;;  %v626_v5 = vpop.permute.xlu2 %625 }
 0x1b1   : > { %v369_v2 = vpack.c.bf16 %v367_v1, %v367_v1 }
 0x1b2   : > { %v628_v63 = vpop.permute.xlu0 %627 }
 0x1b3   : > { %v638_v0 = vsel %vm297_vm0, %v628_v63, 0 }
 0x1b4   : > { %650 = vmatpush.bf16.xpose.msrb.mxu0 %v638_v0 }
 0x1ba   : > { %v518_v17 = vpop.permute.xlu0 %517 }
 0x1bb   : > { %917 = vmatmul.msk.bf16.gmra.mxu1 %vm334_vm2, %v369_v2 }
 0x1bf   : > { %v624_v3 = vpop.permute.xlu1 %623 }
 0x1c0   : > { %926 = vmatmul.msk.bf16.vlgmr.msrb.gmra.mxu0 %vm297_vm0, %v624_v3 }
 0x1cb   : > { %922 = vmatmul.msk.bf16.vlgmr.msrb.gmra.mxu1 %vm297_vm0, %v516_v4 }
 0x1d0   : > { %927 = vmatmul.msk.bf16.gmra.mxu0 %vm297_vm0, %v626_v5 }
 0x1d3   : > { %v436_v6 = vpop.f32.mrf.mxu2 }
 0x1d4   : > { %v445_v7 = vsel %vm330_vm1, %v436_v6, -1e+30 }
 0x1d5   : > { %v448_v8 = vsel %vm334_vm2, %v445_v7, -inf }
 0x1d6   : > { %449 = vmax.xlane.f32.xlu0 %v448_v8 }
 0x1db   : > { %v438_v9 = vpop.f32.mrf.mxu2  ;;  %923 = vmatmul.msk.bf16.gmra.mxu1 %vm297_vm0, %v518_v17 }
 0x1dc   : > { %v446_v10 = vsel %vm330_vm1, %v438_v9, -1e+30 }
 0x1dd   : > { %v451_v12 = vsel %vm334_vm2, %v446_v10, -inf }
 0x1de   : > { %452 = vmax.xlane.f32.xlu2 %v451_v12 }
 0x1e3   : > { %v441_v13 = vpop.f32.mrf.mxu2 }
 0x1e4   : > { %v447_v14 = vsel %vm330_vm1, %v441_v13, -1e+30 }
 0x1e5   : > { %v454_v15 = vsel %vm334_vm2, %v447_v14, -inf }
 0x1e6   : > { %455 = vmax.xlane.f32.xlu1 %v454_v15 }
 0x1eb   : > { %v443_v16 = vpop.f32.mrf.mxu2 }
 0x228   : > { %v1195_v18 = vpop.f32.mrf.mxu1 }
 0x230   : > { %v1197_v19 = vpop.f32.mrf.mxu1 }
 0x238   : > { %v1199_v20 = vpop.f32.mrf.mxu1 }
 0x23d   : > { %v652_v21 = vpop.f32.mrf.mxu0 }
 0x23e   : > { %v661_v22 = vsel %vm330_vm1, %v652_v21, -1e+30 }
 0x23f   : > { %v664_v23 = vsel %vm334_vm2, %v661_v22, -inf }
 0x240   : > { %v405_v24 = vpop.f32.mrf.mxu1  ;;  %665 = vmax.xlane.f32.xlu0 %v664_v23 }
 0x245   : > { %v654_v25 = vpop.f32.mrf.mxu0 }
 0x246   : > { %v662_v26 = vsel %vm330_vm1, %v654_v25, -1e+30 }
 0x247   : > { %v667_v27 = vsel %vm334_vm2, %v662_v26, -inf }
 0x248   : > { %668 = vmax.xlane.f32.xlu2 %v667_v27  ;;  %v544_v30 = vpop.f32.mrf.mxu1 }
 0x249   : > { %v450_v28 = vpop.xlane.xlu0 %449  ;;  %v553_v50 = vsel %vm330_vm1, %v544_v30, -1e+30 }
 0x24a   : > { %v457_v29 = vsub.f32 %v445_v7, %v450_v28  ;;  %v556_v52 = vsel %vm334_vm2, %v553_v50, -inf }
 0x24c   : > { %v460_v31 = vmul.f32 1.442695, %v457_v29 }
 0x24d   : > { %v657_v32 = vpop.f32.mrf.mxu0 }
 0x24e   : > { %992 = vpow2.f32 %v460_v31  ;;  %v663_v33 = vsel %vm330_vm1, %v657_v32, -1e+30 }
 0x24f   : > { %v670_v34 = vsel %vm334_vm2, %v663_v33, -inf }
 0x250   : > { %671 = vmax.xlane.f32.xlu1 %v670_v34  ;;  %v546_v41 = vpop.f32.mrf.mxu1 }
 0x251   : > { %v453_v35 = vpop.xlane.xlu2 %452  ;;  %v1216_v44 = vsel %vm330_vm1, %v546_v41, -1e+30 }
 0x252   : > { %v458_v36 = vsub.f32 %v446_v10, %v453_v35  ;;  %v559_v46 = vsel %vm334_vm2, %v1216_v44, -inf }
 0x254   : > { %v1210_v37 = vpop.eup %992  ;;  %v462_v38 = vmul.f32 1.442695, %v458_v36 }
 0x255   : > { %v466_v39 = vsel %vm334_vm2, %v1210_v37, 0.0  ;;  %v659_v43 = vpop.f32.mrf.mxu0 }
 0x256   : > { %994 = vpow2.f32 %v462_v38  ;;  %467 = vadd.xlane.f32.xlu2 %v466_v39 }
 0x258   : > { %v549_v55 = vpop.f32.mrf.mxu1 }
 0x259   : > { %v456_v45 = vpop.xlane.xlu1 %455  ;;  %v1238_v57 = vsel %vm330_vm1, %v549_v55, -1e+30 }
 0x25a   : > { %v459_v48 = vsub.f32 %v447_v14, %v456_v45  ;;  %v562_v58 = vsel %vm334_vm2, %v1238_v57, -inf }
 0x25c   : > { %v995_v47 = vpop.eup %994  ;;  %v464_v51 = vmul.f32 1.442695, %v459_v48 }
 0x25d   : > { %v469_v49 = vsel %vm334_vm2, %v995_v47, 0.0 }
 0x25e   : > { %470 = vadd.xlane.f32.xlu0 %v469_v49  ;;  %560 = vmax.xlane.f32.xlu2 %v559_v46  ;;  %996 = vpow2.f32 %v464_v51 }
 0x260   : > { %v551_v56 = vpop.f32.mrf.mxu1 }
 0x264   : > { %v1226_v53 = vpop.eup %996 }
 0x265   : > { %v472_v54 = vsel %vm334_vm2, %v1226_v53, 0.0 }
 0x266   : > { %557 = vmax.xlane.f32.xlu0 %v556_v52 }
 0x269   : > { %485 = vrot.lane.b32.xlu1 %v1153_v40, %s1052_s24 }
 0x26e   : > { %473 = vadd.xlane.f32.xlu0 %v472_v54 }
 0x276   : > { %483 = vrot.lane.b32.xlu2 %v1157_v42, %s1052_s24 }
 0x282   : > { %593 = vrot.lane.b32.xlu0 %v1153_v40, %s1053_s25 }
 0x28a   : > { %701 = vrot.lane.b32.xlu0 %v1153_v40, %s1054_s29 }
 0x2b3   : > { %v666_v59 = vpop.xlane.xlu0 %665 }
 0x2b4   : > { %v673_v60 = vsub.f32 %v661_v22, %v666_v59  ;;  %563 = vmax.xlane.f32.xlu0 %v562_v58 }
 0x2b6   : > { %v676_v61 = vmul.f32 1.442695, %v673_v60 }
 0x2b8   : > { %998 = vpow2.f32 %v676_v61 }
 0x2bb   : > { %v669_v62 = vpop.xlane.xlu2 %668 }
 0x2bc   : > { %v674_v63 = vsub.f32 %v662_v26, %v669_v62 }
 0x2be   : > { %v1242_v0 = vpop.eup %998  ;;  %v678_v1 = vmul.f32 1.442695, %v674_v63 }
 0x2bf   : > { %v682_v40 = vsel %vm334_vm2, %v1242_v0, 0.0 }
 0x2c0   : > { %1000 = vpow2.f32 %v678_v1  ;;  %683 = vadd.xlane.f32.xlu1 %v682_v40 }
 0x2c3   : > { %v672_v11 = vpop.xlane.xlu1 %671 }
 0x2c4   : > { %v675_v2 = vsub.f32 %v663_v33, %v672_v11 }
 0x2c6   : > { %v1246_v3 = vpop.eup %1000  ;;  %v680_v4 = vmul.f32 1.442695, %v675_v2 }
 0x2c7   : > { %v685_v5 = vsel %vm334_vm2, %v1246_v3, 0.0 }
 0x2c8   : > { %1002 = vpow2.f32 %v680_v4  ;;  %686 = vadd.xlane.f32.xlu2 %v685_v5 }
 0x2c9   : > { %v468_v6 = vpop.xlane.xlu2 %467 }
 0x2ce   : > { %v1250_v7 = vpop.eup %1002 }
 0x2cf   : > { %v688_v8 = vsel %vm334_vm2, %v1250_v7, 0.0 }
 0x2d0   : > { %689 = vadd.xlane.f32.xlu2 %v688_v8 }
 0x2d1   : > { %v471_v9 = vpop.xlane.xlu0 %470  ;;  %v561_v10 = vpop.xlane.xlu2 %560 }
 0x2d2   : > { %1004 = vrcp.f32 %v471_v9  ;;  %v566_v16 = vsub.f32 %v1216_v44, %v561_v10 }
 0x2d3   : > { %1006 = vrcp.f32 %v468_v6 }
 0x2d4   : > { %v570_v25 = vmul.f32 1.442695, %v566_v16 }
 0x2d8   : > { %v1005_v14 = vpop.eup %1004 }
 0x2d9   : > { %v558_v12 = vpop.xlane.xlu0 %557  ;;  %699 = vrot.lane.b32.xlu1 %v1157_v42, %s1054_s29  ;;  %v1007_v22 = vpop.eup %1006  ;;  %v479_v24 = vmul.f32 %v1005_v14, %v995_v47 }
 0x2da   : > { %v565_v13 = vsub.f32 %v553_v50, %v558_v12  ;;  %v484_v23 = vpop.permute.xlu2 %483  ;;  %v478_v26 = vmul.f32 %v1007_v22, %v1210_v37 }
 0x2db   : > { %v486_v15 = vpop.permute.xlu1 %485 }
 0x2dc   : > { %v568_v17 = vmul.f32 1.442695, %v565_v13  ;;  %v495_v21 = vsel %vm385_vm3, %v486_v15, 0  ;;  %v481_v28 = vpack.c.bf16 %v479_v24, %v478_v26 }
 0x2dd   : > { %503 = vmatpush.bf16.msra.mxu3 %v495_v21 }
 0x2de   : > { %1008 = vpow2.f32 %v568_v17 }
 0x2df   : > { %1010 = vpow2.f32 %v570_v25 }
 0x2e1   : > { %504 = vmatpush.bf16.msra.mxu3 %v484_v23  ;;  %v474_v27 = vpop.xlane.xlu0 %473 }
 0x2e2   : > { %1012 = vrcp.f32 %v474_v27 }
 0x2e4   : > { %v1009_v29 = vpop.eup %1008  ;;  %920 = vmatmul.msk.bf16.vlgmr.msra.gmra.mxu3 %vm334_vm2, %v481_v28 }
 0x2e5   : > { %v574_v30 = vsel %vm334_vm2, %v1009_v29, 0.0  ;;  %v1011_v31 = vpop.eup %1010 }
 0x2e6   : > { %575 = vadd.xlane.f32.xlu0 %v574_v30  ;;  %v577_v33 = vsel %vm334_vm2, %v1011_v31, 0.0 }
 0x2e8   : > { %v1013_v32 = vpop.eup %1012 }
 0x2e9   : > { %v480_v34 = vmul.f32 %v1013_v32, %v1226_v53 }
 0x2eb   : > { %v482_v35 = vpack.c.bf16 %v480_v34, %v480_v34 }
 0x2ee   : > { %578 = vadd.xlane.f32.xlu0 %v577_v33 }
 0x2f4   : > { %v594_v36 = vpop.permute.xlu0 %593  ;;  %921 = vmatmul.msk.bf16.gmra.mxu3 %vm334_vm2, %v482_v35 }
 0x2f5   : > { %v603_v37 = vsel %vm385_vm3, %v594_v36, 0 }
 0x2f6   : > { %611 = vmatpush.bf16.msrb.mxu3 %v603_v37 }
 0x2fc   : > { %v702_v38 = vpop.permute.xlu0 %701 }
 0x2fd   : > { %v711_v39 = vsel %vm385_vm3, %v702_v38, 0 }
 0x2fe   : > { %719 = vmatpush.bf16.msrb.mxu2 %v711_v39 }
 0x302   : > { %591 = vrot.lane.b32.xlu0 %v1157_v42, %s1053_s25 }
 0x327   : > { %v564_v41 = vpop.xlane.xlu0 %563 }
 0x328   : > { %v567_v43 = vsub.f32 %v1238_v57, %v564_v41 }
 0x32a   : > { %v572_v44 = vmul.f32 1.442695, %v567_v43 }
 0x32c   : > { %1014 = vpow2.f32 %v572_v44 }
 0x332   : > { %v1015_v45 = vpop.eup %1014 }
 0x333   : > { %v580_v46 = vsel %vm334_vm2, %v1015_v45, 0.0  ;;  %v684_v48 = vpop.xlane.xlu1 %683 }
 0x334   : > { %581 = vadd.xlane.f32.xlu0 %v580_v46 }
 0x33b   : > { %v687_v47 = vpop.xlane.xlu2 %686 }
 0x33c   : > { %1016 = vrcp.f32 %v687_v47 }
 0x33d   : > { %1018 = vrcp.f32 %v684_v48 }
 0x342   : > { %v1017_v49 = vpop.eup %1016 }
 0x343   : > { %v1019_v50 = vpop.eup %1018  ;;  %v695_v51 = vmul.f32 %v1017_v49, %v1246_v3  ;;  %v690_v53 = vpop.xlane.xlu2 %689 }
 0x344   : > { %v694_v52 = vmul.f32 %v1019_v50, %v1242_v0  ;;  %1020 = vrcp.f32 %v690_v53 }
 0x346   : > { %v697_v54 = vpack.c.bf16 %v695_v51, %v694_v52 }
 0x34a   : > { %v1021_v55 = vpop.eup %1020 }
 0x34b   : > { %v700_v42 = vpop.permute.xlu1 %699  ;;  %v696_v56 = vmul.f32 %v1021_v55, %v1250_v7 }
 0x34c   : > { %720 = vmatpush.bf16.msrb.mxu2 %v700_v42 }
 0x34d   : > { %v698_v58 = vpack.c.bf16 %v696_v56, %v696_v56 }
 0x34f   : > { %928 = vmatmul.msk.bf16.vlgmr.msrb.gmra.mxu2 %vm334_vm2, %v697_v54 }
 0x359   : > { %v576_v57 = vpop.xlane.xlu0 %575 }
 0x35f   : > { %929 = vmatmul.msk.bf16.gmra.mxu2 %vm334_vm2, %v698_v58 }
 0x361   : > { %v579_v59 = vpop.xlane.xlu0 %578 }
 0x362   : > { %1022 = vrcp.f32 %v579_v59 }
 0x363   : > { %1024 = vrcp.f32 %v576_v57 }
 0x367   : > { %v506_v60 = vpop.f32.mrf.mxu3 }
 0x368   : > { %v1023_v61 = vpop.eup %1022 }
 0x369   : > { %v1025_v0 = vpop.eup %1024  ;;  %v587_v1 = vmul.f32 %v1023_v61, %v1011_v31 }
 0x36a   : > { %v586_v40 = vmul.f32 %v1025_v0, %v1009_v29 }
 0x36c   : > { %v589_v2 = vpack.c.bf16 %v587_v1, %v586_v40 }
 0x36f   : > { %v508_v62 = vpop.f32.mrf.mxu3 }
 0x370   : > { %v965_v63 = vpack.i.bf16 %v508_v62, %v506_v60 }
 0x372   : > { %966 = vrot.lane.b32.xlu2 %v965_v63, %s1055_s30 }
 0x374   : > { %v592_v11 = vpop.permute.xlu0 %591 }
 0x375   : > { %612 = vmatpush.bf16.msrb.mxu3 %v592_v11 }
 0x377   : > { %v511_v3 = vpop.f32.mrf.mxu3 }
 0x378   : > { %924 = vmatmul.msk.bf16.vlgmr.msrb.gmra.mxu3 %vm334_vm2, %v589_v2  ;;  %738 = vrot.lane.b32.xlu1 %v511_v3, %s1055_s30 }
 0x37f   : > { %v513_v4 = vpop.f32.mrf.mxu3 }
 0x3a7   : > { %v582_v5 = vpop.xlane.xlu0 %581 }
 0x3a8   : > { %1026 = vrcp.f32 %v582_v5 }
 0x3ae   : > { %v1027_v6 = vpop.eup %1026 }
 0x3af   : > { %v588_v7 = vmul.f32 %v1027_v6, %v1015_v45 }
 0x3b1   : > { %v590_v8 = vpack.c.bf16 %v588_v7, %v588_v7 }
 0x3b3   : > { %925 = vmatmul.msk.bf16.gmra.mxu3 %vm334_vm2, %v590_v8 }
 0x3cc   : > { %v967_v23 = vpop.permute.xlu2 %966 }
 0x3cd   : > { %v969_v25 = vunpack.i.h.bf16 %v967_v23  ;;  %v968_v26 = vunpack.i.l.bf16 %v967_v23 }
 0x3cf   : > { %v768_v31 = vsel %vm297_vm0, %v1197_v19, %v969_v25  ;;  %v767_v32 = vsel %vm297_vm0, %v1195_v18, %v968_v26 }
 0x3d2   : > { %v722_v9 = vpop.f32.mrf.mxu2 }
 0x3da   : > { %v724_v10 = vpop.f32.mrf.mxu2 }
 0x3db   : > { %v970_v12 = vpack.i.bf16 %v724_v10, %v722_v9 }
 0x3dd   : > { %971 = vrot.lane.b32.xlu2 %v970_v12, %s1056_s4 }
 0x3e2   : > { %v727_v13 = vpop.f32.mrf.mxu2 }
 0x3e5   : > { %762 = vrot.lane.b32.xlu2 %v727_v13, %s1056_s4 }
 0x3ea   : > { %v729_v14 = vpop.f32.mrf.mxu2  ;;  %v739_v24 = vpop.permute.xlu1 %738 }
 0x3eb   : > { %v769_v18 = vsel %vm297_vm0, %v1199_v20, %v739_v24 }
 0x3fb   : > { %v614_v15 = vpop.f32.mrf.mxu3 }
 0x403   : > { %v616_v16 = vpop.f32.mrf.mxu3 }
 0x404   : > { %v975_v17 = vpack.i.bf16 %v616_v16, %v614_v15 }
 0x406   : > { %976 = vrot.lane.b32.xlu1 %v975_v17, %s1057_s5 }
 0x436   : > { %v619_v21 = vpop.f32.mrf.mxu3 }
 0x437   : > { %750 = vrot.lane.b32.xlu1 %v619_v21, %s1057_s5  ;;  %v972_v27 = vpop.permute.xlu2 %971 }
 0x438   : > { %v974_v33 = vunpack.i.h.bf16 %v972_v27  ;;  %v973_v34 = vunpack.i.l.bf16 %v972_v27 }
 0x43e   : > { %v621_v22 = vpop.f32.mrf.mxu3 }
 0x43f   : > { %v763_v43 = vpop.permute.xlu2 %762 }
 0x478   : > { %v977_v28 = vpop.permute.xlu1 %976 }
 0x479   : > { %v979_v29 = vunpack.i.h.bf16 %v977_v28  ;;  %v978_v30 = vunpack.i.l.bf16 %v977_v28 }
 0x47b   : > { %v771_v35 = vsel %vm770_vm4, %v767_v32, %v978_v30  ;;  %v772_v36 = vsel %vm770_vm4, %v768_v31, %v979_v29 }
 0x47c   : > { %v775_v37 = vsel %vm774_vm5, %v771_v35, %v973_v34  ;;  %v776_v38 = vsel %vm774_vm5, %v772_v36, %v974_v33 }
 0x47d   : > { %v778_v39 = vpack.c.bf16 %v775_v37, %v775_v37  ;;  %v779_v19 = vpack.c.bf16 %v776_v38, %v776_v38 }
 0x47f   : > { %782 = vst.msk [vmem:[%s269_s8] sm:$0xf] %vm781_vm6, %v778_v39 }
 0x480   : > { %783 = vst.msk [vmem:[%s269_s8 + $0x4] sm:$0xf] %vm781_vm6, %v779_v19 }
 0x4a9   : > { %v751_v41 = vpop.permute.xlu1 %750 }
 0x4aa   : > { %v773_v44 = vsel %vm770_vm4, %v769_v18, %v751_v41 }
 0x4ab   : > { %v777_v45 = vsel %vm774_vm5, %v773_v44, %v763_v43 }
 0x4ac   : > { %v780_v46 = vpack.c.bf16 %v777_v45, %v777_v45 }
 0x4ae   : > { %784 = vst.msk [vmem:[%s269_s8 + $0x8] sm:$0xf] %vm781_vm6, %v780_v46 }
 0x4af PF: > { %s13_s14 = sadd.s32 1, %s1050_s14   ;;  %s1306_s12 = smov %s1046_s13 }
 0x4b0   : > { %p10_p5 = scmp.ge.s32.totalorder %s13_s14, 4   ;;  %s1307_s13 = smov %s1309_s15 }
 0x4b2   :  { %12 = sbr.rel (!%p10_p5) target bundleno = 2 (0x2), region = 68 }

// kernel: _lambda_.17
= control target key start
LH: loop header
LB: loop body
LE: loop exit
PB: predicated region body
PF: predicated region fallthrough
CT: control target
= control target key end

     0   :  { %vm26_vm0 = vcmask 517120   ;;  %s304_s0 = inlined_call_operand.vmem [shape: bf16[2,64], index: 0, kind: input, shape index: {}]   ;;  %s305_s1 = inlined_call_operand.vmem [shape: f32[1,64], index: 1, kind: input, shape index: {}]   ;;  %s306_s2 = inlined_call_operand.vmem [shape: f32[1,64], index: 2, kind: input, shape index: {}]   ;;  %s307_s3 = inlined_call_operand.vmem [shape: bf16[64,32], index: 3, kind: input, shape index: {}]   ;;  %s308_s4 = inlined_call_operand.vmem [shape: f32[32,128], index: 4, kind: input, shape index: {}]   ;;  %s309_s5 = inlined_call_operand.hbm [shape: f32[2,128], index: 5, kind: output, shape index: {}]  }
   0x1   :  { %v22_v0 = vld [vmem:[%s304_s0] sm:$0x1] }
   0x2   :  { %v23_v1 = vunpack.c.l.bf16 %v22_v0 }
   0x3   :  { %10 = vsyncpa [#allocation3], 0  ;;  %v234_v3 = vmov 64.0   ;;  %v197_v15 = vld [vmem:[%s307_s3 + $0x18] sm:$0xff]  ;;  %v196_v16 = vld [vmem:[%s307_s3 + $0x10] sm:$0xff]  ;;  %vm97_vm5 = vcmask 523264  }
   0x4   :  { %v27_v2 = vsel %vm26_vm0, %v23_v1, 0.0  ;;  %202 = vrcp.f32 %v234_v3  ;;  %105 = vmatpush.bf16.msra.mxu0 %v197_v15  ;;  %v195_v17 = vld [vmem:[%s307_s3 + $0x8] sm:$0xff]  ;;  %v194_v18 = vld [vmem:[%s307_s3] sm:$0xff]  ;;  %vm115_vm6 = vcmask 254976   ;;  %v134_v39 = vld [vmem:[%s308_s4 + $0x18] sm:$0xff]  ;;  %vm135_vm10 = vcmask 261120  }
   0x5   :  { %28 = vadd.xlane.f32.xlu0 %v27_v2  ;;  %v200_v28 = vld [vmem:[%s305_s1] ss:$0 sm:$0xff]  ;;  %151 = vmatpush.msra.mxu1 %v134_v39  ;;  %v133_v40 = vld [vmem:[%s308_s4 + $0x10] sm:$0xff]  ;;  %v132_v41 = vld [vmem:[%s308_s4 + $0x8] sm:$0xff]  ;;  %s235_s11 = smov [#allocation2]   ;;  %s167_s14 = sshll.u32 %s309_s5, 4  ;;  %s168_s14 = int_to_ptr.hbm [resolvable:$true] %s167_s14 }
   0x6   :  { %v201_v31 = vld [vmem:[%s306_s2] ss:$0 sm:$0xff] }
   0x7   :  { %152 = vmatpush.msra.mxu1 %v133_v40  ;;  %v131_v42 = vld [vmem:[%s308_s4] sm:$0xff]  ;;  %s165_s4 = sshll.u32 %s235_s11, 4  ;;  %s166_s4 = int_to_ptr.vmem [resolvable:$true] %s165_s4 }
   0x8   :  { %106 = vmatpush.bf16.msra.mxu0 %v196_v16 }
   0x9   :  { %153 = vmatpush.msra.mxu1 %v132_v41 }
   0xa   :  { %v203_v4 = vpop.eup %202 }
   0xb   :  { %v31_v5 = vmul.f32 64.0, %v203_v4  ;;  %vm35_vm1 = vweird.f32 %v203_v4  ;;  %154 = vmatpush.msra.mxu1 %v131_v42 }
   0xc   :  { %107 = vmatpush.bf16.msra.mxu0 %v195_v17 }
   0xd   :  { %v32_v6 = vsub.f32 1.0, %v31_v5 }
   0xf   :  { %v33_v7 = vmul.f32 %v203_v4, %v32_v6 }
  0x10   :  { %108 = vmatpush.bf16.msra.mxu0 %v194_v18 }
  0x11   :  { %v34_v8 = vadd.f32 %v203_v4, %v33_v7 }
  0x13   :  { %v36_v9 = vsel %vm35_vm1, %v203_v4, %v34_v8 }
  0x78   :  { %v29_v10 = vpop.xlane.xlu0 %28 }
  0x79   :  { %v37_v11 = vmul.f32 %v36_v9, %v29_v10 }
  0x7b   :  { %v38_v12 = vsub.f32 %v23_v1, %v37_v11 }
  0x7d   :  { %v39_v13 = vmul.f32 %v38_v12, %v38_v12 }
  0x7f   :  { %v40_v14 = vsel %vm26_vm0, %v39_v13, 0.0 }
  0x80   :  { %41 = vadd.xlane.f32.xlu0 %v40_v14 }
  0xf3   :  { %v42_v19 = vpop.xlane.xlu0 %41 }
  0xf4   :  { %v43_v20 = vmul.f32 %v42_v19, %v36_v9 }
  0xf6   :  { %v44_v21 = vadd.f32 1e-05, %v43_v20 }
  0xf8   :  { %204 = vrsqrt.f32 %v44_v21  ;;  %vm51_vm3 = vweird.f32 %v44_v21 }
  0xfe   :  { %v205_v22 = vpop.eup %204 }
  0xff   :  { %v46_v23 = vmul.f32 %v205_v22, %v44_v21  ;;  %vm52_vm2 = vweird.f32 %v205_v22 }
 0x100   :  { %vm53_vm4 = vmor %vm51_vm3, %vm52_vm2 }
 0x101   :  { %v47_v24 = vmul.f32 %v205_v22, %v46_v23 }
 0x103   :  { %v48_v25 = vmul.f32 0.5, %v47_v24 }
 0x105   :  { %v49_v26 = vsub.f32 1.5, %v48_v25 }
 0x107   :  { %v50_v27 = vmul.f32 %v205_v22, %v49_v26 }
 0x109   :  { %v54_v29 = vsel %vm53_vm4, %v205_v22, %v50_v27 }
 0x10a   :  { %v55_v30 = vmul.f32 %v54_v29, %v38_v12 }
 0x10c   :  { %v59_v32 = vmul.f32 %v200_v28, %v55_v30 }
 0x10e   :  { %v63_v33 = vadd.f32 %v201_v31, %v59_v32 }
 0x110   :  { %v64_v34 = vpack.c.bf16 %v63_v33, %v63_v33 }
 0x112   :  { %192 = vmatmul.msk.bf16.vlgmr.msra.gmra.mxu0 %vm97_vm5, %v64_v34 }
 0x18f   :  { %v110_v35 = vpop.f32.mrf.mxu0 }
 0x190   :  { %v114_v36 = vmul.f32 %v110_v35, %v110_v35 }
 0x192   :  { %v116_v37 = vsel %vm115_vm6, %v114_v36, 0.0 }
 0x193   :  { %117 = vadd.xlane.f32.xlu1 %v116_v37 }
 0x197   :  { %v112_v38 = vpop.f32.mrf.mxu0 }
 0x206   :  { %v118_v43 = vpop.xlane.xlu1 %117 }
 0x207   :  { %v119_v44 = vmax.f32 %v118_v43, 1e-24 }
 0x209   :  { %206 = vrsqrt.f32 %v119_v44  ;;  %vm126_vm8 = vweird.f32 %v119_v44 }
 0x20f   :  { %v207_v45 = vpop.eup %206 }
 0x210   :  { %v121_v46 = vmul.f32 %v207_v45, %v119_v44  ;;  %vm127_vm7 = vweird.f32 %v207_v45 }
 0x211   :  { %vm128_vm9 = vmor %vm126_vm8, %vm127_vm7 }
 0x212   :  { %v122_v47 = vmul.f32 %v207_v45, %v121_v46 }
 0x214   :  { %v123_v48 = vmul.f32 0.5, %v122_v47 }
 0x216   :  { %v124_v49 = vsub.f32 1.5, %v123_v48 }
 0x218   :  { %v125_v50 = vmul.f32 %v207_v45, %v124_v49 }
 0x21a   :  { %v129_v51 = vsel %vm128_vm9, %v207_v45, %v125_v50 }
 0x21b   :  { %v130_v52 = vmul.f32 %v129_v51, %v110_v35 }
 0x21d   :  { %193 = vmatmul.msk.f32.vlgmr.msra.gmra.mxu1 %vm135_vm10, %v130_v52 }
 0x29a   :  { %v156_v53 = vpop.f32.mrf.mxu1 }
 0x29b   :  { %159 = vst [vmem:[#allocation2] sm:$0x3] %v156_v53 }
 0x29c   :  { %170 = dma.vmem_to_hbm [thread:$0]  %s166_s4, 32, %s168_s14, [#allocation3]  }
 0x29d   :  { %232 = dma.done.wait [#allocation3], 32  }
 0x29e   :  { %233 = vsyncadd [#allocation3], 4294967264 }
 0x29f   :  { %175 = vsyncpa [#allocation3], 1 }

// kernel: _lambda_.13
= control target key start
LH: loop header
LB: loop body
LE: loop exit
PB: predicated region body
PF: predicated region fallthrough
CT: control target
= control target key end

     0   :  { %vm97_vm0 = vcmask 523264   ;;  %v1232_v48 = vmov 64.0   ;;  %vm314_vm6 = vcmask 519168   ;;  %s1790_s2 = inlined_call_operand.vmem [shape: bf16[64,64], index: 2, kind: input, shape index: {}]   ;;  %s1791_s3 = inlined_call_operand.vmem [shape: f32[1,64], index: 3, kind: input, shape index: {}, may-alias: {3,5,9}]   ;;  %s1792_s9 = inlined_call_operand.vmem [shape: f32[1,64], index: 9, kind: input, shape index: {}, may-alias: {3,5,9}]   ;;  %s1793_s0 = inlined_call_operand.vmem [shape: bf16[48,64], index: 0, kind: input, shape index: {}]   ;;  %s1794_s1 = inlined_call_operand.vmem [shape: bf16[48,64], index: 1, kind: input, shape index: {}]   ;;  %s1795_s4 = inlined_call_operand.vmem [shape: f32[1,64], index: 4, kind: input, shape index: {}]   ;;  %s1796_s5 = inlined_call_operand.vmem [shape: f32[1,64], index: 5, kind: input, shape index: {}, may-alias: {3,5,9}]   ;;  %s1797_s6 = inlined_call_operand.vmem [shape: bf16[64,256], index: 6, kind: input, shape index: {}]   ;;  %s1798_s8 = inlined_call_operand.vmem [shape: bf16[256,64], index: 8, kind: input, shape index: {}]   ;;  %s1799_s7 = inlined_call_operand.vmem [shape: f32[1,256], index: 7, kind: input, shape index: {}]   ;;  %s1800_s10 = inlined_call_operand.vmem [shape: bf16[48,64], index: 10, kind: output, shape index: {}]  }
   0x1   :  { %v1111_v0 = vld [vmem:[%s1790_s2 + $0x18] sm:$0xff]  ;;  %v1110_v1 = vld [vmem:[%s1790_s2 + $0x10] sm:$0xff]  ;;  %v1109_v2 = vld [vmem:[%s1790_s2 + $0x8] sm:$0xff]  ;;  %1170 = vrcp.f32 %v1232_v48 }
   0x2   :  { %111 = vmatpush.bf16.msra.mxu0 %v1111_v0  ;;  %1153 = vmatpush.bf16.msra.mxu1 %v1111_v0  ;;  %v1108_v3 = vld [vmem:[%s1790_s2] sm:$0xff]  ;;  %v1107_v5 = vld [vmem:[%s1793_s0 + $0x10] sm:$0xff]  ;;  %v1106_v6 = vld [vmem:[%s1793_s0 + $0x8] sm:$0xff] }
   0x3   :  { %v1105_v4 = vld [vmem:[%s1793_s0] sm:$0xff]  ;;  %v1152_v8 = vld [vmem:[%s1794_s1 + $0x10] sm:$0xff]   ;;  %v1151_v31 = vld [vmem:[%s1794_s1 + $0x8] sm:$0xff]  }
   0x4   :  { %v1140_v7 = vld [vmem:[%s1794_s1] sm:$0xff]   ;;  %v1149_v11 = vunpack.c.l.bf16 %v1152_v8  ;;  %v1150_v24 = vunpack.c.h.bf16 %v1152_v8  ;;  %v1145_v36 = vunpack.c.l.bf16 %v1151_v31  ;;  %v1146_v42 = vunpack.c.h.bf16 %v1151_v31  ;;  %v1120_v31 = vld [vmem:[%s1797_s6 + $0x24] sm:$0xf0] }
   0x5   :  { %v1166_v9 = vld [vmem:[%s1791_s3] ss:$0 sm:$0xff]  ;;  %v1141_v10 = vunpack.c.l.bf16 %v1140_v7  ;;  %v1142_v23 = vunpack.c.h.bf16 %v1140_v7  ;;  %v1116_v48 = vld [vmem:[%s1797_s6 + $0x4] sm:$0xf0] }
   0x6   :  { %112 = vmatpush.bf16.msra.mxu0 %v1110_v1  ;;  %1154 = vmatpush.bf16.msra.mxu1 %v1110_v1  ;;  %v1167_v15 = vld [vmem:[%s1792_s9] ss:$0 sm:$0xff] }
   0x7   :  { %v1171_v49 = vpop.eup %1170 }
   0x8   :  { %v170_v50 = vmul.f32 64.0, %v1171_v49  ;;  %vm174_vm1 = vweird.f32 %v1171_v49 }
   0xa   :  { %113 = vmatpush.bf16.msra.mxu0 %v1109_v2  ;;  %1155 = vmatpush.bf16.msra.mxu1 %v1109_v2  ;;  %v171_v51 = vsub.f32 1.0, %v170_v50 }
   0xc   :  { %v172_v52 = vmul.f32 %v1171_v49, %v171_v51  ;;  %v995_v51 = vld [vmem:[%s1797_s6 + $0x8] sm:$0xf0] }
   0xe   :  { %114 = vmatpush.bf16.msra.mxu0 %v1108_v3  ;;  %1156 = vmatpush.bf16.msra.mxu1 %v1108_v3  ;;  %v173_v53 = vadd.f32 %v1171_v49, %v172_v52 }
  0x10   :  { %v1343_v54 = vsel %vm174_vm1, %v1171_v49, %v173_v53  ;;  %v1115_v49 = vld [vmem:[%s1797_s6 + $0x4] sm:$0xf] }
  0x11   :  { %976 = vmatmul.msk.bf16.vlgmr.msra.gmra.mxu0 %vm97_vm0, %v1105_v4  ;;  %978 = vmatmul.msk.bf16.vlgmr.msra.gmra.mxu1 %vm97_vm0, %v1107_v5  ;;  %v998_v53 = vor.u32 %v1115_v49, %v995_v51 }
  0x21   :  { %977 = vmatmul.msk.bf16.gmra.mxu0 %vm97_vm0, %v1106_v6 }
  0x8e   :  { %v116_v12 = vpop.f32.mrf.mxu0  ;;  %v126_v13 = vpop.f32.mrf.mxu1 }
  0x8f   :  { %v117_v14 = vadd.f32 %v1166_v9, %v116_v12  ;;  %v127_v16 = vadd.f32 %v1166_v9, %v126_v13 }
  0x91   :  { %v143_v17 = vadd.f32 %v1141_v10, %v117_v14  ;;  %v1324_v18 = vadd.f32 %v1149_v11, %v127_v16 }
  0x93   :  { %v325_v19 = vadd.f32 %v1167_v15, %v143_v17  ;;  %v329_v20 = vadd.f32 %v1167_v15, %v1324_v18  ;;  %v163_v21 = vsel %vm97_vm0, %v1324_v18, 0.0  ;;  %v151_v22 = vsel %vm97_vm0, %v143_v17, 0.0 }
  0x94   :  { %164 = vadd.xlane.f32.xlu2 %v163_v21  ;;  %152 = vadd.xlane.f32.xlu0 %v151_v22  ;;  %v1017_v22 = vld [vmem:[%s1797_s6 + $0x30] sm:$0xf] }
  0x95   :  { %331 = vst.msk [vmem:[#allocation3] sm:$0xff] %vm97_vm0, %v325_v19 }
  0x96   :  { %335 = vst.msk [vmem:[#allocation3 + $0x20] sm:$0xff] %vm97_vm0, %v329_v20  ;;  %v118_v25 = vpop.f32.mrf.mxu0  ;;  %v128_v26 = vpop.f32.mrf.mxu1 }
  0x97   :  { %v119_v27 = vadd.f32 %v1166_v9, %v118_v25  ;;  %v129_v28 = vadd.f32 %v1166_v9, %v128_v26 }
  0x99   :  { %v144_v29 = vadd.f32 %v1142_v23, %v119_v27  ;;  %v148_v30 = vadd.f32 %v1150_v24, %v129_v28  ;;  %v1122_v23 = vld [vmem:[%s1797_s6 + $0x34] sm:$0xf0]  ;;  %v1121_v24 = vld [vmem:[%s1797_s6 + $0x34] sm:$0xf]  ;;  %v1019_v27 = vld [vmem:[%s1797_s6 + $0x38] sm:$0xf0] }
  0x9a   :  { %v1018_v26 = vor.u32 %v1122_v23, %v1017_v22  ;;  %v1022_v28 = vor.u32 %v1121_v24, %v1019_v27 }
  0x9b   :  { %v326_v32 = vadd.f32 %v1167_v15, %v144_v29  ;;  %v330_v33 = vadd.f32 %v1167_v15, %v148_v30  ;;  %v166_v34 = vsel %vm97_vm0, %v148_v30, 0.0  ;;  %v154_v35 = vsel %vm97_vm0, %v144_v29, 0.0 }
  0x9c   :  { %167 = vadd.xlane.f32.xlu2 %v166_v34  ;;  %155 = vadd.xlane.f32.xlu0 %v154_v35  ;;  %v1011_v34 = vld [vmem:[%s1797_s6 + $0x28] sm:$0xf0] }
  0x9d   :  { %332 = vst.msk [vmem:[#allocation3 + $0x8] sm:$0xff] %vm97_vm0, %v326_v32  ;;  %426 = vmatpush.bf16.msrb.mxu1 %v1018_v26  ;;  %450 = vmatpush.bf16.msra.mxu2 %v1022_v28  ;;  %v1119_v32 = vld [vmem:[%s1797_s6 + $0x24] sm:$0xf] }
  0x9e   :  { %336 = vst.msk [vmem:[#allocation3 + $0x28] sm:$0xff] %vm97_vm0, %v330_v33  ;;  %v121_v37 = vpop.f32.mrf.mxu0  ;;  %v1014_v35 = vor.u32 %v1119_v32, %v1011_v34 }
  0x9f   :  { %v122_v38 = vadd.f32 %v1166_v9, %v121_v37  ;;  %v1001_v37 = vld [vmem:[%s1797_s6 + $0x10] sm:$0xf] }
  0xa1   :  { %v145_v39 = vadd.f32 %v1145_v36, %v122_v38  ;;  %451 = vmatpush.bf16.msra.mxu2 %v1014_v35  ;;  %v1118_v38 = vld [vmem:[%s1797_s6 + $0x14] sm:$0xf0] }
  0xa3   :  { %v327_v40 = vadd.f32 %v1167_v15, %v145_v39  ;;  %v157_v41 = vsel %vm97_vm0, %v145_v39, 0.0 }
  0xa4   :  { %158 = vadd.xlane.f32.xlu1 %v157_v41  ;;  %v1002_v41 = vor.u32 %v1118_v38, %v1001_v37 }
  0xa5   :  { %333 = vst.msk [vmem:[#allocation3 + $0x10] sm:$0xff] %vm97_vm0, %v327_v40 }
  0xa6   :  { %v123_v43 = vpop.f32.mrf.mxu0 }
  0xa7   :  { %v124_v44 = vadd.f32 %v1166_v9, %v123_v43 }
  0xa9   :  { %v146_v45 = vadd.f32 %v1146_v42, %v124_v44  ;;  %v1003_v42 = vld [vmem:[%s1797_s6 + $0x18] sm:$0xf0] }
  0xab   :  { %v328_v46 = vadd.f32 %v1167_v15, %v146_v45  ;;  %v160_v47 = vsel %vm97_vm0, %v146_v45, 0.0 }
  0xac   :  { %161 = vadd.xlane.f32.xlu1 %v160_v47  ;;  %v993_v47 = vld [vmem:[%s1797_s6] sm:$0xf] }
  0xad   :  { %334 = vst.msk [vmem:[#allocation3 + $0x18] sm:$0xff] %vm97_vm0, %v328_v46  ;;  %v994_v50 = vor.u32 %v1116_v48, %v993_v47 }
 0x107   :  { %v153_v55 = vpop.xlane.xlu0 %152  ;;  %v165_v59 = vpop.xlane.xlu2 %164 }
 0x108   :  { %v176_v56 = vmul.f32 %v1343_v54, %v153_v55  ;;  %v180_v63 = vmul.f32 %v1343_v54, %v165_v59 }
 0x10a   :  { %v1346_v57 = vsub.f32 %v143_v17, %v176_v56  ;;  %v1358_v2 = vsub.f32 %v1324_v18, %v180_v63 }
 0x10c   :  { %v188_v58 = vmul.f32 %v1346_v57, %v1346_v57  ;;  %v192_v9 = vmul.f32 %v1358_v2, %v1358_v2 }
 0x10e   :  { %v194_v60 = vsel %vm97_vm0, %v188_v58, 0.0  ;;  %v206_v13 = vsel %vm97_vm0, %v192_v9, 0.0  ;;  %v1442_v9 = vld [vmem:[%s1796_s5] ss:$0 sm:$0xff] }
 0x10f   :  { %195 = vadd.xlane.f32.xlu0 %v194_v60  ;;  %v156_v61 = vpop.xlane.xlu0 %155  ;;  %v168_v4 = vpop.xlane.xlu2 %167 }
 0x110   :  { %v177_v62 = vmul.f32 %v1343_v54, %v156_v61  ;;  %v181_v7 = vmul.f32 %v1343_v54, %v168_v4 }
 0x112   :  { %v1353_v0 = vsub.f32 %v144_v29, %v177_v62  ;;  %v1369_v11 = vsub.f32 %v148_v30, %v181_v7  ;;  %v1009_v30 = vld [vmem:[%s1797_s6 + $0x20] sm:$0xf] }
 0x113   :  { %v1010_v33 = vor.u32 %v1120_v31, %v1009_v30 }
 0x114   :  { %v189_v1 = vmul.f32 %v1353_v0, %v1353_v0  ;;  %v193_v17 = vmul.f32 %v1369_v11, %v1369_v11 }
 0x115   :  { %427 = vmatpush.bf16.msrb.mxu1 %v1010_v33 }
 0x116   :  { %v197_v3 = vsel %vm97_vm0, %v189_v1, 0.0  ;;  %v209_v19 = vsel %vm97_vm0, %v193_v17, 0.0 }
 0x117   :  { %v159_v5 = vpop.xlane.xlu1 %158  ;;  %198 = vadd.xlane.f32.xlu1 %v197_v3 }
 0x118   :  { %v178_v6 = vmul.f32 %v1343_v54, %v159_v5  ;;  %v1437_v5 = vld [vmem:[%s1795_s4] ss:$0 sm:$0xff] }
 0x119   :  { %428 = vmatpush.bf16.msrb.mxu1 %v1002_v41 }
 0x11a   :  { %v1363_v8 = vsub.f32 %v145_v39, %v178_v6  ;;  %v1117_v39 = vld [vmem:[%s1797_s6 + $0x14] sm:$0xf] }
 0x11b   :  { %v1006_v43 = vor.u32 %v1117_v39, %v1003_v42 }
 0x11c   :  { %v190_v10 = vmul.f32 %v1363_v8, %v1363_v8 }
 0x11d   :  { %452 = vmatpush.bf16.msra.mxu2 %v1006_v43  ;;  %429 = vmatpush.bf16.msrb.mxu1 %v994_v50 }
 0x11e   :  { %v200_v12 = vsel %vm97_vm0, %v190_v10, 0.0 }
 0x11f   :  { %201 = vadd.xlane.f32.xlu2 %v200_v12  ;;  %v162_v14 = vpop.xlane.xlu1 %161  ;;  %207 = vadd.xlane.f32.xlu1 %v206_v13 }
 0x120   :  { %v179_v15 = vmul.f32 %v1343_v54, %v162_v14 }
 0x121   :  { %453 = vmatpush.bf16.msra.mxu2 %v998_v53 }
 0x122   :  { %v1374_v16 = vsub.f32 %v146_v45, %v179_v15 }
 0x124   :  { %v191_v18 = vmul.f32 %v1374_v16, %v1374_v16 }
 0x126   :  { %v203_v20 = vsel %vm97_vm0, %v191_v18, 0.0 }
 0x127   :  { %210 = vadd.xlane.f32.xlu2 %v209_v19  ;;  %204 = vadd.xlane.f32.xlu0 %v203_v20 }
 0x182   :  { %v196_v21 = vpop.xlane.xlu0 %195 }
 0x183   :  { %v212_v25 = vmul.f32 %v196_v21, %v1343_v54 }
 0x185   :  { %v218_v29 = vadd.f32 1e-05, %v212_v25 }
 0x187   :  { %1172 = vrsqrt.f32 %v218_v29  ;;  %vm230_vm3 = vweird.f32 %v218_v29 }
 0x18a   :  { %v199_v36 = vpop.xlane.xlu1 %198 }
 0x18b   :  { %v213_v40 = vmul.f32 %v199_v36, %v1343_v54 }
 0x18d   :  { %v1173_v44 = vpop.eup %1172  ;;  %v219_v45 = vadd.f32 1e-05, %v213_v40 }
 0x18e   :  { %v225_v46 = vmul.f32 %v1173_v44, %v218_v29  ;;  %vm231_vm2 = vweird.f32 %v1173_v44 }
 0x18f   :  { %1174 = vrsqrt.f32 %v219_v45  ;;  %vm232_vm4 = vmor %vm230_vm3, %vm231_vm2  ;;  %vm240_vm7 = vweird.f32 %v219_v45 }
 0x190   :  { %v226_v52 = vmul.f32 %v1173_v44, %v225_v46 }
 0x192   :  { %v227_v55 = vmul.f32 0.5, %v226_v52  ;;  %v202_v56 = vpop.xlane.xlu2 %201  ;;  %v208_v58 = vpop.xlane.xlu1 %207 }
 0x193   :  { %v214_v59 = vmul.f32 %v202_v56, %v1343_v54  ;;  %v216_v60 = vmul.f32 %v208_v58, %v1343_v54 }
 0x194   :  { %v228_v61 = vsub.f32 1.5, %v227_v55 }
 0x195   :  { %v1175_v62 = vpop.eup %1174  ;;  %v220_v63 = vadd.f32 1e-05, %v214_v59  ;;  %v222_v1 = vadd.f32 1e-05, %v216_v60 }
 0x196   :  { %v229_v3 = vmul.f32 %v1173_v44, %v228_v61  ;;  %v235_v4 = vmul.f32 %v1175_v62, %v219_v45  ;;  %vm241_vm5 = vweird.f32 %v1175_v62 }
 0x197   :  { %1176 = vrsqrt.f32 %v220_v63  ;;  %vm242_vm8 = vmor %vm240_vm7, %vm241_vm5  ;;  %vm250_vm11 = vweird.f32 %v220_v63  ;;  %vm270_vm13 = vweird.f32 %v222_v1 }
 0x198   :  { %v233_v6 = vsel %vm232_vm4, %v1173_v44, %v229_v3  ;;  %v236_v7 = vmul.f32 %v1175_v62, %v235_v4  ;;  %1178 = vrsqrt.f32 %v222_v1 }
 0x199   :  { %v284_v10 = vmul.f32 %v233_v6, %v1346_v57 }
 0x19a   :  { %v237_v12 = vmul.f32 0.5, %v236_v7  ;;  %v211_v13 = vpop.xlane.xlu2 %210  ;;  %v205_v14 = vpop.xlane.xlu0 %204 }
 0x19b   :  { %v293_v15 = vmul.f32 %v1437_v5, %v284_v10  ;;  %v217_v17 = vmul.f32 %v211_v13, %v1343_v54  ;;  %v215_v18 = vmul.f32 %v205_v14, %v1343_v54  ;;  %v1138_v14 = vld [vmem:[%s1798_s8 + $0x78] sm:$0xff] }
 0x19c   :  { %v238_v19 = vsub.f32 1.5, %v237_v12  ;;  %886 = vmatpush.bf16.msrb.mxu0 %v1138_v14  ;;  %1157 = vmatpush.bf16.msrb.mxu2 %v1138_v14 }
 0x19d   :  { %v1177_v20 = vpop.eup %1176  ;;  %v302_v21 = vadd.f32 %v1442_v9, %v293_v15  ;;  %v223_v22 = vadd.f32 1e-05, %v217_v17  ;;  %v221_v23 = vadd.f32 1e-05, %v215_v18  ;;  %v1128_v15 = vld [vmem:[%s1798_s8 + $0x28] sm:$0xff]  ;;  %v1137_v18 = vld [vmem:[%s1798_s8 + $0x70] sm:$0xff] }
 0x19e   :  { %v1179_v24 = vpop.eup %1178  ;;  %v239_v25 = vmul.f32 %v1175_v62, %v238_v19  ;;  %v245_v57 = vmul.f32 %v1177_v20, %v220_v63  ;;  %vm251_vm9 = vweird.f32 %v1177_v20  ;;  %v351_v17 = vld [vmem:[%s1799_s7] sm:$0x3] }
 0x19f   :  { %v308_v26 = vpack.c.bf16 %v302_v21, %v302_v21  ;;  %v265_v27 = vmul.f32 %v1179_v24, %v222_v1  ;;  %1180 = vrsqrt.f32 %v223_v22  ;;  %vm271_vm10 = vweird.f32 %v1179_v24  ;;  %vm252_vm12 = vmor %vm250_vm11, %vm251_vm9  ;;  %v1127_v19 = vld [vmem:[%s1798_s8 + $0x20] sm:$0xff]  ;;  %v1136_v21 = vld [vmem:[%s1798_s8 + $0x68] sm:$0xff] }
 0x1a0   :  { %v243_v28 = vsel %vm242_vm8, %v1175_v62, %v239_v25  ;;  %v246_v29 = vmul.f32 %v1177_v20, %v245_v57  ;;  %1182 = vrsqrt.f32 %v221_v23  ;;  %vm272_vm14 = vmor %vm270_vm13, %vm271_vm10  ;;  %vm280_vm2 = vweird.f32 %v223_v22  ;;  %887 = vmatpush.bf16.msrb.mxu0 %v1137_v18  ;;  %1158 = vmatpush.bf16.msrb.mxu2 %v1137_v18  ;;  %v1126_v57 = vld [vmem:[%s1798_s8 + $0x18] sm:$0xff] }
 0x1a1   :  { %315 = vst.msk [vmem:[#allocation2] sm:$0xf] %vm314_vm6, %v308_v26  ;;  %v285_v54 = vmul.f32 %v243_v28, %v1353_v0  ;;  %v266_v30 = vmul.f32 %v1179_v24, %v265_v27  ;;  %vm260_vm4 = vweird.f32 %v221_v23  ;;  %v1506_v25 = vperm.slane %v351_v17, 1  ;;  %v1135_v28 = vld [vmem:[%s1798_s8 + $0x60] sm:$0xff] }
 0x1a2   :  { %v247_v31 = vmul.f32 0.5, %v246_v29 }
 0x1a3   :  { %v294_v32 = vmul.f32 %v1437_v5, %v285_v54  ;;  %v267_v33 = vmul.f32 0.5, %v266_v30  ;;  %v1125_v30 = vld [vmem:[%s1798_s8 + $0x10] sm:$0xff] }
 0x1a4   :  { %v248_v34 = vsub.f32 1.5, %v247_v31  ;;  %888 = vmatpush.bf16.msrb.mxu0 %v1136_v21  ;;  %1159 = vmatpush.bf16.msrb.mxu2 %v1136_v21 }
 0x1a5   :  { %v1181_v35 = vpop.eup %1180  ;;  %v303_v36 = vadd.f32 %v1442_v9, %v294_v32  ;;  %v268_v37 = vsub.f32 1.5, %v267_v33  ;;  %v1134_v33 = vld [vmem:[%s1798_s8 + $0x58] sm:$0xff] }
 0x1a6   :  { %v1183_v38 = vpop.eup %1182  ;;  %v249_v39 = vmul.f32 %v1177_v20, %v248_v34  ;;  %v275_v40 = vmul.f32 %v1181_v35, %v223_v22  ;;  %vm281_vm15 = vweird.f32 %v1181_v35 }
 0x1a7   :  { %v309_v41 = vpack.c.bf16 %v303_v36, %v303_v36  ;;  %v269_v42 = vmul.f32 %v1179_v24, %v268_v37  ;;  %v255_v0 = vmul.f32 %v1183_v38, %v221_v23  ;;  %vm261_vm1 = vweird.f32 %v1183_v38  ;;  %vm282_vm3 = vmor %vm280_vm2, %vm281_vm15  ;;  %v1124_v36 = vld [vmem:[%s1798_s8 + $0x8] sm:$0xff] }
 0x1a8   :  { %v253_v43 = vsel %vm252_vm12, %v1177_v20, %v249_v39  ;;  %v276_v44 = vmul.f32 %v1181_v35, %v275_v40  ;;  %vm262_vm5 = vmor %vm260_vm4, %vm261_vm1  ;;  %v1497_v20 = vperm.slane %v351_v17, 0  ;;  %889 = vmatpush.bf16.msrb.mxu0 %v1135_v28  ;;  %1160 = vmatpush.bf16.msrb.mxu2 %v1135_v28 }
 0x1a9   :  { %316 = vst.msk [vmem:[#allocation2 + $0x4] sm:$0xf] %vm314_vm6, %v309_v41  ;;  %v286_v45 = vmul.f32 %v253_v43, %v1363_v8  ;;  %v273_v46 = vsel %vm272_vm14, %v1179_v24, %v269_v42  ;;  %v256_v47 = vmul.f32 %v1183_v38, %v255_v0  ;;  %v1133_v41 = vld [vmem:[%s1798_s8 + $0x50] sm:$0xff]  ;;  %v1123_v0 = vld [vmem:[%s1798_s8] sm:$0xff] }
 0x1aa   :  { %v288_v48 = vmul.f32 %v273_v46, %v1358_v2  ;;  %v277_v49 = vmul.f32 0.5, %v276_v44  ;;  %v1132_v46 = vld [vmem:[%s1798_s8 + $0x48] sm:$0xff] }
 0x1ab   :  { %v295_v50 = vmul.f32 %v1437_v5, %v286_v45  ;;  %v257_v51 = vmul.f32 0.5, %v256_v47 }
 0x1ac   :  { %v297_v52 = vmul.f32 %v1437_v5, %v288_v48  ;;  %v278_v53 = vsub.f32 1.5, %v277_v49  ;;  %890 = vmatpush.bf16.msrb.mxu0 %v1134_v33  ;;  %1161 = vmatpush.bf16.msrb.mxu2 %v1134_v33 }
 0x1ad   :  { %v304_v55 = vadd.f32 %v1442_v9, %v295_v50  ;;  %v258_v56 = vsub.f32 1.5, %v257_v51 }
 0x1ae   :  { %v306_v58 = vadd.f32 %v1442_v9, %v297_v52  ;;  %v279_v59 = vmul.f32 %v1181_v35, %v278_v53 }
 0x1af   :  { %v310_v8 = vpack.c.bf16 %v304_v55, %v304_v55  ;;  %v259_v60 = vmul.f32 %v1183_v38, %v258_v56 }
 0x1b0   :  { %v312_v2 = vpack.c.bf16 %v306_v58, %v306_v58  ;;  %v283_v61 = vsel %vm282_vm3, %v1181_v35, %v279_v59  ;;  %v1112_v62 = vld [vmem:[#allocation2] sm:$0xff]  ;;  %891 = vmatpush.bf16.msrb.mxu0 %v1133_v41  ;;  %1162 = vmatpush.bf16.msrb.mxu2 %v1133_v41 }
 0x1b1   :  { %317 = vst.msk [vmem:[#allocation2 + $0x8] sm:$0xf] %vm314_vm6, %v310_v8  ;;  %v289_v63 = vmul.f32 %v283_v61, %v1369_v11  ;;  %v263_v1 = vsel %vm262_vm5, %v1183_v38, %v259_v60  ;;  %1023 = vmatmul.msk.bf16.vlgmr.msrb.gmra.mxu1 %vm97_vm0, %v1112_v62  ;;  %1026 = vmatmul.msk.bf16.vlgmr.msra.gmra.mxu2 %vm97_vm0, %v1112_v62  ;;  %v1131_v62 = vld [vmem:[%s1798_s8 + $0x40] sm:$0xff] }
 0x1b2   :  { %319 = vst.msk [vmem:[#allocation2 + $0x10] sm:$0xf] %vm314_vm6, %v312_v2  ;;  %v287_v3 = vmul.f32 %v263_v1, %v1374_v16 }
 0x1b3   :  { %v298_v4 = vmul.f32 %v1437_v5, %v289_v63 }
 0x1b4   :  { %v296_v6 = vmul.f32 %v1437_v5, %v287_v3  ;;  %v1130_v5 = vld [vmem:[%s1798_s8 + $0x38] sm:$0xff]  ;;  %892 = vmatpush.bf16.msrb.mxu0 %v1132_v46  ;;  %1163 = vmatpush.bf16.msrb.mxu2 %v1132_v46 }
 0x1b5   :  { %v307_v7 = vadd.f32 %v1442_v9, %v298_v4  ;;  %862 = vmatpush.bf16.msra.mxu3 %v1130_v5 }
 0x1b6   :  { %v305_v10 = vadd.f32 %v1442_v9, %v296_v6  ;;  %v1129_v9 = vld [vmem:[%s1798_s8 + $0x30] sm:$0xff] }
 0x1b7   :  { %v313_v12 = vpack.c.bf16 %v307_v7, %v307_v7 }
 0x1b8   :  { %v311_v13 = vpack.c.bf16 %v305_v10, %v305_v10  ;;  %893 = vmatpush.bf16.msrb.mxu0 %v1131_v62  ;;  %1164 = vmatpush.bf16.msrb.mxu2 %v1131_v62 }
 0x1b9   :  { %320 = vst.msk [vmem:[#allocation2 + $0x14] sm:$0xf] %vm314_vm6, %v313_v12  ;;  %863 = vmatpush.bf16.msra.mxu3 %v1129_v9 }
 0x1ba   :  { %318 = vst.msk [vmem:[#allocation2 + $0xc] sm:$0xf] %vm314_vm6, %v311_v13 }
 0x1bd   :  { %864 = vmatpush.bf16.msra.mxu3 %v1128_v15 }
 0x1c0   :  { %v1114_v16 = vld [vmem:[#allocation2 + $0x10] sm:$0xff] }
 0x1c1   :  { %v1113_v11 = vld [vmem:[#allocation2 + $0x8] sm:$0xff]  ;;  %865 = vmatpush.bf16.msra.mxu3 %v1127_v19 }
 0x1c2   :  { %1024 = vmatmul.msk.bf16.gmra.mxu1 %vm97_vm0, %v1113_v11  ;;  %1027 = vmatmul.msk.bf16.gmra.mxu2 %vm97_vm0, %v1113_v11 }
 0x1c5   :  { %866 = vmatpush.bf16.msra.mxu3 %v1126_v57 }
 0x1c9   :  { %867 = vmatpush.bf16.msra.mxu3 %v1125_v30 }
 0x1cd   :  { %868 = vmatpush.bf16.msra.mxu3 %v1124_v36 }
 0x1d1   :  { %869 = vmatpush.bf16.msra.mxu3 %v1123_v0 }
 0x1d2   :  { %1025 = vmatmul.msk.bf16.gmra.mxu1 %vm97_vm0, %v1114_v16  ;;  %1028 = vmatmul.msk.bf16.gmra.mxu2 %vm97_vm0, %v1114_v16 }
 0x22e   :  { %v431_v22 = vpop.f32.mrf.mxu1 }
 0x22f   :  { %v1503_v23 = vadd.f32 %v431_v22, %v1497_v20 }
 0x231   :  { %v1029_v24 = vmul.f32 -1.702, %v1503_v23 }
 0x233   :  { %v494_v26 = vmul.f32 1.442695, %v1029_v24 }
 0x234   :  { %v455_v27 = vpop.f32.mrf.mxu2 }
 0x235   :  { %1184 = vpow2.f32 %v494_v26  ;;  %v1515_v29 = vadd.f32 %v455_v27, %v1506_v25 }
 0x236   :  { %v433_v54 = vpop.f32.mrf.mxu1 }
 0x237   :  { %v1030_v31 = vmul.f32 -1.702, %v1515_v29  ;;  %v1522_v32 = vadd.f32 %v433_v54, %v1497_v20 }
 0x239   :  { %v496_v34 = vmul.f32 1.442695, %v1030_v31  ;;  %v1031_v35 = vmul.f32 -1.702, %v1522_v32 }
 0x23b   :  { %v1185_v37 = vpop.eup %1184  ;;  %1186 = vpow2.f32 %v496_v34  ;;  %v498_v38 = vmul.f32 1.442695, %v1031_v35 }
 0x23c   :  { %v1531_v39 = vadd.f32 1.0, %v1185_v37  ;;  %v457_v40 = vpop.f32.mrf.mxu2 }
 0x23d   :  { %1188 = vpow2.f32 %v498_v38  ;;  %v1537_v42 = vadd.f32 %v457_v40, %v1506_v25 }
 0x23e   :  { %1190 = vrcp.f32 %v1531_v39  ;;  %v541_v60 = vand.u32 2147483648, %v1531_v39  ;;  %v539_v10 = vand.u32 2147483647, %v1531_v39  ;;  %vm535_vm7 = vweird.f32 %v1531_v39 }
 0x23f   :  { %v1032_v43 = vmul.f32 -1.702, %v1537_v42  ;;  %v436_v44 = vpop.f32.mrf.mxu1 }
 0x240   :  { %v1545_v45 = vadd.f32 %v436_v44, %v1497_v20  ;;  %v542_v13 = vor.u32 1.1754944e-38, %v541_v60  ;;  %vm1588_vm10 = vcmp.eq.f32.partialorder %v539_v10, 8.507059e+37 }
 0x241   :  { %v1187_v47 = vpop.eup %1186  ;;  %v500_v48 = vmul.f32 1.442695, %v1032_v43 }
 0x242   :  { %v1550_v49 = vadd.f32 1.0, %v1187_v47  ;;  %v1033_v50 = vmul.f32 -1.702, %v1545_v45 }
 0x243   :  { %v1189_v51 = vpop.eup %1188  ;;  %1192 = vpow2.f32 %v500_v48 }
 0x244   :  { %v1553_v52 = vpop.eup %1190  ;;  %1194 = vrcp.f32 %v1550_v49  ;;  %v1558_v55 = vadd.f32 1.0, %v1189_v51  ;;  %v502_v56 = vmul.f32 1.442695, %v1033_v50  ;;  %vm550_vm8 = vweird.f32 %v1550_v49 }
 0x245   :  { %v531_v53 = vmul.f32 %v1553_v52, %v1531_v39  ;;  %v460_v58 = vpop.f32.mrf.mxu2  ;;  %vm536_vm9 = vweird.f32 %v1553_v52  ;;  %v554_v17 = vand.u32 2147483647, %v1550_v49  ;;  %v556_v18 = vand.u32 2147483648, %v1550_v49 }
 0x246   :  { %v1561_v59 = vadd.f32 %v460_v58, %v1506_v25  ;;  %1196 = vrcp.f32 %v1558_v55  ;;  %v569_v24 = vand.u32 2147483647, %v1558_v55  ;;  %v571_v57 = vand.u32 2147483648, %v1558_v55  ;;  %vm1612_vm13 = vmor %vm535_vm7, %vm536_vm9 }
 0x247   :  { %v438_v8 = vpop.f32.mrf.mxu1  ;;  %1198 = vpow2.f32 %v502_v56  ;;  %v532_v1 = vsub.f32 1.0, %v531_v53  ;;  %v557_v35 = vor.u32 1.1754944e-38, %v556_v18  ;;  %vm565_vm14 = vweird.f32 %v1558_v55 }
 0x248   :  { %v1034_v2 = vmul.f32 -1.702, %v1561_v59  ;;  %v1567_v61 = vadd.f32 %v438_v8, %v1497_v20  ;;  %vm1617_vm15 = vcmp.eq.f32.partialorder %v569_v24, 8.507059e+37  ;;  %v572_v46 = vor.u32 1.1754944e-38, %v571_v57 }
 0x249   :  { %v1193_v63 = vpop.eup %1192  ;;  %v533_v16 = vmul.f32 %v1553_v52, %v532_v1  ;;  %vm555_vm4 = vcmp.eq.f32.partialorder %v554_v17, 8.507059e+37 }
 0x24a   :  { %v1572_v3 = vpop.eup %1194  ;;  %v1574_v4 = vadd.f32 1.0, %v1193_v63  ;;  %v504_v6 = vmul.f32 1.442695, %v1034_v2  ;;  %v1035_v7 = vmul.f32 -1.702, %v1567_v61 }
 0x24b   :  { %v546_v12 = vmul.f32 %v1572_v3, %v1550_v49  ;;  %v534_v31 = vadd.f32 %v1553_v52, %v533_v16  ;;  %vm551_vm11 = vweird.f32 %v1572_v3 }
 0x24c   :  { %1200 = vrcp.f32 %v1574_v4  ;;  %v1197_v11 = vpop.eup %1196  ;;  %v506_v9 = vmul.f32 1.442695, %v1035_v7  ;;  %vm1625_vm1 = vmor %vm550_vm8, %vm551_vm11  ;;  %v584_v47 = vand.u32 2147483647, %v1574_v4  ;;  %v586_v53 = vand.u32 2147483648, %v1574_v4 }
 0x24d   :  { %v547_v5 = vsub.f32 1.0, %v546_v12  ;;  %1202 = vpow2.f32 %v504_v6  ;;  %v462_v14 = vpop.f32.mrf.mxu2  ;;  %v1199_v15 = vpop.eup %1198  ;;  %v561_v19 = vmul.f32 %v1197_v11, %v1558_v55  ;;  %vm566_vm12 = vweird.f32 %v1197_v11 }
 0x24e   :  { %v1595_v26 = vadd.f32 1.0, %v1199_v15  ;;  %1204 = vpow2.f32 %v506_v9  ;;  %v1598_v54 = vadd.f32 %v462_v14, %v1506_v25  ;;  %v538_v50 = vsel %vm1612_vm13, %v1553_v52, %v534_v31  ;;  %vm567_vm2 = vmor %vm565_vm14, %vm566_vm12 }
 0x24f   :  { %v548_v22 = vmul.f32 %v1572_v3, %v547_v5  ;;  %v441_v27 = vpop.f32.mrf.mxu1  ;;  %v562_v28 = vsub.f32 1.0, %v561_v19  ;;  %v543_v1 = vsel %vm1588_vm10, %v542_v13, %v538_v50  ;;  %vm580_vm5 = vweird.f32 %v1574_v4 }
 0x250   :  { %v1601_v30 = vadd.f32 %v441_v27, %v1497_v20  ;;  %1206 = vrcp.f32 %v1595_v26  ;;  %v1036_v37 = vmul.f32 -1.702, %v1598_v54  ;;  %vm585_vm7 = vcmp.eq.f32.partialorder %v584_v47, 8.507059e+37 }
 0x251   :  { %v549_v33 = vadd.f32 %v1572_v3, %v548_v22  ;;  %v563_v36 = vmul.f32 %v1197_v11, %v562_v28  ;;  %v710_v14 = vmul.f32 %v543_v1, %v1503_v23  ;;  %vm595_vm9 = vweird.f32 %v1595_v26 }
 0x252   :  { %v1201_v34 = vpop.eup %1200  ;;  %v1037_v43 = vmul.f32 -1.702, %v1601_v30  ;;  %v508_v8 = vmul.f32 1.442695, %v1036_v37  ;;  %v599_v40 = vand.u32 2147483647, %v1595_v26 }
 0x253   :  { %v1203_v38 = vpop.eup %1202  ;;  %v576_v0 = vmul.f32 %v1201_v34, %v1574_v4  ;;  %v564_v39 = vadd.f32 %v1197_v11, %v563_v36  ;;  %v553_v51 = vsel %vm1625_vm1, %v1572_v3, %v549_v33  ;;  %vm581_vm3 = vweird.f32 %v1201_v34 }
 0x254   :  { %v1630_v48 = vadd.f32 1.0, %v1203_v38  ;;  %v1205_v56 = vpop.eup %1204  ;;  %v510_v63 = vmul.f32 1.442695, %v1037_v43  ;;  %v558_v7 = vsel %vm555_vm4, %v557_v35, %v553_v51  ;;  %vm582_vm8 = vmor %vm580_vm5, %vm581_vm3  ;;  %v601_v41 = vand.u32 2147483648, %v1595_v26 }
 0x255   :  { %v577_v49 = vsub.f32 1.0, %v576_v0  ;;  %v465_v55 = vpop.f32.mrf.mxu2  ;;  %v568_v58 = vsel %vm567_vm2, %v1197_v11, %v564_v39  ;;  %v1645_v62 = vadd.f32 1.0, %v1205_v56  ;;  %v587_v11 = vor.u32 1.1754944e-38, %v586_v53 }
 0x256   :  { %1208 = vrcp.f32 %v1630_v48  ;;  %v1641_v60 = vpop.eup %1206  ;;  %v573_v52 = vsel %vm1617_vm15, %v572_v46, %v568_v58  ;;  %v1656_v4 = vadd.f32 %v465_v55, %v1506_v25  ;;  %v711_v15 = vmul.f32 %v558_v7, %v1515_v29 }
 0x257   :  { %v578_v2 = vmul.f32 %v1201_v34, %v577_v49  ;;  %v591_v3 = vmul.f32 %v1641_v60, %v1595_v26  ;;  %v443_v6 = vpop.f32.mrf.mxu1  ;;  %1210 = vrcp.f32 %v1645_v62  ;;  %v712_v12 = vmul.f32 %v573_v52, %v1522_v32 }
 0x258   :  { %1212 = vpow2.f32 %v508_v8  ;;  %v1659_v5 = vadd.f32 %v443_v6, %v1497_v20  ;;  %v1038_v21 = vmul.f32 -1.702, %v1656_v4  ;;  %vm596_vm10 = vweird.f32 %v1641_v60 }
 0x259   :  { %v579_v10 = vadd.f32 %v1201_v34, %v578_v2  ;;  %v592_v16 = vsub.f32 1.0, %v591_v3  ;;  %1214 = vpow2.f32 %v510_v63  ;;  %v728_v20 = vpack.c.bf16 %v712_v12, %v710_v14  ;;  %vm1692_vm12 = vmor %vm595_vm9, %vm596_vm10 }
 0x25a   :  { %v1039_v22 = vmul.f32 -1.702, %v1659_v5  ;;  %v512_v57 = vmul.f32 1.442695, %v1038_v21  ;;  %v631_v0 = vand.u32 2147483648, %v1645_v62  ;;  %vm625_vm13 = vweird.f32 %v1645_v62 }
 0x25b   :  { %v583_v13 = vsel %vm582_vm8, %v1201_v34, %v579_v10  ;;  %v593_v18 = vmul.f32 %v1641_v60, %v592_v16  ;;  %870 = vmatmul.bf16.vlgmr.msra.gmra.mxu3 %v728_v20  ;;  %v629_v44 = vand.u32 2147483647, %v1645_v62  ;;  %vm600_vm14 = vcmp.eq.f32.partialorder %v599_v40, 8.507059e+37 }
 0x25c   :  { %v1661_v9 = vpop.eup %1208  ;;  %v588_v32 = vsel %vm585_vm7, %v587_v11, %v583_v13  ;;  %1216 = vpow2.f32 %v512_v57  ;;  %v602_v49 = vor.u32 1.1754944e-38, %v601_v41  ;;  %v632_v26 = vor.u32 1.1754944e-38, %v631_v0 }
 0x25d   :  { %v713_v17 = vmul.f32 %v588_v32, %v1537_v42  ;;  %v606_v19 = vmul.f32 %v1661_v9, %v1630_v48  ;;  %v1211_v24 = vpop.eup %1210  ;;  %v467_v27 = vpop.f32.mrf.mxu2  ;;  %v514_v42 = vmul.f32 1.442695, %v1039_v22  ;;  %v594_v33 = vadd.f32 %v1641_v60, %v593_v18 }
 0x25e   :  { %v1213_v23 = vpop.eup %1212  ;;  %v621_v29 = vmul.f32 %v1211_v24, %v1645_v62  ;;  %v1680_v38 = vadd.f32 %v467_v27, %v1506_v25  ;;  %vm626_vm11 = vweird.f32 %v1211_v24  ;;  %vm611_vm1 = vweird.f32 %v1661_v9 }
 0x25f   :  { %v729_v28 = vpack.c.bf16 %v713_v17, %v711_v15  ;;  %v1215_v31 = vpop.eup %1214  ;;  %v607_v34 = vsub.f32 1.0, %v606_v19  ;;  %v1675_v35 = vadd.f32 1.0, %v1213_v23  ;;  %1218 = vpow2.f32 %v514_v42  ;;  %vm627_vm15 = vmor %vm625_vm13, %vm626_vm11 }
 0x260   :  { %v622_v36 = vsub.f32 1.0, %v621_v29  ;;  %v1677_v37 = vadd.f32 1.0, %v1215_v31  ;;  %v598_v46 = vsel %vm1692_vm12, %v1641_v60, %v594_v33  ;;  %v1040_v50 = vmul.f32 -1.702, %v1680_v38 }
 0x261   :  { %894 = vmatmul.bf16.vlgmr.msrb.gmra.mxu0 %v729_v28  ;;  %1220 = vrcp.f32 %v1675_v35  ;;  %v608_v39 = vmul.f32 %v1661_v9, %v607_v34  ;;  %vm630_vm2 = vcmp.eq.f32.partialorder %v629_v44, 8.507059e+37  ;;  %v603_v8 = vsel %vm600_vm14, %v602_v49, %v598_v46 }
 0x262   :  { %v623_v43 = vmul.f32 %v1211_v24, %v622_v36  ;;  %1222 = vrcp.f32 %v1677_v37  ;;  %v1217_v51 = vpop.eup %1216  ;;  %v516_v3 = vmul.f32 1.442695, %v1040_v50  ;;  %vm610_vm3 = vweird.f32 %v1630_v48 }
 0x263   :  { %v1703_v56 = vadd.f32 1.0, %v1217_v51  ;;  %v609_v60 = vadd.f32 %v1661_v9, %v608_v39  ;;  %v616_v6 = vand.u32 2147483648, %v1630_v48  ;;  %v714_v10 = vmul.f32 %v603_v8, %v1545_v45  ;;  %vm1720_vm4 = vmor %vm610_vm3, %vm611_vm1 }
 0x264   :  { %v624_v47 = vadd.f32 %v1211_v24, %v623_v43  ;;  %v644_v13 = vand.u32 2147483647, %v1675_v35  ;;  %v646_v14 = vand.u32 2147483648, %v1675_v35  ;;  %vm640_vm8 = vweird.f32 %v1675_v35 }
 0x265   :  { %v1219_v53 = vpop.eup %1218  ;;  %1224 = vrcp.f32 %v1703_v56  ;;  %v613_v16 = vsel %vm1720_vm4, %v1661_v9, %v609_v60  ;;  %v617_v17 = vor.u32 1.1754944e-38, %v616_v6  ;;  %v661_v31 = vand.u32 2147483648, %v1677_v37 }
 0x266   :  { %v628_v55 = vsel %vm627_vm15, %v1211_v24, %v624_v47  ;;  %v1706_v2 = vadd.f32 1.0, %v1219_v53  ;;  %v647_v21 = vor.u32 1.1754944e-38, %v646_v14  ;;  %vm645_vm10 = vcmp.eq.f32.partialorder %v644_v13, 8.507059e+37  ;;  %v722_v13 = vld [vmem:[#allocation3] sm:$0xff] }
 0x267   :  { %v1221_v58 = vpop.eup %1220  ;;  %v633_v52 = vsel %vm630_vm2, %v632_v26, %v628_v55  ;;  %vm655_vm12 = vweird.f32 %v1677_v37  ;;  %v659_v33 = vand.u32 2147483647, %v1677_v37  ;;  %v676_v55 = vand.u32 2147483648, %v1703_v56 }
 0x268   :  { %v1708_v62 = vpop.eup %1222  ;;  %v716_v63 = vmul.f32 %v633_v52, %v1567_v61  ;;  %v636_v1 = vmul.f32 %v1221_v58, %v1675_v35  ;;  %v614_v61 = vand.u32 2147483647, %v1630_v48  ;;  %1226 = vrcp.f32 %v1706_v2 }
 0x269   :  { %v651_v7 = vmul.f32 %v1708_v62, %v1677_v37  ;;  %vm641_vm5 = vweird.f32 %v1221_v58  ;;  %1228 = vpow2.f32 %v516_v3  ;;  %vm656_vm11 = vweird.f32 %v1708_v62 }
 0x26a   :  { %v637_v11 = vsub.f32 1.0, %v636_v1  ;;  %v730_v32 = vpack.c.bf16 %v716_v63, %v714_v10  ;;  %vm615_vm7 = vcmp.eq.f32.partialorder %v614_v61, 8.507059e+37  ;;  %vm642_vm9 = vmor %vm640_vm8, %vm641_vm5  ;;  %v689_v40 = vand.u32 2147483647, %v1706_v2 }
 0x26b   :  { %v652_v45 = vsub.f32 1.0, %v651_v7  ;;  %v1732_v48 = vpop.eup %1224  ;;  %v618_v9 = vsel %vm615_vm7, %v617_v17, %v613_v16  ;;  %vm657_vm13 = vmor %vm655_vm12, %vm656_vm11  ;;  %v691_v41 = vand.u32 2147483648, %v1706_v2  ;;  %vm660_vm15 = vcmp.eq.f32.partialorder %v659_v33, 8.507059e+37  ;;  %v723_v17 = vld [vmem:[#allocation3 + $0x8] sm:$0xff] }
 0x26c   :  { %v638_v15 = vmul.f32 %v1221_v58, %v637_v11  ;;  %875 = vmatmul.bf16.gmra.mxu3 %v730_v32  ;;  %v666_v24 = vmul.f32 %v1732_v48, %v1703_v56  ;;  %v715_v29 = vmul.f32 %v618_v9, %v1561_v59  ;;  %vm685_vm1 = vweird.f32 %v1706_v2 }
 0x26d   :  { %v653_v18 = vmul.f32 %v1708_v62, %v652_v45  ;;  %v692_v39 = vor.u32 1.1754944e-38, %v691_v41  ;;  %vm690_vm3 = vcmp.eq.f32.partialorder %v689_v40, 8.507059e+37  ;;  %vm671_vm4 = vweird.f32 %v1732_v48  ;;  %v726_v41 = vld [vmem:[#allocation3 + $0x20] sm:$0xff] }
 0x26e   :  { %v639_v19 = vadd.f32 %v1221_v58, %v638_v15  ;;  %v1227_v22 = vpop.eup %1226  ;;  %v667_v36 = vsub.f32 1.0, %v666_v24  ;;  %vm670_vm5 = vweird.f32 %v1703_v56  ;;  %v674_v8 = vand.u32 2147483647, %v1703_v56 }
 0x26f   :  { %v654_v27 = vadd.f32 %v1708_v62, %v653_v18  ;;  %v681_v28 = vmul.f32 %v1227_v22, %v1706_v2  ;;  %v1229_v23 = vpop.eup %1228  ;;  %vm686_vm14 = vweird.f32 %v1227_v22  ;;  %vm672_vm7 = vmor %vm670_vm5, %vm671_vm4 }
 0x270   :  { %v643_v20 = vsel %vm642_vm9, %v1221_v58, %v639_v19  ;;  %v529_v35 = vadd.f32 1.0, %v1229_v23  ;;  %v668_v25 = vmul.f32 %v1732_v48, %v667_v36  ;;  %vm687_vm2 = vmor %vm685_vm1, %vm686_vm14  ;;  %vm675_vm9 = vcmp.eq.f32.partialorder %v674_v8, 8.507059e+37  ;;  %v725_v23 = vld [vmem:[#allocation3 + $0x18] sm:$0xff] }
 0x271   :  { %v648_v57 = vsel %vm645_vm10, %v647_v21, %v643_v20  ;;  %v682_v34 = vsub.f32 1.0, %v681_v28  ;;  %v658_v43 = vsel %vm657_vm13, %v1708_v62, %v654_v27  ;;  %v677_v62 = vor.u32 1.1754944e-38, %v676_v55 }
 0x272   :  { %v717_v42 = vmul.f32 %v648_v57, %v1598_v54  ;;  %1230 = vrcp.f32 %v529_v35  ;;  %v662_v54 = vor.u32 1.1754944e-38, %v661_v31  ;;  %v669_v26 = vadd.f32 %v1732_v48, %v668_v25 }
 0x273   :  { %v683_v59 = vmul.f32 %v1227_v22, %v682_v34  ;;  %v706_v52 = vand.u32 2147483648, %v529_v35  ;;  %vm700_vm10 = vweird.f32 %v529_v35 }
 0x274   :  { %v731_v0 = vpack.c.bf16 %v717_v42, %v715_v29  ;;  %v663_v37 = vsel %vm660_vm15, %v662_v54, %v658_v43 }
 0x275   :  { %v684_v44 = vadd.f32 %v1227_v22, %v683_v59  ;;  %v718_v51 = vmul.f32 %v663_v37, %v1601_v30  ;;  %v673_v30 = vsel %vm672_vm7, %v1732_v48, %v669_v26  ;;  %v707_v3 = vor.u32 1.1754944e-38, %v706_v52 }
 0x276   :  { %899 = vmatmul.bf16.gmra.mxu0 %v731_v0  ;;  %v678_v1 = vsel %vm675_vm9, %v677_v62, %v673_v30 }
 0x277   :  { %v688_v46 = vsel %vm687_vm2, %v1227_v22, %v684_v44  ;;  %v719_v56 = vmul.f32 %v678_v1, %v1656_v4  ;;  %v724_v22 = vld [vmem:[#allocation3 + $0x10] sm:$0xff]  ;;  %v727_v44 = vld [vmem:[#allocation3 + $0x28] sm:$0xff] }
 0x278   :  { %v693_v47 = vsel %vm690_vm3, %v692_v39, %v688_v46  ;;  %v1231_v50 = vpop.eup %1230 }
 0x279   :  { %v720_v49 = vmul.f32 %v693_v47, %v1659_v5  ;;  %v696_v53 = vmul.f32 %v1231_v50, %v529_v35  ;;  %vm701_vm8 = vweird.f32 %v1231_v50  ;;  %v704_v5 = vand.u32 2147483647, %v529_v35 }
 0x27a   :  { %vm702_vm11 = vmor %vm700_vm10, %vm701_vm8 }
 0x27b   :  { %v732_v58 = vpack.c.bf16 %v720_v49, %v718_v51  ;;  %v697_v60 = vsub.f32 1.0, %v696_v53  ;;  %vm705_vm12 = vcmp.eq.f32.partialorder %v704_v5, 8.507059e+37 }
 0x27d   :  { %880 = vmatmul.bf16.gmra.mxu3 %v732_v58  ;;  %v698_v2 = vmul.f32 %v1231_v50, %v697_v60 }
 0x27f   :  { %v699_v63 = vadd.f32 %v1231_v50, %v698_v2 }
 0x281   :  { %v703_v6 = vsel %vm702_vm11, %v1231_v50, %v699_v63 }
 0x282   :  { %v708_v7 = vsel %vm705_vm12, %v707_v3, %v703_v6 }
 0x283   :  { %v721_v10 = vmul.f32 %v708_v7, %v1680_v38 }
 0x285   :  { %v733_v12 = vpack.c.bf16 %v721_v10, %v719_v56 }
 0x287   :  { %904 = vmatmul.bf16.vlgmr.msrb.gmra.mxu2 %v733_v12 }
 0x2de   :  { %v895_v61 = vpop.f32.mrf.mxu0  ;;  %v871_v11 = vpop.f32.mrf.mxu3 }
 0x2df   :  { %v896_v16 = vadd.f32 %v895_v61, %v871_v11 }
 0x2e1   :  { %v910_v14 = vadd.f32 %v896_v16, %v722_v13 }
 0x2e3   :  { %916 = vst.msk [vmem:[#allocation3] sm:$0xff] %vm97_vm0, %v910_v14 }
 0x2e6   :  { %v897_v45 = vpop.f32.mrf.mxu0  ;;  %v873_v15 = vpop.f32.mrf.mxu3 }
 0x2e7   :  { %v898_v32 = vadd.f32 %v897_v45, %v873_v15 }
 0x2e9   :  { %v911_v18 = vadd.f32 %v898_v32, %v723_v17 }
 0x2ea   :  { %v925_v48 = vld [vmem:[#allocation3] sm:$0xff] }
 0x2eb   :  { %v931_v19 = vpack.c.bf16 %v925_v48, %v925_v48  ;;  %917 = vst.msk [vmem:[#allocation3 + $0x8] sm:$0xff] %vm97_vm0, %v911_v18 }
 0x2ed   :  { %938 = vst.msk [vmem:[%s1800_s10] sm:$0xf] %vm314_vm6, %v931_v19 }
 0x2ef   :  { %v876_v4 = vpop.f32.mrf.mxu3 }
 0x2f2   :  { %v926_v21 = vld [vmem:[#allocation3 + $0x8] sm:$0xff] }
 0x2f3   :  { %v900_v38 = vpop.f32.mrf.mxu0  ;;  %v932_v20 = vpack.c.bf16 %v926_v21, %v926_v21 }
 0x2f4   :  { %v901_v9 = vadd.f32 %v900_v38, %v876_v4 }
 0x2f5   :  { %939 = vst.msk [vmem:[%s1800_s10 + $0x4] sm:$0xf] %vm314_vm6, %v932_v20 }
 0x2f6   :  { %v912_v24 = vadd.f32 %v901_v9, %v724_v22 }
 0x2f7   :  { %v878_v57 = vpop.f32.mrf.mxu3 }
 0x2f8   :  { %918 = vst.msk [vmem:[#allocation3 + $0x10] sm:$0xff] %vm97_vm0, %v912_v24 }
 0x2fb   :  { %v902_v27 = vpop.f32.mrf.mxu0 }
 0x2fc   :  { %v903_v28 = vadd.f32 %v902_v27, %v878_v57 }
 0x2fe   :  { %v913_v29 = vadd.f32 %v903_v28, %v725_v23 }
 0x2ff   :  { %v927_v42 = vld [vmem:[#allocation3 + $0x10] sm:$0xff] }
 0x300   :  { %919 = vst.msk [vmem:[#allocation3 + $0x18] sm:$0xff] %vm97_vm0, %v913_v29  ;;  %v933_v31 = vpack.c.bf16 %v927_v42, %v927_v42  ;;  %v881_v35 = vpop.f32.mrf.mxu3 }
 0x302   :  { %940 = vst.msk [vmem:[%s1800_s10 + $0x8] sm:$0xf] %vm314_vm6, %v933_v31 }
 0x307   :  { %v928_v33 = vld [vmem:[#allocation3 + $0x18] sm:$0xff] }
 0x308   :  { %v934_v34 = vpack.c.bf16 %v928_v33, %v928_v33  ;;  %v883_v43 = vpop.f32.mrf.mxu3 }
 0x30a   :  { %941 = vst.msk [vmem:[%s1800_s10 + $0xc] sm:$0xf] %vm314_vm6, %v934_v34  ;;  %v905_v36 = vpop.f32.mrf.mxu2 }
 0x30b   :  { %v906_v40 = vadd.f32 %v905_v36, %v881_v35 }
 0x30d   :  { %v914_v0 = vadd.f32 %v906_v40, %v726_v41 }
 0x30f   :  { %920 = vst.msk [vmem:[#allocation3 + $0x20] sm:$0xff] %vm97_vm0, %v914_v0 }
 0x312   :  { %v907_v59 = vpop.f32.mrf.mxu2 }
 0x313   :  { %v908_v54 = vadd.f32 %v907_v59, %v883_v43 }
 0x315   :  { %v915_v37 = vadd.f32 %v908_v54, %v727_v44 }
 0x316   :  { %v929_v25 = vld [vmem:[#allocation3 + $0x20] sm:$0xff] }
 0x317   :  { %v935_v39 = vpack.c.bf16 %v929_v25, %v929_v25  ;;  %921 = vst.msk [vmem:[#allocation3 + $0x28] sm:$0xff] %vm97_vm0, %v915_v37 }
 0x319   :  { %942 = vst.msk [vmem:[%s1800_s10 + $0x10] sm:$0xf] %vm314_vm6, %v935_v39 }
 0x31e   :  { %v930_v46 = vld [vmem:[#allocation3 + $0x28] sm:$0xff] }
 0x31f   :  { %v936_v47 = vpack.c.bf16 %v930_v46, %v930_v46 }
 0x321   :  { %943 = vst.msk [vmem:[%s1800_s10 + $0x14] sm:$0xf] %vm314_vm6, %v936_v47 }

</bundles_post_ra>
